<compile_context>
chip_gen: v6e
topology: v6e:2x2x1
jax: 0.10.0
libtpu: 0.0.40
codegen_flags: <defaults>
</compile_context>

<pallas_src>
import functools

import jax
import jax.numpy as jnp
from jax.experimental import pallas as pl
from jax.experimental.pallas import tpu as pltpu

LANE = 128


# --------------------------------------------------------------------------
# Kernel
# --------------------------------------------------------------------------
def _inverted_residual_kernel(
    x_ref,       # (H, W, Cin_p)    f32  full (padded-channel) image, this batch elt
    w1_ref,      # (Cin_p, hid_p)   bf16 expand 1x1 weight, BN1 scale folded in
    b12_ref,     # (2, hid_p)       f32  row 0 = BN1 bias, row 1 = BN2 bias
    dw_ref,      # (9, hid_p)       f32  depthwise 3x3 taps, BN2 scale folded in
    w3_ref,      # (hid_p, Cout_p)  bf16 project 1x1 weight, BN3 scale folded in
    b3_ref,      # (1, Cout_p)      f32  BN3 bias
    o_ref,       # (TH, W, Cout_p)  f32  output row-tile
    x_halo_ref,  # (TH+2, W, Cin_p) f32  VMEM scratch for the halo tile
    *,
    block_h: int,
    use_res_connect: bool,
    dw_dtype,
):
    H, W, _ = x_ref.shape
    hid = w1_ref.shape[1]
    cout = w3_ref.shape[1]
    TH = block_h

    t = pl.program_id(1)
    n_t = pl.num_programs(1)
    row0 = pl.multiple_of(t * TH, TH)

    # ---- assemble TH+2 halo rows into scratch (zero rows at image borders) ----
    top = x_ref[pl.ds(jnp.maximum(row0 - 1, 0), 1), :, :]
    bot = x_ref[pl.ds(jnp.minimum(row0 + TH, H - 1), 1), :, :]
    x_halo_ref[0:1, :, :] = jnp.where(t > 0, top, jnp.zeros_like(top))
    x_halo_ref[TH + 1:TH + 2, :, :] = jnp.where(t < n_t - 1, bot,
                                                jnp.zeros_like(bot))
    x_halo_ref[1:TH + 1, :, :] = x_ref[pl.ds(row0, TH), :, :]
    x_halo = x_halo_ref[...]                                   # (TH+2, W, Cin_p)

    # ---- 1x1 expand conv (MXU, bf16 operands, f32 acc) + bias + ReLU6 ----
    h = jnp.dot(
        x_halo.astype(jnp.bfloat16).reshape((TH + 2) * W, -1),
        w1_ref[...],
        preferred_element_type=jnp.float32,
    )                                                          # ((TH+2)*W, hid_p)
    h = jnp.clip(h + b12_ref[0:1, :], 0.0, 6.0).reshape(TH + 2, W, hid)

    # ---- 3x3 depthwise conv, stride 1, pad 1 ----
    # dy handled by static slices of the halo rows; dx handled by XLU rolls
    # along W (non-negative shifts only) plus an edge mask.
    col = jax.lax.broadcasted_iota(jnp.int32, (1, W, 1), 1)
    left = jnp.where(col == 0, 0.0, pltpu.roll(h, shift=1, axis=1))        # j-1
    right = jnp.where(col == W - 1, 0.0, pltpu.roll(h, shift=W - 1, axis=1))  # j+1
    h_dx = (left.astype(dw_dtype), h.astype(dw_dtype), right.astype(dw_dtype))

    taps = dw_ref[...].astype(dw_dtype).reshape(9, 1, 1, hid)  # hoisted once
    acc = jnp.zeros((TH, W, hid), jnp.float32)
    for dy in range(3):
        for dx in range(3):
            acc = acc + h_dx[dx][dy:dy + TH] * taps[dy * 3 + dx]
    g = jnp.clip(acc + b12_ref[1:2, :].reshape(1, 1, hid), 0.0, 6.0)

    # ---- 1x1 project conv (MXU, bf16 operands, f32 acc) + bias ----
    y = jnp.dot(
        g.astype(jnp.bfloat16).reshape(TH * W, hid),
        w3_ref[...],
        preferred_element_type=jnp.float32,
    )                                                          # (TH*W, Cout_p)
    y = (y + b3_ref[...]).reshape(TH, W, cout)

    # ---- residual (f32 x re-read from the VMEM scratch) ----
    if use_res_connect:
        y = y + x_halo_ref[1:TH + 1, :, :]

    o_ref[...] = y.astype(o_ref.dtype)


# --------------------------------------------------------------------------
# Wrapper-side helpers
# --------------------------------------------------------------------------
def _round_up(v, m):
    return ((v + m - 1) // m) * m


def _device_kind():
    try:
        return jax.devices()[0].device_kind.lower()
    except Exception:
        return ""


def _vmem_limit_bytes():
    kind = _device_kind()
    if "v5" in kind or "v6" in kind:
        return 96 * 1024 * 1024        # 128 MiB physical VMEM parts
    return 48 * 1024 * 1024            # v7x (64 MiB / TC) and unknown: conservative


def _dw_compute_dtype():
    kind = _device_kind()
    if "v5" in kind:
        return jnp.float32             # no packed-bf16 VPU on v5e
    return jnp.bfloat16                # v6e / v7x: packed bf16 elementwise


def _estimate_vmem(th, H, W, cin_p, hid_p, cout_p):
    """Rough per-step VMEM working-set estimate (bytes)."""
    x_block = 2 * H * W * cin_p * 4                 # full image, double-buffered
    out_block = 2 * th * W * cout_p * 4             # output tile, double-buffered
    halo = (th + 2) * W * cin_p * 4                 # scratch
    h_rolls = 3 * (th + 2) * W * hid_p * 4          # h + two rolled copies (f32 peak)
    acc_g = 2 * th * W * hid_p * 4
    weights = 2 * (cin_p * hid_p + hid_p * cout_p) + (11 * hid_p + cout_p) * 4
    return x_block + out_block + halo + h_rolls + acc_g + weights


def _choose_block_h(H, W, cin_p, hid_p, cout_p, budget_bytes):
    """Largest divisor of H whose working set fits the budget."""
    best = None
    for th in range(1, H + 1):
        if H % th:
            continue
        if _estimate_vmem(th, H, W, cin_p, hid_p, cout_p) <= budget_bytes:
            best = th
    return best if best is not None else 1


# --------------------------------------------------------------------------
# Public entry points
# --------------------------------------------------------------------------
def inverted_residual_pallas_nhwc(x_nhwc, params, *, stride=1):
    """Forward pass, NHWC in / NHWC out. x_nhwc: (N, H, W, Cin) float32."""
    assert stride == 1, "only stride=1 implemented in the Pallas kernel"
    N, H, W, Cin = x_nhwc.shape
    hid = params["w1"].shape[1]
    Cout = params["w3"].shape[1]
    use_res = (stride == 1) and (Cin == Cout)

    # Lane-dense padding of every channel dim (zero-padded channels are inert).
    cin_p = _round_up(Cin, LANE)
    hid_p = _round_up(hid, LANE)
    cout_p = _round_up(Cout, LANE)
    if use_res:
        assert cin_p == cout_p

    dw_dtype = _dw_compute_dtype()
    vmem_limit = _vmem_limit_bytes()
    TH = _choose_block_h(H, W, cin_p, hid_p, cout_p, vmem_limit // 2)
    n_t = H // TH

    # Fold BN scales into conv weights; pad channel dims; bf16 MXU weights.
    x_p = jnp.pad(x_nhwc.astype(jnp.float32),
                  ((0, 0), (0, 0), (0, 0), (0, cin_p - Cin)))
    w1 = jnp.pad(params["w1"] * params["s1"],
                 ((0, cin_p - Cin), (0, hid_p - hid))).astype(jnp.bfloat16)
    dw = jnp.pad(params["dw"] * params["s2"],
                 ((0, 0), (0, hid_p - hid))).astype(jnp.float32)
    b12 = jnp.pad(jnp.concatenate([params["b1"], params["b2"]], axis=0),
                  ((0, 0), (0, hid_p - hid))).astype(jnp.float32)
    w3 = jnp.pad(params["w3"] * params["s3"],
                 ((0, hid_p - hid), (0, cout_p - Cout))).astype(jnp.bfloat16)
    b3 = jnp.pad(params["b3"],
                 ((0, 0), (0, cout_p - Cout))).astype(jnp.float32)

    kernel = functools.partial(
        _inverted_residual_kernel,
        block_h=TH, use_res_connect=use_res, dw_dtype=dw_dtype)

    out_p = pl.pallas_call(
        kernel,
        out_shape=jax.ShapeDtypeStruct((N, H, W, cout_p), jnp.float32),
        grid_spec=pltpu.PrefetchScalarGridSpec(
            num_scalar_prefetch=0,
            grid=(N, n_t),
            in_specs=[
                # Full image per batch element; constant block index across t
                # so it stays resident while row tiles are processed.
                pl.BlockSpec((None, H, W, cin_p), lambda n, t: (n, 0, 0, 0)),
                pl.BlockSpec((cin_p, hid_p), lambda n, t: (0, 0)),
                pl.BlockSpec((2, hid_p), lambda n, t: (0, 0)),
                pl.BlockSpec((9, hid_p), lambda n, t: (0, 0)),
                pl.BlockSpec((hid_p, cout_p), lambda n, t: (0, 0)),
                pl.BlockSpec((1, cout_p), lambda n, t: (0, 0)),
            ],
            out_specs=pl.BlockSpec((None, TH, W, cout_p),
                                   lambda n, t: (n, t, 0, 0)),
            scratch_shapes=[pltpu.VMEM((TH + 2, W, cin_p), jnp.float32)],
        ),
        compiler_params=pltpu.CompilerParams(
            dimension_semantics=("parallel", "parallel"),
            vmem_limit_bytes=vmem_limit,
        ),
    )(x_p, w1, b12, dw, w3, b3)

    return out_p[..., :Cout]


def inverted_residual_pallas(x_nchw, params, *, stride=1):
    """PyTorch-layout wrapper (NCHW in / NCHW out) around the NHWC kernel."""
    x_nhwc = jnp.transpose(x_nchw, (0, 2, 3, 1))
    out_nhwc = inverted_residual_pallas_nhwc(x_nhwc, params, stride=stride)
    return jnp.transpose(out_nhwc, (0, 3, 1, 2))


# --------------------------------------------------------------------------
# Parameters & pure-JAX reference
# --------------------------------------------------------------------------
def _fold_bn(gamma, beta, mean, var, eps=1e-5):
    scale = gamma / jnp.sqrt(var + eps)
    bias = beta - mean * scale
    return scale, bias


def make_params(key, inp, oup, expand_ratio=4):
    """Deterministic synthetic parameters matching the PyTorch module shapes."""
    hid = int(round(inp * expand_ratio))
    keys = jax.random.split(key, 15)

    w1 = 0.1 * jax.random.normal(keys[0], (inp, hid), jnp.float32)
    dw = 0.1 * jax.random.normal(keys[1], (3, 3, hid), jnp.float32)
    w3 = 0.1 * jax.random.normal(keys[2], (hid, oup), jnp.float32)

    def bn(kg, kb, km, kv, c):
        gamma = jax.random.uniform(kg, (c,), jnp.float32, 0.5, 1.5)
        beta = 0.1 * jax.random.normal(kb, (c,), jnp.float32)
        mean = 0.1 * jax.random.normal(km, (c,), jnp.float32)
        var = jax.random.uniform(kv, (c,), jnp.float32, 0.5, 1.5)
        return _fold_bn(gamma, beta, mean, var)

    s1, b1 = bn(keys[3], keys[4], keys[5], keys[6], hid)
    s2, b2 = bn(keys[7], keys[8], keys[9], keys[10], hid)
    s3, b3 = bn(keys[11], keys[12], keys[13], keys[14], oup)

    return {
        "w1": w1,
        "s1": s1.reshape(1, hid), "b1": b1.reshape(1, hid),
        "dw": dw.reshape(9, hid),
        "s2": s2.reshape(1, hid), "b2": b2.reshape(1, hid),
        "w3": w3,
        "s3": s3.reshape(1, oup), "b3": b3.reshape(1, oup),
    }


def inverted_residual_ref(x_nchw, params, *, stride=1):
    """Pure-JAX f32 reference (same math as the PyTorch module), NCHW I/O."""
    N, Cin, H, W = x_nchw.shape
    hid = params["w1"].shape[1]
    use_res = (stride == 1) and (Cin == params["w3"].shape[1])

    x = jnp.transpose(x_nchw, (0, 2, 3, 1)).astype(jnp.float32)
    h = jnp.einsum("nhwc,cd->nhwd", x, params["w1"])
    h = jnp.clip(h * params["s1"] + params["b1"], 0.0, 6.0)

    hp = jnp.pad(h, ((0, 0), (1, 1), (1, 1), (0, 0)))
    acc = jnp.zeros((N, H, W, hid), jnp.float32)
    for dy in range(3):
        for dx in range(3):
            acc = acc + hp[:, dy:dy + H, dx:dx + W, :] * params["dw"][dy * 3 + dx]
    g = jnp.clip(acc * params["s2"] + params["b2"], 0.0, 6.0)

    y = jnp.einsum("nhwd,de->nhwe", g, params["w3"])
    y = y * params["s3"] + params["b3"]
    if use_res:
        y = y + x
    return jnp.transpose(y, (0, 3, 1, 2))


if __name__ == "__main__":
    key = jax.random.PRNGKey(0)
    k_x, k_p = jax.random.split(key)

    # InvertedResidual(inp=4, oup=4, stride=1, expand_ratio=4) -> hidden_dim=16,
    # use_res_connect=True.
    N, Cin, H, W = 2, 4, 16, 16
    x = jax.random.normal(k_x, (N, Cin, H, W), jnp.float32)
    params = make_params(k_p, inp=Cin, oup=Cin, expand_ratio=4)

    out = inverted_residual_pallas(x, params, stride=1)
    out = jax.block_until_ready(out)

    ref = inverted_residual_ref(x, params, stride=1)
    assert out.shape == (N, Cin, H, W)
    # bf16 MXU operands + bf16 depthwise muls (f32 accumulation everywhere):
    # tolerance covers the bf16 quantization noise vs the f32 reference.
    assert jnp.allclose(out, ref, atol=8e-2, rtol=5e-2), "mismatch vs reference"

    print("KERNEL_OK")
</pallas_src>

<mosaic_0001>
module attributes {stable_mosaic.version = 11 : i64} {
  func.func @_inverted_residual_kernel(%arg0: i32, %arg1: i32, %arg2: memref<1x16x16x128xf32, #tpu.memory_space<vmem>>, %arg3: memref<128x128xbf16, #tpu.memory_space<vmem>>, %arg4: memref<2x128xf32, #tpu.memory_space<vmem>>, %arg5: memref<9x128xf32, #tpu.memory_space<vmem>>, %arg6: memref<128x128xbf16, #tpu.memory_space<vmem>>, %arg7: memref<1x128xf32, #tpu.memory_space<vmem>>, %arg8: memref<1x16x16x128xf32, #tpu.memory_space<vmem>>, %arg9: memref<18x16x128xf32, #tpu.memory_space<vmem>>) attributes {dimension_semantics = [#tpu.dimension_semantics<parallel>, #tpu.dimension_semantics<parallel>], iteration_bounds = array<i64: 2, 1>, scalar_prefetch = 0 : i64, scratch_operands = 1 : i64, tpu.core_type = #tpu.core_type<tc>, window_params = [{transform_indices = @transform_0, window_bounds = array<i64: 1, 16, 16, 128>}, {pipeline_mode = #tpu.pipeline_mode<synchronous>, transform_indices = @transform_1, window_bounds = array<i64: 128, 128>}, {pipeline_mode = #tpu.pipeline_mode<synchronous>, transform_indices = @transform_2, window_bounds = array<i64: 2, 128>}, {pipeline_mode = #tpu.pipeline_mode<synchronous>, transform_indices = @transform_3, window_bounds = array<i64: 9, 128>}, {pipeline_mode = #tpu.pipeline_mode<synchronous>, transform_indices = @transform_4, window_bounds = array<i64: 128, 128>}, {pipeline_mode = #tpu.pipeline_mode<synchronous>, transform_indices = @transform_5, window_bounds = array<i64: 1, 128>}, {transform_indices = @transform_6, window_bounds = array<i64: 1, 16, 16, 128>}]} {
    %c16_i32 = arith.constant 16 : i32
    %0 = arith.muli %arg1, %c16_i32 : i32
    %1 = tpu.assume_multiple %0, 16 : i32
    %c1_i32 = arith.constant 1 : i32
    %2 = arith.subi %1, %c1_i32 : i32
    %c0_i32 = arith.constant 0 : i32
    %3 = arith.maxsi %2, %c0_i32 : i32
    %c0 = arith.constant 0 : index
    %4 = arith.index_cast %3 : i32 to index
    %c0_0 = arith.constant 0 : index
    %c0_1 = arith.constant 0 : index
    %5 = vector.load %arg2[%c0, %4, %c0_0, %c0_1] : memref<1x16x16x128xf32, #tpu.memory_space<vmem>>, vector<1x1x16x128xf32>
    %6 = vector.shape_cast %5 : vector<1x1x16x128xf32> to vector<1x16x128xf32>
    %c16_i32_2 = arith.constant 16 : i32
    %7 = arith.addi %1, %c16_i32_2 : i32
    %c15_i32 = arith.constant 15 : i32
    %8 = arith.minsi %7, %c15_i32 : i32
    %c0_3 = arith.constant 0 : index
    %9 = arith.index_cast %8 : i32 to index
    %c0_4 = arith.constant 0 : index
    %c0_5 = arith.constant 0 : index
    %10 = vector.load %arg2[%c0_3, %9, %c0_4, %c0_5] : memref<1x16x16x128xf32, #tpu.memory_space<vmem>>, vector<1x1x16x128xf32>
    %11 = vector.shape_cast %10 : vector<1x1x16x128xf32> to vector<1x16x128xf32>
    %c0_i32_6 = arith.constant 0 : i32
    %12 = arith.cmpi sgt, %arg1, %c0_i32_6 : i32
    %cst = arith.constant 0.000000e+00 : f32
    %13 = vector.broadcast %cst : f32 to vector<1x16x128xf32>
    %14 = arith.select %12, %6, %13 : vector<1x16x128xf32>
    %c0_7 = arith.constant 0 : index
    %c0_8 = arith.constant 0 : index
    %c0_9 = arith.constant 0 : index
    %15 = vector.load %arg9[%c0_7, %c0_8, %c0_9] : memref<18x16x128xf32, #tpu.memory_space<vmem>>, vector<1x16x128xf32>
    tpu.vector_store %arg9[%c0_7, %c0_8, %c0_9], %14 {strides = array<i32>} : memref<18x16x128xf32, #tpu.memory_space<vmem>>, vector<1x16x128xf32>,
    %c0_i32_10 = arith.constant 0 : i32
    %16 = arith.cmpi slt, %arg1, %c0_i32_10 : i32
    %cst_11 = arith.constant 0.000000e+00 : f32
    %17 = vector.broadcast %cst_11 : f32 to vector<1x16x128xf32>
    %18 = arith.select %16, %11, %17 : vector<1x16x128xf32>
    %c17 = arith.constant 17 : index
    %c0_12 = arith.constant 0 : index
    %c0_13 = arith.constant 0 : index
    %19 = vector.load %arg9[%c17, %c0_12, %c0_13] : memref<18x16x128xf32, #tpu.memory_space<vmem>>, vector<1x16x128xf32>
    tpu.vector_store %arg9[%c17, %c0_12, %c0_13], %18 {strides = array<i32>} : memref<18x16x128xf32, #tpu.memory_space<vmem>>, vector<1x16x128xf32>,
    %c0_14 = arith.constant 0 : index
    %20 = arith.index_cast %1 : i32 to index
    %c0_15 = arith.constant 0 : index
    %c0_16 = arith.constant 0 : index
    %21 = vector.load %arg2[%c0_14, %20, %c0_15, %c0_16] : memref<1x16x16x128xf32, #tpu.memory_space<vmem>>, vector<1x16x16x128xf32>
    %22 = vector.shape_cast %21 : vector<1x16x16x128xf32> to vector<16x16x128xf32>
    %c1 = arith.constant 1 : index
    %c0_17 = arith.constant 0 : index
    %c0_18 = arith.constant 0 : index
    %23 = vector.load %arg9[%c1, %c0_17, %c0_18] : memref<18x16x128xf32, #tpu.memory_space<vmem>>, vector<16x16x128xf32>
    tpu.vector_store %arg9[%c1, %c0_17, %c0_18], %22 {strides = array<i32>} : memref<18x16x128xf32, #tpu.memory_space<vmem>>, vector<16x16x128xf32>,
    %c0_19 = arith.constant 0 : index
    %c0_20 = arith.constant 0 : index
    %c0_21 = arith.constant 0 : index
    %24 = vector.load %arg9[%c0_19, %c0_20, %c0_21] : memref<18x16x128xf32, #tpu.memory_space<vmem>>, vector<18x16x128xf32>
    %25 = arith.truncf %24 : vector<18x16x128xf32> to vector<18x16x128xbf16>
    %26 = vector.shape_cast %25 : vector<18x16x128xbf16> to vector<288x128xbf16>
    %c0_22 = arith.constant 0 : index
    %c0_23 = arith.constant 0 : index
    %27 = vector.load %arg3[%c0_22, %c0_23] : memref<128x128xbf16, #tpu.memory_space<vmem>>, vector<128x128xbf16>
    %cst_24 = arith.constant dense<0.000000e+00> : vector<288x128xf32>
    %28 = tpu.matmul %26, %27, %cst_24 {dimension_numbers = #tpu.dot_dimension_numbers<[1], [0], [0], [1], [0, 0, 1, 1], [], []>} : vector<288x128xbf16>, vector<128x128xbf16>, vector<288x128xf32> -> vector<288x128xf32>
    %c0_25 = arith.constant 0 : index
    %c0_26 = arith.constant 0 : index
    %29 = vector.load %arg4[%c0_25, %c0_26] : memref<2x128xf32, #tpu.memory_space<vmem>>, vector<1x128xf32>
    %30 = vector.broadcast %29 : vector<1x128xf32> to vector<288x128xf32>
    %31 = arith.addf %28, %30 : vector<288x128xf32>
    %cst_27 = arith.constant 0.000000e+00 : f32
    %cst_28 = arith.constant 6.000000e+00 : f32
    %32 = vector.broadcast %cst_27 : f32 to vector<288x128xf32>
    %33 = arith.maximumf %32, %31 : vector<288x128xf32>
    %34 = vector.broadcast %cst_28 : f32 to vector<288x128xf32>
    %35 = arith.minimumf %34, %33 : vector<288x128xf32>
    %36 = vector.shape_cast %35 : vector<288x128xf32> to vector<18x16x128xf32>
    %37 = tpu.iota {dimensions = array<i32: 1>} : vector<1x16x1xi32>
    %c0_i32_29 = arith.constant 0 : i32
    %38 = vector.broadcast %c0_i32_29 : i32 to vector<1x16x1xi32>
    %39 = arith.cmpi eq, %37, %38 : vector<1x16x1xi32>
    %c1_i32_30 = arith.constant 1 : i32
    %40 = tpu.dynamic_rotate %36 by %c1_i32_30 dim 1 : vector<18x16x128xf32>, i32 -> vector<18x16x128xf32>
    %cst_31 = arith.constant 0.000000e+00 : f32
    %41 = vector.shape_cast %39 : vector<1x16x1xi1> to vector<1x16x1xi1>
    %42 = vector.broadcast %41 : vector<1x16x1xi1> to vector<18x16x128xi1>
    %43 = vector.broadcast %cst_31 : f32 to vector<18x16x128xf32>
    %44 = arith.select %42, %43, %40 : vector<18x16x128xi1>, vector<18x16x128xf32>
    %c15_i32_32 = arith.constant 15 : i32
    %45 = vector.broadcast %c15_i32_32 : i32 to vector<1x16x1xi32>
    %46 = arith.cmpi eq, %37, %45 : vector<1x16x1xi32>
    %c15_i32_33 = arith.constant 15 : i32
    %47 = tpu.dynamic_rotate %36 by %c15_i32_33 dim 1 : vector<18x16x128xf32>, i32 -> vector<18x16x128xf32>
    %cst_34 = arith.constant 0.000000e+00 : f32
    %48 = vector.shape_cast %46 : vector<1x16x1xi1> to vector<1x16x1xi1>
    %49 = vector.broadcast %48 : vector<1x16x1xi1> to vector<18x16x128xi1>
    %50 = vector.broadcast %cst_34 : f32 to vector<18x16x128xf32>
    %51 = arith.select %49, %50, %47 : vector<18x16x128xi1>, vector<18x16x128xf32>
    %52 = arith.truncf %44 : vector<18x16x128xf32> to vector<18x16x128xbf16>
    %53 = arith.truncf %36 : vector<18x16x128xf32> to vector<18x16x128xbf16>
    %54 = arith.truncf %51 : vector<18x16x128xf32> to vector<18x16x128xbf16>
    %c0_35 = arith.constant 0 : index
    %c0_36 = arith.constant 0 : index
    %55 = vector.load %arg5[%c0_35, %c0_36] : memref<9x128xf32, #tpu.memory_space<vmem>>, vector<9x128xf32>
    %56 = arith.truncf %55 : vector<9x128xf32> to vector<9x128xbf16>
    %57 = vector.shape_cast %56 : vector<9x128xbf16> to vector<9x1x1x128xbf16>
    %cst_37 = arith.constant 0.000000e+00 : f32
    %58 = vector.broadcast %cst_37 : f32 to vector<16x16x128xf32>
    %59 = vector.extract_strided_slice %52 {offsets = [0, 0, 0], sizes = [16, 16, 128], strides = [1, 1, 1]} : vector<18x16x128xbf16> to vector<16x16x128xbf16>
    %60 = vector.extract_strided_slice %57 {offsets = [0, 0, 0, 0], sizes = [1, 1, 1, 128], strides = [1, 1, 1, 1]} : vector<9x1x1x128xbf16> to vector<1x1x1x128xbf16>
    %61 = vector.shape_cast %60 : vector<1x1x1x128xbf16> to vector<1x1x128xbf16>
    %62 = vector.broadcast %61 : vector<1x1x128xbf16> to vector<16x16x128xbf16>
    %63 = arith.mulf %59, %62 : vector<16x16x128xbf16>
    %64 = arith.extf %63 : vector<16x16x128xbf16> to vector<16x16x128xf32>
    %65 = arith.addf %58, %64 : vector<16x16x128xf32>
    %66 = vector.extract_strided_slice %53 {offsets = [0, 0, 0], sizes = [16, 16, 128], strides = [1, 1, 1]} : vector<18x16x128xbf16> to vector<16x16x128xbf16>
    %67 = vector.extract_strided_slice %57 {offsets = [1, 0, 0, 0], sizes = [1, 1, 1, 128], strides = [1, 1, 1, 1]} : vector<9x1x1x128xbf16> to vector<1x1x1x128xbf16>
    %68 = vector.shape_cast %67 : vector<1x1x1x128xbf16> to vector<1x1x128xbf16>
    %69 = vector.broadcast %68 : vector<1x1x128xbf16> to vector<16x16x128xbf16>
    %70 = arith.mulf %66, %69 : vector<16x16x128xbf16>
    %71 = arith.extf %70 : vector<16x16x128xbf16> to vector<16x16x128xf32>
    %72 = arith.addf %65, %71 : vector<16x16x128xf32>
    %73 = vector.extract_strided_slice %54 {offsets = [0, 0, 0], sizes = [16, 16, 128], strides = [1, 1, 1]} : vector<18x16x128xbf16> to vector<16x16x128xbf16>
    %74 = vector.extract_strided_slice %57 {offsets = [2, 0, 0, 0], sizes = [1, 1, 1, 128], strides = [1, 1, 1, 1]} : vector<9x1x1x128xbf16> to vector<1x1x1x128xbf16>
    %75 = vector.shape_cast %74 : vector<1x1x1x128xbf16> to vector<1x1x128xbf16>
    %76 = vector.broadcast %75 : vector<1x1x128xbf16> to vector<16x16x128xbf16>
    %77 = arith.mulf %73, %76 : vector<16x16x128xbf16>
    %78 = arith.extf %77 : vector<16x16x128xbf16> to vector<16x16x128xf32>
    %79 = arith.addf %72, %78 : vector<16x16x128xf32>
    %80 = vector.extract_strided_slice %52 {offsets = [1, 0, 0], sizes = [16, 16, 128], strides = [1, 1, 1]} : vector<18x16x128xbf16> to vector<16x16x128xbf16>
    %81 = vector.extract_strided_slice %57 {offsets = [3, 0, 0, 0], sizes = [1, 1, 1, 128], strides = [1, 1, 1, 1]} : vector<9x1x1x128xbf16> to vector<1x1x1x128xbf16>
    %82 = vector.shape_cast %81 : vector<1x1x1x128xbf16> to vector<1x1x128xbf16>
    %83 = vector.broadcast %82 : vector<1x1x128xbf16> to vector<16x16x128xbf16>
    %84 = arith.mulf %80, %83 : vector<16x16x128xbf16>
    %85 = arith.extf %84 : vector<16x16x128xbf16> to vector<16x16x128xf32>
    %86 = arith.addf %79, %85 : vector<16x16x128xf32>
    %87 = vector.extract_strided_slice %53 {offsets = [1, 0, 0], sizes = [16, 16, 128], strides = [1, 1, 1]} : vector<18x16x128xbf16> to vector<16x16x128xbf16>
    %88 = vector.extract_strided_slice %57 {offsets = [4, 0, 0, 0], sizes = [1, 1, 1, 128], strides = [1, 1, 1, 1]} : vector<9x1x1x128xbf16> to vector<1x1x1x128xbf16>
    %89 = vector.shape_cast %88 : vector<1x1x1x128xbf16> to vector<1x1x128xbf16>
    %90 = vector.broadcast %89 : vector<1x1x128xbf16> to vector<16x16x128xbf16>
    %91 = arith.mulf %87, %90 : vector<16x16x128xbf16>
    %92 = arith.extf %91 : vector<16x16x128xbf16> to vector<16x16x128xf32>
    %93 = arith.addf %86, %92 : vector<16x16x128xf32>
    %94 = vector.extract_strided_slice %54 {offsets = [1, 0, 0], sizes = [16, 16, 128], strides = [1, 1, 1]} : vector<18x16x128xbf16> to vector<16x16x128xbf16>
    %95 = vector.extract_strided_slice %57 {offsets = [5, 0, 0, 0], sizes = [1, 1, 1, 128], strides = [1, 1, 1, 1]} : vector<9x1x1x128xbf16> to vector<1x1x1x128xbf16>
    %96 = vector.shape_cast %95 : vector<1x1x1x128xbf16> to vector<1x1x128xbf16>
    %97 = vector.broadcast %96 : vector<1x1x128xbf16> to vector<16x16x128xbf16>
    %98 = arith.mulf %94, %97 : vector<16x16x128xbf16>
    %99 = arith.extf %98 : vector<16x16x128xbf16> to vector<16x16x128xf32>
    %100 = arith.addf %93, %99 : vector<16x16x128xf32>
    %101 = vector.extract_strided_slice %52 {offsets = [2, 0, 0], sizes = [16, 16, 128], strides = [1, 1, 1]} : vector<18x16x128xbf16> to vector<16x16x128xbf16>
    %102 = vector.extract_strided_slice %57 {offsets = [6, 0, 0, 0], sizes = [1, 1, 1, 128], strides = [1, 1, 1, 1]} : vector<9x1x1x128xbf16> to vector<1x1x1x128xbf16>
    %103 = vector.shape_cast %102 : vector<1x1x1x128xbf16> to vector<1x1x128xbf16>
    %104 = vector.broadcast %103 : vector<1x1x128xbf16> to vector<16x16x128xbf16>
    %105 = arith.mulf %101, %104 : vector<16x16x128xbf16>
    %106 = arith.extf %105 : vector<16x16x128xbf16> to vector<16x16x128xf32>
    %107 = arith.addf %100, %106 : vector<16x16x128xf32>
    %108 = vector.extract_strided_slice %53 {offsets = [2, 0, 0], sizes = [16, 16, 128], strides = [1, 1, 1]} : vector<18x16x128xbf16> to vector<16x16x128xbf16>
    %109 = vector.extract_strided_slice %57 {offsets = [7, 0, 0, 0], sizes = [1, 1, 1, 128], strides = [1, 1, 1, 1]} : vector<9x1x1x128xbf16> to vector<1x1x1x128xbf16>
    %110 = vector.shape_cast %109 : vector<1x1x1x128xbf16> to vector<1x1x128xbf16>
    %111 = vector.broadcast %110 : vector<1x1x128xbf16> to vector<16x16x128xbf16>
    %112 = arith.mulf %108, %111 : vector<16x16x128xbf16>
    %113 = arith.extf %112 : vector<16x16x128xbf16> to vector<16x16x128xf32>
    %114 = arith.addf %107, %113 : vector<16x16x128xf32>
    %115 = vector.extract_strided_slice %54 {offsets = [2, 0, 0], sizes = [16, 16, 128], strides = [1, 1, 1]} : vector<18x16x128xbf16> to vector<16x16x128xbf16>
    %116 = vector.extract_strided_slice %57 {offsets = [8, 0, 0, 0], sizes = [1, 1, 1, 128], strides = [1, 1, 1, 1]} : vector<9x1x1x128xbf16> to vector<1x1x1x128xbf16>
    %117 = vector.shape_cast %116 : vector<1x1x1x128xbf16> to vector<1x1x128xbf16>
    %118 = vector.broadcast %117 : vector<1x1x128xbf16> to vector<16x16x128xbf16>
    %119 = arith.mulf %115, %118 : vector<16x16x128xbf16>
    %120 = arith.extf %119 : vector<16x16x128xbf16> to vector<16x16x128xf32>
    %121 = arith.addf %114, %120 : vector<16x16x128xf32>
    %c1_38 = arith.constant 1 : index
    %c0_39 = arith.constant 0 : index
    %122 = vector.load %arg4[%c1_38, %c0_39] : memref<2x128xf32, #tpu.memory_space<vmem>>, vector<1x128xf32>
    %123 = vector.shape_cast %122 : vector<1x128xf32> to vector<1x1x128xf32>
    %124 = vector.broadcast %123 : vector<1x1x128xf32> to vector<16x16x128xf32>
    %125 = arith.addf %121, %124 : vector<16x16x128xf32>
    %cst_40 = arith.constant 0.000000e+00 : f32
    %cst_41 = arith.constant 6.000000e+00 : f32
    %126 = vector.broadcast %cst_40 : f32 to vector<16x16x128xf32>
    %127 = arith.maximumf %126, %125 : vector<16x16x128xf32>
    %128 = vector.broadcast %cst_41 : f32 to vector<16x16x128xf32>
    %129 = arith.minimumf %128, %127 : vector<16x16x128xf32>
    %130 = arith.truncf %129 : vector<16x16x128xf32> to vector<16x16x128xbf16>
    %131 = vector.shape_cast %130 : vector<16x16x128xbf16> to vector<256x128xbf16>
    %c0_42 = arith.constant 0 : index
    %c0_43 = arith.constant 0 : index
    %132 = vector.load %arg6[%c0_42, %c0_43] : memref<128x128xbf16, #tpu.memory_space<vmem>>, vector<128x128xbf16>
    %cst_44 = arith.constant dense<0.000000e+00> : vector<256x128xf32>
    %133 = tpu.matmul %131, %132, %cst_44 {dimension_numbers = #tpu.dot_dimension_numbers<[1], [0], [0], [1], [0, 0, 1, 1], [], []>} : vector<256x128xbf16>, vector<128x128xbf16>, vector<256x128xf32> -> vector<256x128xf32>
    %c0_45 = arith.constant 0 : index
    %c0_46 = arith.constant 0 : index
    %134 = vector.load %arg7[%c0_45, %c0_46] : memref<1x128xf32, #tpu.memory_space<vmem>>, vector<1x128xf32>
    %135 = vector.broadcast %134 : vector<1x128xf32> to vector<256x128xf32>
    %136 = arith.addf %133, %135 : vector<256x128xf32>
    %137 = vector.shape_cast %136 : vector<256x128xf32> to vector<16x16x128xf32>
    %c1_47 = arith.constant 1 : index
    %c0_48 = arith.constant 0 : index
    %c0_49 = arith.constant 0 : index
    %138 = vector.load %arg9[%c1_47, %c0_48, %c0_49] : memref<18x16x128xf32, #tpu.memory_space<vmem>>, vector<16x16x128xf32>
    %139 = arith.addf %137, %138 : vector<16x16x128xf32>
    %c0_50 = arith.constant 0 : index
    %c0_51 = arith.constant 0 : index
    %c0_52 = arith.constant 0 : index
    %c0_53 = arith.constant 0 : index
    %140 = vector.load %arg8[%c0_50, %c0_51, %c0_52, %c0_53] : memref<1x16x16x128xf32, #tpu.memory_space<vmem>>, vector<1x16x16x128xf32>
    %141 = vector.shape_cast %140 : vector<1x16x16x128xf32> to vector<16x16x128xf32>
    %142 = vector.shape_cast %139 : vector<16x16x128xf32> to vector<1x16x16x128xf32>
    tpu.vector_store %arg8[%c0_50, %c0_51, %c0_52, %c0_53], %142 {strides = array<i32>} : memref<1x16x16x128xf32, #tpu.memory_space<vmem>>, vector<1x16x16x128xf32>,
    return
  }
  func.func @transform_0(%arg0: i32, %arg1: i32) -> (i32, i32, i32, i32) {
    %c0_i32 = arith.constant 0 : i32
    %c0_i32_0 = arith.constant 0 : i32
    %c0_i32_1 = arith.constant 0 : i32
    %c0_i32_2 = arith.constant 0 : i32
    return %arg0, %c0_i32, %c0_i32_0, %c0_i32_1 : i32, i32, i32, i32
  }
  func.func @transform_1(%arg0: i32, %arg1: i32) -> (i32, i32) {
    %c0_i32 = arith.constant 0 : i32
    %c0_i32_0 = arith.constant 0 : i32
    %c0_i32_1 = arith.constant 0 : i32
    return %c0_i32, %c0_i32_0 : i32, i32
  }
  func.func @transform_2(%arg0: i32, %arg1: i32) -> (i32, i32) {
    %c0_i32 = arith.constant 0 : i32
    %c0_i32_0 = arith.constant 0 : i32
    %c0_i32_1 = arith.constant 0 : i32
    return %c0_i32, %c0_i32_0 : i32, i32
  }
  func.func @transform_3(%arg0: i32, %arg1: i32) -> (i32, i32) {
    %c0_i32 = arith.constant 0 : i32
    %c0_i32_0 = arith.constant 0 : i32
    %c0_i32_1 = arith.constant 0 : i32
    return %c0_i32, %c0_i32_0 : i32, i32
  }
  func.func @transform_4(%arg0: i32, %arg1: i32) -> (i32, i32) {
    %c0_i32 = arith.constant 0 : i32
    %c0_i32_0 = arith.constant 0 : i32
    %c0_i32_1 = arith.constant 0 : i32
    return %c0_i32, %c0_i32_0 : i32, i32
  }
  func.func @transform_5(%arg0: i32, %arg1: i32) -> (i32, i32) {
    %c0_i32 = arith.constant 0 : i32
    %c0_i32_0 = arith.constant 0 : i32
    %c0_i32_1 = arith.constant 0 : i32
    return %c0_i32, %c0_i32_0 : i32, i32
  }
  func.func @transform_6(%arg0: i32, %arg1: i32) -> (i32, i32, i32, i32) {
    %c0_i32 = arith.constant 0 : i32
    %c0_i32_0 = arith.constant 0 : i32
    %c0_i32_1 = arith.constant 0 : i32
    return %arg0, %arg1, %c0_i32, %c0_i32_0 : i32, i32, i32, i32
  }
}

</mosaic_0001>

<bundles_post_ra>
// kernel: tpu_custom_call.1
= control target key start
LH: loop header
LB: loop body
LE: loop exit
PB: predicated region body
PF: predicated region fallthrough
CT: control target
= control target key end

     0   :  { %s4606_s0 = inlined_call_operand.hbm [shape: f32[2,16,16,128], index: 0, kind: input, shape index: {}]   ;;  %s4607_s1 = inlined_call_operand.hbm [shape: bf16[128,128], index: 1, kind: input, shape index: {}]   ;;  %s4608_s2 = inlined_call_operand.vmem [shape: f32[2,128], index: 2, kind: input, shape index: {}]   ;;  %s4609_s3 = inlined_call_operand.hbm [shape: f32[9,128], index: 3, kind: input, shape index: {}]   ;;  %s4610_s4 = inlined_call_operand.hbm [shape: bf16[128,128], index: 4, kind: input, shape index: {}]   ;;  %s4611_s5 = inlined_call_operand.vmem [shape: f32[1,128], index: 5, kind: input, shape index: {}]   ;;  %s4612_s6 = inlined_call_operand.hbm [shape: f32[2,16,16,128], index: 6, kind: output, shape index: {}]  }
   0x1   :  { %4669 = sst [smem:[#allocation60_spill]] %s4607_s1 }
   0x2   :  { %4670 = sst [smem:[#allocation61_spill]] %s4609_s3 }
   0x3   :  { %4671 = sst [smem:[#allocation62_spill]] %s4610_s4 }
   0x4   :  { %11 = vsyncpa [#allocation4], 0 }
   0x5   :  { %13 = vsyncpa [#allocation4 + $0x1], 0 }
   0x6   :  { %14 = vsyncpa [#allocation7], 0 }
   0x7   :  { %15 = vsyncpa [#allocation10], 0 }
   0x8   :  { %16 = vsyncpa [#allocation5], 0 }
   0x9   :  { %18 = vsyncpa [#allocation5 + $0x1], 0  ;;  %s3021_s21 = smov 0   ;;  %s3023_s22 = smov 0  }
   0xa   :  { %s3025_s23 = smov 0   ;;  %s3027_s24 = smov 0  }
   0xb   :  { %s3029_s25 = smov 0   ;;  %s3031_s26 = smov 0  }
   0xc LB: > { %s2434_s27 = sadd.s32 4294967295, %s2972_s26   ;;  %s2435_s28 = sadd.s32 4294967294, %s2972_s26   ;;  %s2972_s26 = sphi %s3031_s26, %s24_s26   ;;  %s2968_s25 = sphi %s3029_s25, %s4871_s25   ;;  %s2964_s24 = sphi %s3027_s24, %s4870_s24   ;;  %s2960_s23 = sphi %s3025_s23, %s4869_s23   ;;  %s2956_s22 = sphi %s3023_s22, %s4868_s22   ;;  %s2952_s21 = sphi %s3021_s21, %s4867_s21  }
   0xd   : > { %p56_p0 = scmp.ne.s32.totalorder %s2956_s22, %s2952_s21  ;;  %p3055_p1 = scmp.eq.s32.totalorder %s2434_s27, 0 }
   0xe   : > { %p3059_p2 = scmp.eq.s32.totalorder %s2434_s27, 1  ;;  %p193_p3 = scmp.eq.s32.totalorder %s2435_s28, 1 }
   0xf   : > { %p3065_p4 = por %p3055_p1, %p56_p0  ;;  %p2436_p5 = scmp.ge.s32.totalorder %s2972_s26, 1 }
  0x10   : > { %p3070_p6 = por %p193_p3, %p56_p0  ;;  %p200_p7 = scmp.lt.s32.totalorder %s2972_s26, 3 }
  0x11   : > { %s2974_s10 = smov [#allocation6]   ;;  %s2975_s13 = smov [#allocation8]  }
  0x12   : > { %s4675_s8 = scalar_select %p3070_p6, 1, 0 }
  0x13   : > { %p3075_p8 = pnand %p2436_p5, %p200_p7  ;;  %s212_s11 = sshll.u32 %s2974_s10, 4  ;;  %s213_s11 = int_to_ptr.vmem [resolvable:$true] %s212_s11 }
  0x14   : > { %s228_s14 = sshll.u32 %s2975_s13, 4  ;;  %s2789_s15 = scalar_lea.vmem %s213_s11, 1024  ;;  %s229_s14 = int_to_ptr.vmem [resolvable:$true] %s228_s14 }
  0x15   : > { %p2644_p9 = pneg %p3075_p8  ;;  %p2790_p13 = scmp.ne.s32.totalorder %s213_s11, %s2789_s15 }
  0x16   : > { %p2797_p5 = scmp.lt.s32.totalorder %s213_s11, %s213_s11  ;;  %p2798_p7 = scmp.lt.s32.totalorder %s2789_s15, %s2789_s15 }
  0x17   : > { %p3084_p11 = pnand %p2644_p9, %p3055_p1 }
  0x18   : > { %p2799_p10 = por %p2798_p7, %p2797_p5 }
  0x19   : > { %p2780_p12 = pneg %p3084_p11 }
  0x1b   : > { %p2792_p0 = pnand %p2790_p13, %p2780_p12 }
  0x1d   : > { %p2793_p3 = pneg %p2792_p0 }
  0x1f   : > { %p2800_p9 = pnand %p2799_p10, %p2793_p3 }
  0x21   : > { %2803 = shalt.err (!%p2800_p9)
}
  0x22   : > { %s2976_s16 = smov 64   ;;  %s2977_s17 = smov 4  }
  0x23   : > { %s4678_s1 = sld [smem:[#allocation60_spill]]  ;;  %s2815_s20 = scalar_lea.vmem %s229_s14, 256 }
  0x24   : > { %p2816_p13 = scmp.ne.s32.totalorder %s229_s14, %s2815_s20  ;;  %p2823_p10 = scmp.lt.s32.totalorder %s229_s14, %s229_s14 }
  0x25   : > { %p2824_p3 = scmp.lt.s32.totalorder %s2815_s20, %s2815_s20 }
  0x26   : > { %p2818_p0 = pnand %p2816_p13, %p2780_p12 }
  0x27   : > { %p2825_p7 = por %p2824_p3, %p2823_p10 }
  0x28   : > { %p2819_p5 = pneg %p2818_p0 }
  0x29   : > { %2647 = dma.hbm_to_vmem [thread:$0]  (!%p3084_p11), %s4678_s1, 1024, %s213_s11, [#allocation7], %s2976_s16, %s2976_s16, %s2977_s17  }
  0x2a   : > { %p2826_p9 = pnand %p2825_p7, %p2819_p5 }
  0x2c   : > { %2829 = shalt.err (!%p2826_p9)
}
  0x2d   : > { %s4613_s27 = smov 128   ;;  %s4614_s28 = smov 8  }
  0x2e   : > { %s4679_s3 = sld [smem:[#allocation61_spill]]  ;;  %s2980_s13 = smov [#allocation9]  }
  0x2f   : > { %s241_s15 = sshll.u32 %s2980_s13, 4  ;;  %s242_s15 = int_to_ptr.vmem [resolvable:$true] %s241_s15 }
  0x30   : > { %s2841_s18 = scalar_lea.vmem %s242_s15, 1024  ;;  %p2849_p10 = scmp.lt.s32.totalorder %s242_s15, %s242_s15 }
  0x31   : > { %p2842_p13 = scmp.ne.s32.totalorder %s242_s15, %s2841_s18  ;;  %p2850_p3 = scmp.lt.s32.totalorder %s2841_s18, %s2841_s18 }
  0x33   : > { %p2844_p0 = pnand %p2842_p13, %p2780_p12  ;;  %p2851_p7 = por %p2850_p3, %p2849_p10 }
  0x34   : > { %2650 = dma.hbm_to_vmem [thread:$0]  (!%p3084_p11), %s4679_s3, 256, %s229_s14, [#allocation7], %s4613_s27, %s4613_s27, %s4614_s28  }
  0x35   : > { %p2845_p5 = pneg %p2844_p0 }
  0x37   : > { %p2852_p9 = pnand %p2851_p7, %p2845_p5 }
  0x39   : > { %2855 = shalt.err (!%p2852_p9)
}
  0x3a   : > { %s4680_s4 = sld [smem:[#allocation62_spill]]  ;;  %s36_s20 = sadd.s32 1, %s2968_s25 }
  0x3b   : > { %p38_p12 = scmp.ge.s32.totalorder %s36_s20, 2  ;;  %s43_s12 = sadd.s32 1, %s2960_s23 }
  0x3c   : > { %p50_p13 = scmp.ne.s32.totalorder %s2960_s23, %s2956_s22  ;;  %p51_p0 = scmp.eq.s32.totalorder %s2972_s26, 0 }
  0x3d   : > { %s4873_s20 = smov (%p38_p12, %s36_s20), 0  ;;  %s2476_s18 = sshll.u32 %s2968_s25, 12 }
  0x3e   : > { %p3130_p5 = por %p51_p0, %p50_p13  ;;  %p3136_p10 = por %p3059_p2, %p50_p13 }
  0x3f   : > { %s40_s13 = ssub.s32 %s2968_s25, %s4873_s20  ;;  %s268_s27 = scalar_lea.hbm %s4606_s0, %s2476_s18 }
  0x40   : > { %2653 = dma.hbm_to_vmem [thread:$0]  (!%p3084_p11), %s4680_s4, 1024, %s242_s15, [#allocation10], %s2976_s16, %s2976_s16, %s2977_s17  }
  0x41   : > { %s4682_s11 = scalar_select %p3136_p10, 1, 0 }
  0x42   : > { %p2665_p11 = scmp.lt.s32.totalorder %s2972_s26, 2  ;;  %p41_p3 = scmp.eq.s32.totalorder %s40_s13, 0 }
  0x43   : > { %s258_s16 = sand.u32 1, %s2960_s23  }
  0x44   : > { %s2441_s17 = sshll.u32 %s258_s16, 8  ;;  %p3153_p2 = pnand %p2665_p11, %p3130_p5 }
  0x45   : > { %s3145_s15 = scalar_select %p41_p3, %s2960_s23, %s43_s12  }
  0x46   : > { %s262_s28 = scalar_lea.vmem [#allocation3], %s2441_s17  ;;  %s259_s3 = scalar_lea.sflag [#allocation4], %s258_s16 }
  0x47   : > { %s269_s1 = sshll.u32 %s262_s28, 4  ;;  %p2858_p7 = pneg %p3153_p2  ;;  %s270_s1 = int_to_ptr.vmem [resolvable:$true] %s269_s1 }
  0x48   : > { %s2869_s13 = scalar_lea.vmem %s270_s1, 4096  ;;  %s2981_s12 = smov [#allocation3]  }
  0x49   : > { %p2870_p9 = scmp.ne.s32.totalorder %s270_s1, %s2869_s13  ;;  %s2874_s4 = sshll.u32 %s2981_s12, 4  ;;  %s2875_s4 = int_to_ptr.vmem [resolvable:$false] %s2874_s4 }
  0x4a   : > { %s2876_s18 = scalar_lea.vmem %s2875_s4, 8192  ;;  %p2877_p0 = scmp.lt.s32.totalorder %s270_s1, %s2875_s4 }
  0x4b   : > { %p2872_p12 = pnand %p2870_p9, %p2858_p7  ;;  %p2878_p3 = scmp.lt.s32.totalorder %s2876_s18, %s2869_s13 }
  0x4d   : > { %p2873_p13 = pneg %p2872_p12  ;;  %p2879_p6 = por %p2878_p3, %p2877_p0 }
  0x4f   : > { %p2880_p10 = pnand %p2879_p6, %p2873_p13 }
  0x51   : > { %2883 = shalt.err (!%p2880_p10)
}
  0x52   : > { %s4684_s28 = smov 8   ;;  %s4685_s10 = smov 128  }
  0x53   : > { %2657 = dma.hbm_to_vmem [thread:$0]  (!%p3153_p2), %s268_s27, 4096, %s270_s1, %s259_s3, %s4685_s10, %s4685_s10, %s4684_s28  }
  0x54   : > { %281 = sbr.rel (%p3075_p8) target bundleno = 845 (0x34d), region = 44 }
  0x59   : > { %s3167_s16 = sand.u32 1, %s2956_s22  }
  0x5a   : > { %s2445_s4 = sshll.u32 %s3167_s16, 8  ;;  %s284_s17 = scalar_lea.sflag [#allocation4], %s3167_s16 }
  0x5b   : > { %s3173_s14 = scalar_lea.vmem [#allocation3], %s2445_s4 }
  0x5c   : > { %2935 = dma.done.wait (%p3065_p4), %s284_s17, 4096  }
  0x5d   : > { %2937 = vsyncadd (%p3065_p4), %s284_s17, 4294963200 }
  0x5e   : > { %2939 = dma.done.wait (%p3055_p1), [#allocation7], 1280  }
  0x5f   : > { %2941 = vsyncadd (%p3055_p1), [#allocation7], 4294966016 }
  0x60   : > { %2943 = dma.done.wait (%p3055_p1), [#allocation10], 1024  }
  0x61   : > { %2945 = vsyncadd (%p3055_p1), [#allocation10], 4294966272  ;;  %v2982_v0 = vmov 0.0|0.0   ;;  %v2728_v1 = vld [vmem:[#allocation6 + $0x38] sm:$0xff]   ;;  %v2729_v2 = vld [vmem:[#allocation6 + $0x30] sm:$0xff]   ;;  %s4456_s18 = scalar_lea.vmem [#allocation11], %s2445_s4 }
  0x62   : > { %2544 = vmatprep.mubr.bf16.mxu0 %v2982_v0  ;;  %2528 = vmatprep.subr.bf16.mxu0 %v2728_v1  ;;  %v2730_v3 = vld [vmem:[#allocation6 + $0x28] sm:$0xff]   ;;  %v2731_v4 = vld [vmem:[#allocation6 + $0x20] sm:$0xff]   ;;  %v2732_v5 = vld [vmem:[#allocation6 + $0x18] sm:$0xff]   ;;  %s2477_s28 = sshll.u32 %s2964_s24, 12  ;;  %s2315_s10 = sshll.u32 %s4456_s18, 4  ;;  %s4555_s10 = int_to_ptr.vmem [resolvable:$true] %s2315_s10 }
  0x63   : > { %2529 = vmatpush3.bf16.msra.mxu0 %v2728_v1  ;;  %v2733_v6 = vld [vmem:[#allocation6 + $0x10] sm:$0xff]   ;;  %v2734_v7 = vld [vmem:[#allocation6 + $0x8] sm:$0xff]   ;;  %v2735_v8 = vld [vmem:[#allocation6] sm:$0xff]   ;;  %s4553_s1 = scalar_lea.hbm %s4612_s6, %s2477_s28  ;;  %s2299_s24 = scalar_lea.sflag [#allocation5], %s3167_s16 }
  0x64   : > { %2530 = vmatprep.subr.bf16.mxu0 %v2729_v2  ;;  %v364_v9 = vld [vmem:[%s3173_s14] sm:$0xff]  ;;  %v365_v10 = vld [vmem:[%s3173_s14 + $0x8] sm:$0xff]  ;;  %v366_v11 = vld [vmem:[%s3173_s14 + $0x10] sm:$0xff]  ;;  %s2884_s3 = scalar_lea.vmem %s4555_s10, 4096  ;;  %p4864_p4 = scmp.ne.s32.totalorder %s4682_s11, 0 }
  0x65   : > { %v367_v12 = vld [vmem:[%s3173_s14 + $0x18] sm:$0xff]  ;;  %v466_v13 = vpack.c.bf16 %v365_v10, %v364_v9  ;;  %v368_v15 = vld [vmem:[%s3173_s14 + $0x20] sm:$0xff]  ;;  %v369_v16 = vld [vmem:[%s3173_s14 + $0x28] sm:$0xff]  ;;  %p2885_p1 = scmp.ne.s32.totalorder %s4555_s10, %s2884_s3  ;;  %s2983_s29 = smov [#allocation11]  }
  0x66   : > { %v467_v14 = vpack.c.bf16 %v367_v12, %v366_v11  ;;  %v370_v17 = vld [vmem:[%s3173_s14 + $0x30] sm:$0xff]  ;;  %v371_v18 = vld [vmem:[%s3173_s14 + $0x38] sm:$0xff]  ;;  %v468_v19 = vpack.c.bf16 %v369_v16, %v368_v15  ;;  %v372_v21 = vld [vmem:[%s3173_s14 + $0x40] sm:$0xff]  ;;  %s2888_s7 = sshll.u32 %s2983_s29, 4  ;;  %s2889_s7 = int_to_ptr.vmem [resolvable:$false] %s2888_s7 }
  0x67   : > { %2531 = vmatpush3.bf16.msra.mxu0 %v2729_v2  ;;  %v469_v20 = vpack.c.bf16 %v371_v18, %v370_v17  ;;  %v373_v22 = vld [vmem:[%s3173_s14 + $0x48] sm:$0xff]  ;;  %v374_v23 = vld [vmem:[%s3173_s14 + $0x50] sm:$0xff]  ;;  %v375_v24 = vld [vmem:[%s3173_s14 + $0x58] sm:$0xff]  ;;  %v801_v2 = vlaneseq  ;;  %p2886_p6 = pnand %p2885_p1, %p4864_p4  ;;  %s2890_s9 = scalar_lea.vmem %s2889_s7, 8192 }
  0x68   : > { %2532 = vmatprep.subr.bf16.mxu0 %v2730_v3  ;;  %v470_v25 = vpack.c.bf16 %v373_v22, %v372_v21  ;;  %v471_v26 = vpack.c.bf16 %v375_v24, %v374_v23  ;;  %v376_v27 = vld [vmem:[%s3173_s14 + $0x60] sm:$0xff]  ;;  %v377_v28 = vld [vmem:[%s3173_s14 + $0x68] sm:$0xff]  ;;  %v378_v29 = vld [vmem:[%s3173_s14 + $0x70] sm:$0xff]  ;;  %p2891_p5 = scmp.lt.s32.totalorder %s4555_s10, %s2889_s7  ;;  %p2892_p10 = scmp.lt.s32.totalorder %s2890_s9, %s2884_s3 }
  0x69   : > { %v379_v30 = vld [vmem:[%s3173_s14 + $0x78] sm:$0xff]  ;;  %v472_v31 = vpack.c.bf16 %v377_v28, %v376_v27  ;;  %v380_v33 = vld [vmem:[%s3173_s14 + $0x80] sm:$0xff]  ;;  %v381_v34 = vld [vmem:[%s3173_s14 + $0x88] sm:$0xff]  ;;  %p2887_p8 = pneg %p2886_p6 }
  0x6a   : > { %v473_v32 = vpack.c.bf16 %v379_v30, %v378_v29  ;;  %v382_v35 = vld [vmem:[%s3173_s14 + $0x90] sm:$0xff]  ;;  %v383_v36 = vld [vmem:[%s3173_s14 + $0x98] sm:$0xff]  ;;  %v474_v37 = vpack.c.bf16 %v381_v34, %v380_v33  ;;  %v384_v39 = vld [vmem:[%s3173_s14 + $0xa0] sm:$0xff]  ;;  %p2893_p11 = por %p2892_p10, %p2891_p5 }
  0x6b   : > { %2533 = vmatpush3.bf16.msra.mxu0 %v2730_v3  ;;  %v475_v38 = vpack.c.bf16 %v383_v36, %v382_v35  ;;  %v385_v40 = vld [vmem:[%s3173_s14 + $0xa8] sm:$0xff]  ;;  %v386_v41 = vld [vmem:[%s3173_s14 + $0xb0] sm:$0xff]  ;;  %v387_v42 = vld [vmem:[%s3173_s14 + $0xb8] sm:$0xff] }
  0x6c   : > { %2534 = vmatprep.subr.bf16.mxu0 %v2731_v4  ;;  %v476_v43 = vpack.c.bf16 %v385_v40, %v384_v39  ;;  %v477_v44 = vpack.c.bf16 %v387_v42, %v386_v41  ;;  %v388_v45 = vld [vmem:[%s3173_s14 + $0xc0] sm:$0xff]  ;;  %v389_v46 = vld [vmem:[%s3173_s14 + $0xc8] sm:$0xff]  ;;  %v390_v47 = vld [vmem:[%s3173_s14 + $0xd0] sm:$0xff]  ;;  %p2894_p2 = pnand %p2893_p11, %p2887_p8 }
  0x6d   : > { %v391_v48 = vld [vmem:[%s3173_s14 + $0xd8] sm:$0xff]  ;;  %v478_v49 = vpack.c.bf16 %v389_v46, %v388_v45  ;;  %v392_v51 = vld [vmem:[%s3173_s14 + $0xe0] sm:$0xff]  ;;  %v393_v52 = vld [vmem:[%s3173_s14 + $0xe8] sm:$0xff] }
  0x6e   : > { %v479_v50 = vpack.c.bf16 %v391_v48, %v390_v47  ;;  %v394_v53 = vld [vmem:[%s3173_s14 + $0xf0] sm:$0xff]  ;;  %v395_v54 = vld [vmem:[%s3173_s14 + $0xf8] sm:$0xff]  ;;  %v480_v55 = vpack.c.bf16 %v393_v52, %v392_v51  ;;  %v2736_v57 = vld [vmem:[#allocation9 + $0x38] sm:$0xff]  }
  0x6f   : > { %2535 = vmatpush3.bf16.msra.mxu0 %v2731_v4  ;;  %v481_v56 = vpack.c.bf16 %v395_v54, %v394_v53  ;;  %2580 = vmatprep.subr.bf16.mxu1 %v2736_v57  ;;  %v2737_v58 = vld [vmem:[#allocation9 + $0x30] sm:$0xff]   ;;  %v2738_v59 = vld [vmem:[#allocation9 + $0x28] sm:$0xff]   ;;  %v2739_v60 = vld [vmem:[#allocation9 + $0x20] sm:$0xff]  }
  0x70   : > { %2536 = vmatprep.subr.bf16.mxu0 %v2732_v5  ;;  %2581 = vmatpush3.bf16.msra.mxu1 %v2736_v57  ;;  %v2740_v61 = vld [vmem:[#allocation9 + $0x18] sm:$0xff]   ;;  %v2741_v62 = vld [vmem:[#allocation9 + $0x10] sm:$0xff]   ;;  %v2742_v63 = vld [vmem:[#allocation9 + $0x8] sm:$0xff]  }
  0x71   : > { %2582 = vmatprep.subr.bf16.mxu1 %v2737_v58  ;;  %v1089_v1 = vld [vmem:[#allocation8 + $0x8] sm:$0x1]  ;;  %v3224_v4 = vld [vmem:[%s4608_s2] ss:$0 sm:$0xff]  ;;  %v2743_v9 = vld [vmem:[#allocation9] sm:$0xff]  }
  0x73   : > { %2537 = vmatpush3.bf16.msra.mxu0 %v2732_v5  ;;  %v3226_v5 = vshrl.u32 %v801_v2, 7 }
  0x74   : > { %2538 = vmatprep.subr.bf16.mxu0 %v2733_v6  ;;  %2583 = vmatpush3.bf16.msra.mxu1 %v2737_v58 }
  0x75   : > { %2584 = vmatprep.subr.bf16.mxu1 %v2738_v59  ;;  %v3230_v11 = vadd.s32 8, %v3226_v5  ;;  %v1096_v12 = vsub.s32 0, %v3226_v5  ;;  %v1435_v17 = vsub.s32 2, %v3226_v5  ;;  %vm804_vm0 = vcmp.eq.s32.totalorder %v3226_v5, 0 }
  0x76   : > { %vm842_vm1 = vcmp.lt.s32.totalorder %v3226_v5, 1  ;;  %v1603_v22 = vsub.s32 3, %v3226_v5  ;;  %vm957_vm2 = vcmp.lt.s32.totalorder %v3226_v5, 7 }
  0x77   : > { %2539 = vmatpush3.bf16.msra.mxu0 %v2733_v6  ;;  %vm920_vm3 = vcmp.eq.s32.totalorder %v3230_v11, 15 }
  0x78   : > { %2540 = vmatprep.subr.bf16.mxu0 %v2734_v7  ;;  %2585 = vmatpush3.bf16.msra.mxu1 %v2738_v59 }
  0x79   : > { %2586 = vmatprep.subr.bf16.mxu1 %v2739_v60 }
  0x7b   : > { %2541 = vmatpush3.bf16.msra.mxu0 %v2734_v7 }
  0x7c   : > { %2542 = vmatprep.subr.bf16.mxu0 %v2735_v8  ;;  %2587 = vmatpush3.bf16.msra.mxu1 %v2739_v60 }
  0x7d   : > { %2588 = vmatprep.subr.bf16.mxu1 %v2740_v61 }
  0x7f   : > { %2543 = vmatpush3.bf16.msra.mxu0 %v2735_v8 }
  0x80   : > { %2589 = vmatpush3.bf16.msra.mxu1 %v2740_v61 }
  0x81   : > { %2590 = vmatprep.subr.bf16.mxu1 %v2741_v62 }
  0x82   : > { %2545 = vmatmul.mubr.bf16.vlgmr.msra.gmra.mxu0 %v466_v13 }
  0x83   : > { %2548 = vmatprep.mubr.bf16.mxu0 %v467_v14 }
  0x84   : > { %2591 = vmatpush3.bf16.msra.mxu1 %v2741_v62 }
  0x85   : > { %2592 = vmatprep.subr.bf16.mxu1 %v2742_v63 }
  0x88   : > { %2593 = vmatpush3.bf16.msra.mxu1 %v2742_v63 }
  0x89   : > { %2594 = vmatprep.subr.bf16.mxu1 %v2743_v9 }
  0x8a   : > { %2549 = vmatmul.mubr.bf16.gmra.mxu0 %v468_v19  ;;  %v1267_v19 = vsub.s32 1, %v3226_v5 }
  0x8b   : > { %2552 = vmatprep.mubr.bf16.mxu0 %v469_v20 }
  0x8c   : > { %2595 = vmatpush3.bf16.msra.mxu1 %v2743_v9 }
  0x92   : > { %2553 = vmatmul.mubr.bf16.gmra.mxu0 %v470_v25 }
  0x93   : > { %2556 = vmatprep.mubr.bf16.mxu0 %v471_v26  ;;  %v1771_v26 = vsub.s32 4, %v3226_v5 }
  0x9a   : > { %2557 = vmatmul.mubr.bf16.gmra.mxu0 %v472_v31 }
  0x9b   : > { %2560 = vmatprep.mubr.bf16.mxu0 %v473_v32 }
  0xa2   : > { %2561 = vmatmul.mubr.bf16.gmra.mxu0 %v474_v37 }
  0xa3   : > { %2564 = vmatprep.mubr.bf16.mxu0 %v475_v38 }
  0xaa   : > { %2565 = vmatmul.mubr.bf16.gmra.mxu0 %v476_v43 }
  0xab   : > { %2568 = vmatprep.mubr.bf16.mxu0 %v477_v44 }
  0xb2   : > { %2569 = vmatmul.mubr.bf16.gmra.mxu0 %v478_v49 }
  0xb3   : > { %2572 = vmatprep.mubr.bf16.mxu0 %v479_v50 }
  0xba   : > { %2573 = vmatmul.mubr.bf16.gmra.mxu0 %v480_v55 }
  0xbb   : > { %2576 = vmatprep.mubr.bf16.mxu0 %v481_v56 }
  0xc2   : > { %2577 = vmatmul.mubr.bf16.gmra.mxu0 %v2982_v0  ;;  %v1088_v0 = vld [vmem:[#allocation8] sm:$0xff] }
  0xc3   : > { %v1090_v3 = vpack.c.bf16 %v1089_v1, %v1088_v0 }
  0xc5   : > { %v1178_v6 = vshrl.u32 %v1090_v3, 16  ;;  %v1092_v16 = vpack.i.b16 %v1090_v3, %v1090_v3 }
  0xc7   : > { %v1179_v13 = vpack.i.b16 %v1178_v6, %v1178_v6  ;;  %v3245_v28 = vrot.slane %v1092_v16, %v1096_v12  ;;  %v3247_v29 = vrot.slane %v1092_v16, %v1435_v17  ;;  %v3251_v31 = vrot.slane %v1092_v16, %v1267_v19 }
  0xc8   : > { %v3261_v42 = vrot.slane %v1092_v16, %v1603_v22  ;;  %v3263_v43 = vrot.slane %v1092_v16, %v1771_v26 }
  0xc9   : > { %v3241_v24 = vrot.slane %v1179_v13, %v1096_v12  ;;  %v3253_v32 = vrot.slane %v1179_v13, %v1267_v19  ;;  %v3256_v36 = vrot.slane %v1179_v13, %v1435_v17  ;;  %v3259_v38 = vrot.slane %v1179_v13, %v1603_v22 }
 0x142   : > { %v2546_v7 = vpop.f32.mrf.mxu0 }
 0x143   : > { %v595_v8 = vadd.f32 %v2546_v7, %v3224_v4 }
 0x144   : > { %v586_v10 = vpop.f32.mrf.mxu0 }
 0x145   : > { %v731_v14 = vmax.f32 %v595_v8, 0.0  ;;  %v587_v15 = vadd.f32 %v3224_v4, %v586_v10 }
 0x146   : > { %v2547_v18 = vpop.f32.mrf.mxu0 }
 0x147   : > { %v729_v20 = vmax.f32 %v587_v15, 0.0  ;;  %v598_v21 = vadd.f32 %v2547_v18, %v3224_v4  ;;  %v767_v23 = vmin.f32 %v731_v14, 6.0 }
 0x148   : > { %v589_v25 = vpop.f32.mrf.mxu0 }
 0x149   : > { %v732_v27 = vmax.f32 %v598_v21, 0.0  ;;  %v3249_v30 = vmin.f32 %v729_v20, 6.0  ;;  %v590_v33 = vadd.f32 %v3224_v4, %v589_v25  ;;  %v807_v39 = vrot.slane %v767_v23, 7 }
 0x14a   : > { %v2550_v34 = vpop.f32.mrf.mxu0  ;;  %v922_v44 = vrot.slane %v767_v23, 1 }
 0x14b   : > { %v768_v35 = vmin.f32 %v732_v27, 6.0  ;;  %v611_v37 = vadd.f32 %v2550_v34, %v3224_v4  ;;  %v730_v40 = vmax.f32 %v590_v33, 0.0  ;;  %v806_v48 = vrot.slane %v3249_v30, 7 }
 0x14c   : > { %v602_v41 = vpop.f32.mrf.mxu0  ;;  %v921_v49 = vrot.slane %v3249_v30, 1 }
 0x14d   : > { %v825_v45 = vrot.slane %v768_v35, 7  ;;  %v940_v46 = vrot.slane %v768_v35, 1  ;;  %v1053_v47 = vpack.c.bf16 %v768_v35, %v767_v23  ;;  %v766_v50 = vmin.f32 %v730_v40, 6.0 }
 0x14e   : > { %v735_v51 = vmax.f32 %v611_v37, 0.0  ;;  %v2551_v52 = vpop.f32.mrf.mxu0  ;;  %v603_v7 = vadd.f32 %v3224_v4, %v602_v41 }
 0x14f   : > { %v844_v53 = vsel %vm842_vm1, %v807_v39, %v825_v45  ;;  %v862_v54 = vsel %vm842_vm1, %v825_v45, %v807_v39  ;;  %v959_v55 = vsel %vm957_vm2, %v922_v44, %v940_v46  ;;  %v977_v56 = vsel %vm957_vm2, %v940_v46, %v922_v44 }
 0x150   : > { %v885_v57 = vsel %vm804_vm0, 0.0, %v862_v54  ;;  %v1001_v58 = vsel %vm920_vm3, 0.0, %v977_v56  ;;  %v1186_v59 = vmul.bf16 %v3241_v24, %v1053_v47  ;;  %v3281_v60 = vmul.bf16 %v3247_v29, %v1053_v47  ;;  %v605_v61 = vpop.f32.mrf.mxu0 }
 0x151   : > { %v1035_v62 = vpack.c.bf16 %v844_v53, %v885_v57  ;;  %v1071_v63 = vpack.c.bf16 %v1001_v58, %v959_v55  ;;  %v824_v0 = vrot.slane %v766_v50, 7  ;;  %v939_v1 = vrot.slane %v766_v50, 1 }
 0x152   : > { %v1203_v2 = vunpack.c.l.bf16 %v1186_v59  ;;  %v1204_v3 = vunpack.c.h.bf16 %v1186_v59  ;;  %v2554_v8 = vpop.f32.mrf.mxu0  ;;  %v1052_v37 = vpack.c.bf16 %v766_v50, %v3249_v30  ;;  %v771_v44 = vmin.f32 %v735_v51, 6.0 }
 0x153   : > { %v1099_v9 = vmul.bf16 %v3245_v28, %v1035_v62  ;;  %v1270_v10 = vmul.bf16 %v3251_v31, %v1071_v63  ;;  %v3288_v12 = vmul.bf16 %v3253_v32, %v1035_v62  ;;  %v3292_v14 = vmul.bf16 %v3256_v36, %v1071_v63 }
 0x154   : > { %v843_v15 = vsel %vm842_vm1, %v806_v48, %v824_v0  ;;  %v861_v16 = vsel %vm842_vm1, %v824_v0, %v806_v48  ;;  %v976_v17 = vsel %vm957_vm2, %v939_v1, %v921_v49  ;;  %v618_v18 = vpop.f32.mrf.mxu0  ;;  %v958_v22 = vsel %vm957_vm2, %v921_v49, %v939_v1 }
 0x155   : > { %v1116_v19 = vunpack.c.l.bf16 %v1099_v9  ;;  %v1117_v20 = vunpack.c.h.bf16 %v1099_v9  ;;  %v1287_v21 = vunpack.c.l.bf16 %v1270_v10  ;;  %v1288_v23 = vunpack.c.h.bf16 %v1270_v10 }
 0x156   : > { %v883_v26 = vsel %vm804_vm0, 0.0, %v861_v16  ;;  %v999_v27 = vsel %vm920_vm3, 0.0, %v976_v17  ;;  %v2555_v39 = vpop.f32.mrf.mxu0  ;;  %v733_v45 = vmax.f32 %v603_v7, 0.0  ;;  %v1185_v48 = vmul.bf16 %v3241_v24, %v1052_v37 }
 0x157   : > { %v1235_v33 = vadd.f32 %v1203_v2, %v1116_v19  ;;  %v1236_v34 = vadd.f32 %v1204_v3, %v1117_v20  ;;  %v1034_v35 = vpack.c.bf16 %v843_v15, %v883_v26  ;;  %v1070_v41 = vpack.c.bf16 %v999_v27, %v958_v22 }
 0x158   : > { %v614_v49 = vadd.f32 %v2551_v52, %v3224_v4  ;;  %v809_v55 = vrot.slane %v771_v44, 7  ;;  %v3317_v30 = vmin.f32 %v733_v45, 6.0  ;;  %v1201_v57 = vunpack.c.l.bf16 %v1185_v48  ;;  %v621_v58 = vpop.f32.mrf.mxu0 }
 0x159   : > { %v3309_v46 = vadd.f32 %v1287_v21, %v1235_v33  ;;  %v1098_v47 = vmul.bf16 %v3245_v28, %v1034_v35  ;;  %v3314_v53 = vadd.f32 %v1288_v23, %v1236_v34  ;;  %v1269_v54 = vmul.bf16 %v3251_v31, %v1070_v41 }
 0x15a   : > { %v1202_v51 = vunpack.c.h.bf16 %v1185_v48  ;;  %v924_v63 = vrot.slane %v771_v44, 1  ;;  %v808_v0 = vrot.slane %v3317_v30, 7  ;;  %v736_v52 = vmax.f32 %v614_v49, 0.0 }
 0x15b   : > { %v1114_v50 = vunpack.c.l.bf16 %v1098_v47  ;;  %v1115_v56 = vunpack.c.h.bf16 %v1098_v47  ;;  %v1285_v59 = vunpack.c.l.bf16 %v1269_v54  ;;  %v1286_v62 = vunpack.c.h.bf16 %v1269_v54 }
 0x15c   : > { %v606_v3 = vadd.f32 %v3224_v4, %v605_v61  ;;  %v627_v7 = vadd.f32 %v2554_v8, %v3224_v4  ;;  %v619_v9 = vadd.f32 %v3224_v4, %v618_v18  ;;  %v630_v10 = vadd.f32 %v2555_v39, %v3224_v4 }
 0x15d   : > { %v1233_v1 = vadd.f32 %v1201_v57, %v1114_v50  ;;  %v1234_v2 = vadd.f32 %v1202_v51, %v1115_v56  ;;  %v622_v15 = vadd.f32 %v3224_v4, %v621_v58  ;;  %v923_v17 = vrot.slane %v3317_v30, 1 }
 0x15e   : > { %v772_v19 = vmin.f32 %v736_v52, 6.0  ;;  %v734_v20 = vmax.f32 %v606_v3, 0.0  ;;  %v739_v22 = vmax.f32 %v627_v7, 0.0  ;;  %v737_v23 = vmax.f32 %v619_v9, 0.0 }
 0x15f   : > { %v3325_v16 = vadd.f32 %v1285_v59, %v1233_v1  ;;  %v3328_v21 = vadd.f32 %v1286_v62, %v1234_v2  ;;  %v740_v26 = vmax.f32 %v630_v10, 0.0  ;;  %v738_v37 = vmax.f32 %v622_v15, 0.0 }
 0x160   : > { %v827_v61 = vrot.slane %v772_v19, 7  ;;  %v942_v27 = vrot.slane %v772_v19, 1  ;;  %v1055_v8 = vpack.c.bf16 %v772_v19, %v771_v44  ;;  %v770_v33 = vmin.f32 %v734_v20, 6.0 }
 0x161   : > { %v3330_v18 = vmin.f32 %v739_v22, 6.0  ;;  %v3332_v34 = vmin.f32 %v737_v23, 6.0  ;;  %v3334_v35 = vmin.f32 %v740_v26, 6.0  ;;  %v3358_v62 = vmin.f32 %v738_v37, 6.0 }
 0x162   : > { %v846_v39 = vsel %vm842_vm1, %v809_v55, %v827_v61  ;;  %v864_v41 = vsel %vm842_vm1, %v827_v61, %v809_v55  ;;  %v961_v45 = vsel %vm957_vm2, %v924_v63, %v942_v27  ;;  %v979_v44 = vsel %vm957_vm2, %v942_v27, %v924_v63  ;;  %v3360_v63 = vpop.f32.mrf.mxu0 }
 0x163   : > { %v889_v47 = vsel %vm804_vm0, 0.0, %v864_v41  ;;  %v1005_v48 = vsel %vm920_vm3, 0.0, %v979_v44  ;;  %v1188_v49 = vmul.bf16 %v3241_v24, %v1055_v8  ;;  %v3350_v54 = vmul.bf16 %v3247_v29, %v1055_v8 }
 0x164   : > { %v1037_v50 = vpack.c.bf16 %v846_v39, %v889_v47  ;;  %v3352_v56 = vpack.c.bf16 %v1005_v48, %v961_v45  ;;  %v3355_v55 = vmul.bf16 %v3259_v38, %v1055_v8  ;;  %v826_v57 = vrot.slane %v770_v33, 7  ;;  %v3383_v37 = vpop.f32.mrf.mxu0 }
 0x165   : > { %4686 = vst [vmem:[#allocation16_spill] sm:$0xff] %v3350_v54  ;;  %v1207_v51 = vunpack.c.l.bf16 %v1188_v49  ;;  %v1208_v58 = vunpack.c.h.bf16 %v1188_v49  ;;  %v941_v8 = vrot.slane %v770_v33, 1  ;;  %v1054_v44 = vpack.c.bf16 %v770_v33, %v3317_v30 }
 0x166   : > { %v1101_v1 = vmul.bf16 %v3245_v28, %v1037_v50  ;;  %v1272_v2 = vmul.bf16 %v3251_v31, %v3352_v56  ;;  %v3366_v52 = vmul.bf16 %v3253_v32, %v1037_v50  ;;  %v3371_v7 = vmul.bf16 %v3256_v36, %v3352_v56 }
 0x167   : > { %v3374_v9 = vmul.bf16 %v3261_v42, %v1037_v50  ;;  %v845_v23 = vsel %vm842_vm1, %v808_v0, %v826_v57  ;;  %v863_v27 = vsel %vm842_vm1, %v826_v57, %v808_v0  ;;  %v960_v48 = vsel %vm957_vm2, %v923_v17, %v941_v8 }
 0x168   : > { %4687 = vst [vmem:[#allocation17_spill] sm:$0xff] %v3371_v7  ;;  %v1120_v19 = vunpack.c.l.bf16 %v1101_v1  ;;  %v1121_v20 = vunpack.c.h.bf16 %v1101_v1  ;;  %v1291_v22 = vunpack.c.l.bf16 %v1272_v2  ;;  %v1292_v26 = vunpack.c.h.bf16 %v1272_v2  ;;  %v3408_v2 = vpop.f32.mrf.mxu0 }
 0x169   : > { %v1373_v61 = vunpack.c.l.bf16 %v3366_v52  ;;  %v887_v45 = vsel %vm804_vm0, 0.0, %v863_v27  ;;  %v1374_v47 = vunpack.c.h.bf16 %v3366_v52  ;;  %v978_v49 = vsel %vm957_vm2, %v941_v8, %v923_v17 }
 0x16a   : > { %v1239_v39 = vadd.f32 %v1207_v51, %v1120_v19  ;;  %v1240_v41 = vadd.f32 %v1208_v58, %v1121_v20  ;;  %v3393_v50 = vpack.c.bf16 %v845_v23, %v887_v45  ;;  %v1003_v57 = vsel %vm920_vm3, 0.0, %v978_v49 }
 0x16b   : > { %v1187_v51 = vmul.bf16 %v3241_v24, %v1054_v44  ;;  %v811_v58 = vrot.slane %v3330_v18, 7  ;;  %v3401_v30 = vpack.c.bf16 %v1003_v57, %v960_v48  ;;  %v1438_v17 = vmul.bf16 %v3247_v29, %v1054_v44 }
 0x16c   : > { %v3395_v0 = vadd.f32 %v1291_v22, %v1239_v39  ;;  %v1100_v33 = vmul.bf16 %v3245_v28, %v3393_v50  ;;  %v1354_v1 = vmul.bf16 %v3253_v32, %v3393_v50  ;;  %v3410_v52 = vadd.f32 %v1292_v26, %v1240_v41 }
 0x16d   : > { %v1205_v19 = vunpack.c.l.bf16 %v1187_v51  ;;  %v1206_v20 = vunpack.c.h.bf16 %v1187_v51  ;;  %v3413_v22 = vmul.bf16 %v3259_v38, %v1054_v44  ;;  %v1271_v8 = vmul.bf16 %v3251_v31, %v3401_v30  ;;  %v3422_v44 = vpop.f32.mrf.mxu0 }
 0x16e   : > { %v1118_v23 = vunpack.c.l.bf16 %v1100_v33  ;;  %v1119_v27 = vunpack.c.h.bf16 %v1100_v33  ;;  %v1371_v39 = vunpack.c.l.bf16 %v1354_v1  ;;  %v1372_v45 = vunpack.c.h.bf16 %v1354_v1 }
 0x16f   : > { %v1455_v48 = vunpack.c.l.bf16 %v1438_v17  ;;  %v1456_v49 = vunpack.c.h.bf16 %v1438_v17  ;;  %v926_v57 = vrot.slane %v3330_v18, 1  ;;  %v1289_v26 = vunpack.c.l.bf16 %v1271_v8 }
 0x170   : > { %v1237_v3 = vadd.f32 %v1205_v19, %v1118_v23  ;;  %v1238_v59 = vadd.f32 %v1206_v20, %v1119_v27  ;;  %v3420_v41 = vmul.bf16 %v3256_v36, %v3401_v30  ;;  %v1290_v51 = vunpack.c.h.bf16 %v1271_v8 }
 0x171   : > { %v1403_v33 = vadd.f32 %v1371_v39, %v3309_v46  ;;  %v1404_v15 = vadd.f32 %v1372_v45, %v3314_v53  ;;  %v810_v1 = vrot.slane %v3332_v34, 7  ;;  %v925_v17 = vrot.slane %v3332_v34, 1  ;;  %v3443_v45 = vpop.f32.mrf.mxu0 }
 0x172   : > { %v1321_v10 = vadd.f32 %v1289_v26, %v1237_v3  ;;  %v829_v19 = vrot.slane %v3334_v35, 7  ;;  %v944_v20 = vrot.slane %v3334_v35, 1  ;;  %v1322_v23 = vadd.f32 %v1290_v51, %v1238_v59 }
 0x173   : > { %v3430_v27 = vadd.f32 %v1455_v48, %v1403_v33  ;;  %v3432_v13 = vadd.f32 %v1456_v49, %v1404_v15  ;;  %v1057_v8 = vpack.c.bf16 %v3334_v35, %v3330_v18  ;;  %v828_v39 = vrot.slane %v3358_v62, 7 }
 0x174   : > { %v3436_v46 = vadd.f32 %v1373_v61, %v1321_v10  ;;  %v848_v53 = vsel %vm842_vm1, %v811_v58, %v829_v19  ;;  %v866_v3 = vsel %vm842_vm1, %v829_v19, %v811_v58  ;;  %v963_v15 = vsel %vm957_vm2, %v926_v57, %v944_v20 }
 0x175   : > { %v893_v59 = vsel %vm804_vm0, 0.0, %v866_v3  ;;  %v981_v18 = vsel %vm957_vm2, %v944_v20, %v926_v57  ;;  %v1190_v35 = vmul.bf16 %v3241_v24, %v1057_v8  ;;  %v3455_v58 = vmul.bf16 %v3247_v29, %v1057_v8  ;;  %v3471_v3 = vpop.f32.mrf.mxu0 }
 0x176   : > { %4688 = vst [vmem:[#allocation18_spill] sm:$0xff] %v3436_v46  ;;  %v1009_v10 = vsel %vm920_vm3, 0.0, %v981_v18  ;;  %v1039_v61 = vpack.c.bf16 %v848_v53, %v893_v59  ;;  %v3458_v48 = vmul.bf16 %v3259_v38, %v1057_v8  ;;  %v3460_v49 = vadd.f32 %v1374_v47, %v1322_v23 }
 0x177   : > { %4689 = vst [vmem:[#allocation19_spill] sm:$0xff] %v3455_v58  ;;  %v3462_v26 = vpack.c.bf16 %v1009_v10, %v963_v15  ;;  %v1211_v51 = vunpack.c.l.bf16 %v1190_v35  ;;  %v1212_v33 = vunpack.c.h.bf16 %v1190_v35  ;;  %v847_v53 = vsel %vm842_vm1, %v810_v1, %v828_v39 }
 0x178   : > { %4690 = vst [vmem:[#allocation20_spill] sm:$0xff] %v3458_v48  ;;  %4691 = vst [vmem:[#allocation21_spill] sm:$0xff] %v3460_v49  ;;  %v1103_v57 = vmul.bf16 %v3245_v28, %v1039_v61  ;;  %v3466_v19 = vmul.bf16 %v3253_v32, %v1039_v61  ;;  %v3481_v59 = vmul.bf16 %v3261_v42, %v1039_v61  ;;  %v943_v61 = vrot.slane %v3358_v62, 1 }
 0x179   : > { %4692 = vst [vmem:[#allocation22_spill] sm:$0xff] %v3462_v26  ;;  %v1274_v47 = vmul.bf16 %v3251_v31, %v3462_v26  ;;  %v3478_v8 = vmul.bf16 %v3256_v36, %v3462_v26  ;;  %v865_v23 = vsel %vm842_vm1, %v828_v39, %v810_v1  ;;  %v2563_v26 = vpop.f32.mrf.mxu0  ;;  %v1056_v10 = vpack.c.bf16 %v3358_v62, %v3332_v34 }
 0x17a   : > { %4694 = vst [vmem:[#allocation24_spill] sm:$0xff] %v3481_v59  ;;  %v1124_v15 = vunpack.c.l.bf16 %v1103_v57  ;;  %v1125_v18 = vunpack.c.h.bf16 %v1103_v57  ;;  %v1377_v35 = vunpack.c.l.bf16 %v3466_v19  ;;  %v1378_v40 = vunpack.c.h.bf16 %v3466_v19 }
 0x17b   : > { %4693 = vst [vmem:[#allocation23_spill] sm:$0xff] %v3478_v8  ;;  %v1295_v20 = vunpack.c.l.bf16 %v1274_v47  ;;  %v1296_v6 = vunpack.c.h.bf16 %v1274_v47  ;;  %v891_v8 = vsel %vm804_vm0, 0.0, %v865_v23  ;;  %v643_v19 = vadd.f32 %v3360_v63, %v3224_v4  ;;  %v653_v23 = vpop.f32.mrf.mxu0 }
 0x17c   : > { %v1243_v25 = vadd.f32 %v1211_v51, %v1124_v15  ;;  %v1244_v58 = vadd.f32 %v1212_v33, %v1125_v18  ;;  %v1038_v59 = vpack.c.bf16 %v847_v53, %v891_v8  ;;  %v962_v1 = vsel %vm957_vm2, %v925_v17, %v943_v61 }
 0x17d   : > { %v980_v39 = vsel %vm957_vm2, %v943_v61, %v925_v17  ;;  %v635_v51 = vadd.f32 %v3224_v4, %v3383_v37  ;;  %v1189_v34 = vmul.bf16 %v3241_v24, %v1056_v10  ;;  %v3515_v17 = vmul.bf16 %v3259_v38, %v1056_v10  ;;  %v2566_v54 = vpop.f32.mrf.mxu0 }
 0x17e   : > { %v3496_v47 = vadd.f32 %v1295_v20, %v1243_v25  ;;  %v1007_v33 = vsel %vm920_vm3, 0.0, %v980_v39  ;;  %v1102_v53 = vmul.bf16 %v3245_v28, %v1038_v59  ;;  %v1356_v62 = vmul.bf16 %v3253_v32, %v1038_v59 }
 0x17f   : > { %v3509_v25 = vadd.f32 %v1296_v6, %v1244_v58  ;;  %v3511_v63 = vpack.c.bf16 %v1007_v33, %v962_v1  ;;  %v1440_v20 = vmul.bf16 %v3247_v29, %v1056_v10  ;;  %v1209_v15 = vunpack.c.l.bf16 %v1189_v34 }
 0x180   : > { %v1122_v37 = vunpack.c.l.bf16 %v1102_v53  ;;  %v1123_v8 = vunpack.c.h.bf16 %v1102_v53  ;;  %v1210_v18 = vunpack.c.h.bf16 %v1189_v34  ;;  %v1375_v39 = vunpack.c.l.bf16 %v1356_v62 }
 0x181   : > { %v1273_v61 = vmul.bf16 %v3251_v31, %v3511_v63  ;;  %v1376_v57 = vunpack.c.h.bf16 %v1356_v62  ;;  %v3520_v6 = vmul.bf16 %v3261_v42, %v1038_v59  ;;  %v1459_v33 = vunpack.c.l.bf16 %v1440_v20 }
 0x182   : > { %v1241_v58 = vadd.f32 %v1209_v15, %v1122_v37  ;;  %v1242_v1 = vadd.f32 %v1210_v18, %v1123_v8  ;;  %v1460_v48 = vunpack.c.h.bf16 %v1440_v20  ;;  %v1407_v49 = vadd.f32 %v1375_v39, %v3395_v0 }
 0x183   : > { %4695 = vst [vmem:[#allocation25_spill] sm:$0xff] %v3520_v6  ;;  %v1293_v7 = vunpack.c.l.bf16 %v1273_v61  ;;  %v1294_v10 = vunpack.c.h.bf16 %v1273_v61  ;;  %v1408_v53 = vadd.f32 %v1376_v57, %v3410_v52  ;;  %v3526_v34 = vmul.bf16 %v3256_v36, %v3511_v63 }
 0x184   : > { %v743_v46 = vmax.f32 %v643_v19, 0.0  ;;  %v741_v59 = vmax.f32 %v635_v51, 0.0  ;;  %v3529_v8 = vadd.f32 %v1459_v33, %v1407_v49  ;;  %v646_v0 = vadd.f32 %v3408_v2, %v3224_v4  ;;  %v666_v19 = vpop.f32.mrf.mxu0 }
 0x185   : > { %4696 = vst [vmem:[#allocation26_spill] sm:$0xff] %v3526_v34  ;;  %v1325_v6 = vadd.f32 %v1293_v7, %v1241_v58  ;;  %v1326_v37 = vadd.f32 %v1294_v10, %v1242_v1  ;;  %v638_v52 = vadd.f32 %v3224_v4, %v3422_v44  ;;  %v3540_v61 = vadd.f32 %v1460_v48, %v1408_v53 }
 0x186   : > { %4697 = vst [vmem:[#allocation27_spill] sm:$0xff] %v3529_v8  ;;  %v779_v15 = vmin.f32 %v743_v46, 6.0  ;;  %v3532_v18 = vmin.f32 %v741_v59, 6.0  ;;  %v659_v7 = vadd.f32 %v3443_v45, %v3224_v4  ;;  %v651_v49 = vadd.f32 %v3224_v4, %v3471_v3 }
 0x187   : > { %v3538_v57 = vadd.f32 %v1377_v35, %v1325_v6  ;;  %4699 = vst [vmem:[#allocation29_spill] sm:$0xff] %v3540_v61  ;;  %v3546_v46 = vadd.f32 %v1378_v40, %v1326_v37  ;;  %v744_v58 = vmax.f32 %v646_v0, 0.0  ;;  %v742_v1 = vmax.f32 %v638_v52, 0.0 }
 0x188   : > { %v813_v51 = vrot.slane %v779_v15, 7  ;;  %v928_v39 = vrot.slane %v779_v15, 1  ;;  %v812_v2 = vrot.slane %v3532_v18, 7  ;;  %v747_v44 = vmax.f32 %v659_v7, 0.0 }
 0x189   : > { %4698 = vst [vmem:[#allocation28_spill] sm:$0xff] %v3538_v57  ;;  %4700 = vst [vmem:[#allocation30_spill] sm:$0xff] %v3546_v46  ;;  %v745_v35 = vmax.f32 %v651_v49, 0.0  ;;  %v3550_v48 = vadd.f32 %v2563_v26, %v3224_v4  ;;  %v3553_v6 = vadd.f32 %v3224_v4, %v653_v23  ;;  %v3556_v45 = vadd.f32 %v2566_v54, %v3224_v4 }
 0x18a   : > { %v3559_v40 = vadd.f32 %v3224_v4, %v666_v19  ;;  %v927_v3 = vrot.slane %v3532_v18, 1  ;;  %v780_v33 = vmin.f32 %v744_v58, 6.0  ;;  %v778_v10 = vmin.f32 %v742_v1, 6.0 }
 0x18b   : > { %v3562_v53 = vmin.f32 %v747_v44, 6.0  ;;  %v3564_v59 = vmin.f32 %v745_v35, 6.0 }
 0x18c   : > { %v831_v0 = vrot.slane %v780_v33, 7  ;;  %v946_v54 = vrot.slane %v780_v33, 1  ;;  %v1059_v52 = vpack.c.bf16 %v780_v33, %v779_v15  ;;  %v830_v49 = vrot.slane %v778_v10, 7 }
 0x18d   : > { %v945_v19 = vrot.slane %v778_v10, 1  ;;  %v1058_v58 = vpack.c.bf16 %v778_v10, %v3532_v18 }
 0x18e   : > { %v850_v44 = vsel %vm842_vm1, %v813_v51, %v831_v0  ;;  %v868_v35 = vsel %vm842_vm1, %v831_v0, %v813_v51  ;;  %v965_v20 = vsel %vm957_vm2, %v928_v39, %v946_v54  ;;  %v983_v15 = vsel %vm957_vm2, %v946_v54, %v928_v39 }
 0x18f   : > { %v897_v33 = vsel %vm804_vm0, 0.0, %v868_v35  ;;  %v1013_v18 = vsel %vm920_vm3, 0.0, %v983_v15  ;;  %v1192_v10 = vmul.bf16 %v3241_v24, %v1059_v52  ;;  %v3586_v62 = vmul.bf16 %v3247_v29, %v1059_v52 }
 0x190   : > { %v1041_v1 = vpack.c.bf16 %v850_v44, %v897_v33  ;;  %v3588_v7 = vpack.c.bf16 %v1013_v18, %v965_v20  ;;  %v3591_v51 = vmul.bf16 %v3259_v38, %v1059_v52  ;;  %v849_v15 = vsel %vm842_vm1, %v812_v2, %v830_v49 }
 0x191   : > { %4701 = vst [vmem:[#allocation31_spill] sm:$0xff] %v3586_v62  ;;  %v1215_v39 = vunpack.c.l.bf16 %v1192_v10  ;;  %v1216_v54 = vunpack.c.h.bf16 %v1192_v10  ;;  %v867_v10 = vsel %vm842_vm1, %v830_v49, %v812_v2  ;;  %v982_v18 = vsel %vm957_vm2, %v945_v19, %v927_v3 }
 0x192   : > { %4702 = vst [vmem:[#allocation32_spill] sm:$0xff] %v3588_v7  ;;  %4703 = vst [vmem:[#allocation33_spill] sm:$0xff] %v3591_v51  ;;  %v1105_v23 = vmul.bf16 %v3245_v28, %v1041_v1  ;;  %v1276_v37 = vmul.bf16 %v3251_v31, %v3588_v7  ;;  %v1359_v20 = vmul.bf16 %v3253_v32, %v1041_v1  ;;  %v895_v44 = vsel %vm804_vm0, 0.0, %v867_v10 }
 0x193   : > { %v3604_v52 = vmul.bf16 %v3256_v36, %v3588_v7  ;;  %v3607_v33 = vmul.bf16 %v3261_v42, %v1041_v1  ;;  %v1040_v7 = vpack.c.bf16 %v849_v15, %v895_v44  ;;  %v1191_v49 = vmul.bf16 %v3241_v24, %v1058_v58 }
 0x194   : > { %v1128_v35 = vunpack.c.l.bf16 %v1105_v23  ;;  %v1129_v0 = vunpack.c.h.bf16 %v1105_v23  ;;  %v1299_v26 = vunpack.c.l.bf16 %v1276_v37  ;;  %v1300_v57 = vunpack.c.h.bf16 %v1276_v37 }
 0x195   : > { %4704 = vst [vmem:[#allocation34_spill] sm:$0xff] %v3604_v52  ;;  %4705 = vst [vmem:[#allocation35_spill] sm:$0xff] %v3607_v33  ;;  %v1381_v61 = vunpack.c.l.bf16 %v1359_v20  ;;  %v964_v52 = vsel %vm957_vm2, %v927_v3, %v945_v19  ;;  %v1382_v2 = vunpack.c.h.bf16 %v1359_v20  ;;  %v1011_v23 = vsel %vm920_vm3, 0.0, %v982_v18 }
 0x196   : > { %v1247_v1 = vadd.f32 %v1215_v39, %v1128_v35  ;;  %v1248_v62 = vadd.f32 %v1216_v54, %v1129_v0  ;;  %v1442_v37 = vmul.bf16 %v3247_v29, %v1058_v58  ;;  %v3625_v10 = vpack.c.bf16 %v1011_v23, %v964_v52 }
 0x197   : > { %v1104_v51 = vmul.bf16 %v3245_v28, %v1040_v7  ;;  %v3629_v0 = vmul.bf16 %v3259_v38, %v1058_v58  ;;  %v1213_v3 = vunpack.c.l.bf16 %v1191_v49  ;;  %v1214_v19 = vunpack.c.h.bf16 %v1191_v49 }
 0x198   : > { %v3623_v46 = vadd.f32 %v1299_v26, %v1247_v1  ;;  %4706 = vst [vmem:[#allocation36_spill] sm:$0xff] %v3625_v10  ;;  %v3631_v39 = vadd.f32 %v1300_v57, %v1248_v62  ;;  %v1358_v54 = vmul.bf16 %v3253_v32, %v1040_v7  ;;  %v1275_v20 = vmul.bf16 %v3251_v31, %v3625_v10 }
 0x199   : > { %v1126_v35 = vunpack.c.l.bf16 %v1104_v51  ;;  %v1127_v15 = vunpack.c.h.bf16 %v1104_v51  ;;  %v1463_v26 = vunpack.c.l.bf16 %v1442_v37  ;;  %v1464_v18 = vunpack.c.h.bf16 %v1442_v37 }
 0x19a   : > { %v1379_v44 = vunpack.c.l.bf16 %v1358_v54  ;;  %v1380_v52 = vunpack.c.h.bf16 %v1358_v54  ;;  %v3638_v1 = vmul.bf16 %v3256_v36, %v3625_v10  ;;  %v1297_v57 = vunpack.c.l.bf16 %v1275_v20 }
 0x19b   : > { %v1245_v58 = vadd.f32 %v1213_v3, %v1126_v35  ;;  %v1246_v62 = vadd.f32 %v1214_v19, %v1127_v15  ;;  %v1298_v23 = vunpack.c.h.bf16 %v1275_v20  ;;  %v3643_v51 = vmul.bf16 %v3261_v42, %v1040_v7 }
 0x19c   : > { %4707 = vst [vmem:[#allocation37_spill] sm:$0xff] %v3638_v1  ;;  %v1411_v49 = vadd.f32 %v1379_v44, %v3496_v47  ;;  %v1412_v33 = vadd.f32 %v1380_v52, %v3509_v25  ;;  %v814_v10 = vrot.slane %v3564_v59, 7  ;;  %v929_v3 = vrot.slane %v3564_v59, 1 }
 0x19d   : > { %v1329_v34 = vadd.f32 %v1297_v57, %v1245_v58  ;;  %v1330_v54 = vadd.f32 %v1298_v23, %v1246_v62  ;;  %v4709_v19 = vmax.f32 %v3550_v48, 0.0  ;;  %v4710_v25 = vmax.f32 %v3553_v6, 0.0 }
 0x19e   : > { %v3648_v1 = vadd.f32 %v1463_v26, %v1411_v49  ;;  %v3659_v20 = vadd.f32 %v1464_v18, %v1412_v33  ;;  %v4714_v44 = vmax.f32 %v3556_v45, 0.0  ;;  %v4715_v48 = vmax.f32 %v3559_v40, 0.0 }
 0x19f   : > { %v784_v47 = vmin.f32 %v4709_v19, 6.0  ;;  %v782_v35 = vmin.f32 %v4710_v25, 6.0  ;;  %v3655_v7 = vadd.f32 %v1381_v61, %v1329_v34  ;;  %v3657_v15 = vadd.f32 %v1382_v2, %v1330_v54 }
 0x1a0   : > { %4708 = vst [vmem:[#allocation38_spill] sm:$0xff] %v3648_v1  ;;  %4713 = vst [vmem:[#allocation41_spill] sm:$0xff] %v3659_v20  ;;  %v3663_v52 = vmin.f32 %v4714_v44, 6.0  ;;  %v3668_v57 = vmin.f32 %v4715_v48, 6.0  ;;  %v4716_v33 = vrot.slane %v3562_v53, 7  ;;  %v4718_v40 = vrot.slane %v3562_v53, 1 }
 0x1a1   : > { %4711 = vst [vmem:[#allocation39_spill] sm:$0xff] %v3655_v7  ;;  %4712 = vst [vmem:[#allocation40_spill] sm:$0xff] %v3657_v15  ;;  %v833_v26 = vrot.slane %v784_v47, 7  ;;  %v948_v58 = vrot.slane %v784_v47, 1  ;;  %v1061_v62 = vpack.c.bf16 %v784_v47, %v3562_v53  ;;  %v832_v6 = vrot.slane %v782_v35, 7 }
 0x1a2   : > { %v947_v23 = vrot.slane %v782_v35, 1  ;;  %v1060_v34 = vpack.c.bf16 %v782_v35, %v3564_v59  ;;  %v4717_v2 = vmov %v4716_v33  ;;  %v4719_v54 = vmov %v4718_v40 }
 0x1a3   : > { %v852_v45 = vsel %vm842_vm1, %v4716_v33, %v833_v26  ;;  %v870_v18 = vsel %vm842_vm1, %v833_v26, %v4717_v2  ;;  %v967_v49 = vsel %vm957_vm2, %v4718_v40, %v948_v58  ;;  %v985_v59 = vsel %vm957_vm2, %v948_v58, %v4719_v54 }
 0x1a4   : > { %v901_v19 = vsel %vm804_vm0, 0.0, %v870_v18  ;;  %v1017_v47 = vsel %vm920_vm3, 0.0, %v985_v59  ;;  %v1194_v25 = vmul.bf16 %v3241_v24, %v1061_v62  ;;  %v3694_v35 = vmul.bf16 %v3247_v29, %v1061_v62 }
 0x1a5   : > { %v1043_v44 = vpack.c.bf16 %v852_v45, %v901_v19  ;;  %v3696_v26 = vpack.c.bf16 %v1017_v47, %v967_v49  ;;  %v3699_v48 = vmul.bf16 %v3259_v38, %v1061_v62  ;;  %v851_v18 = vsel %vm842_vm1, %v814_v10, %v832_v6 }
 0x1a6   : > { %4720 = vst [vmem:[#allocation42_spill] sm:$0xff] %v3694_v35  ;;  %v1219_v58 = vunpack.c.l.bf16 %v1194_v25  ;;  %v1220_v33 = vunpack.c.h.bf16 %v1194_v25  ;;  %v869_v47 = vsel %vm842_vm1, %v832_v6, %v814_v10  ;;  %v984_v19 = vsel %vm957_vm2, %v947_v23, %v929_v3 }
 0x1a7   : > { %4721 = vst [vmem:[#allocation43_spill] sm:$0xff] %v3696_v26  ;;  %4722 = vst [vmem:[#allocation44_spill] sm:$0xff] %v3699_v48  ;;  %v1107_v40 = vmul.bf16 %v3245_v28, %v1043_v44  ;;  %v1278_v54 = vmul.bf16 %v3251_v31, %v3696_v26  ;;  %v1361_v45 = vmul.bf16 %v3253_v32, %v1043_v44  ;;  %v899_v49 = vsel %vm804_vm0, 0.0, %v869_v47 }
 0x1a8   : > { %v3712_v62 = vmul.bf16 %v3256_v36, %v3696_v26  ;;  %v3715_v59 = vmul.bf16 %v3261_v42, %v1043_v44  ;;  %v1042_v26 = vpack.c.bf16 %v851_v18, %v899_v49  ;;  %v1015_v6 = vsel %vm920_vm3, 0.0, %v984_v19 }
 0x1a9   : > { %v1132_v25 = vunpack.c.l.bf16 %v1107_v40  ;;  %v1133_v2 = vunpack.c.h.bf16 %v1107_v40  ;;  %v1303_v37 = vunpack.c.l.bf16 %v1278_v54  ;;  %v1304_v53 = vunpack.c.h.bf16 %v1278_v54 }
 0x1aa   : > { %4723 = vst [vmem:[#allocation45_spill] sm:$0xff] %v3712_v62  ;;  %4724 = vst [vmem:[#allocation46_spill] sm:$0xff] %v3715_v59  ;;  %v1385_v61 = vunpack.c.l.bf16 %v1361_v45  ;;  %v966_v62 = vsel %vm957_vm2, %v929_v3, %v947_v23  ;;  %v1386_v10 = vunpack.c.h.bf16 %v1361_v45  ;;  %v1193_v40 = vmul.bf16 %v3241_v24, %v1060_v34 }
 0x1ab   : > { %v1251_v44 = vadd.f32 %v1219_v58, %v1132_v25  ;;  %v1252_v35 = vadd.f32 %v1220_v33, %v1133_v2  ;;  %v1444_v54 = vmul.bf16 %v3247_v29, %v1060_v34  ;;  %v3733_v47 = vpack.c.bf16 %v1015_v6, %v966_v62  ;;  %v2567_v33 = vpop.f32.mrf.mxu0 }
 0x1ac   : > { %v1106_v48 = vmul.bf16 %v3245_v28, %v1042_v26  ;;  %v3737_v58 = vmul.bf16 %v3259_v38, %v1060_v34  ;;  %v1217_v23 = vunpack.c.l.bf16 %v1193_v40  ;;  %v1218_v2 = vunpack.c.h.bf16 %v1193_v40 }
 0x1ad   : > { %v3731_v8 = vadd.f32 %v1303_v37, %v1251_v44  ;;  %v3739_v3 = vadd.f32 %v1304_v53, %v1252_v35  ;;  %v1360_v18 = vmul.bf16 %v3253_v32, %v1042_v26  ;;  %v1277_v37 = vmul.bf16 %v3251_v31, %v3733_v47  ;;  %v669_v40 = vpop.f32.mrf.mxu0 }
 0x1ae   : > { %v1130_v45 = vunpack.c.l.bf16 %v1106_v48  ;;  %v1131_v49 = vunpack.c.h.bf16 %v1106_v48  ;;  %v1467_v19 = vunpack.c.l.bf16 %v1444_v54  ;;  %v1468_v44 = vunpack.c.h.bf16 %v1444_v54 }
 0x1af   : > { %v1383_v62 = vunpack.c.l.bf16 %v1360_v18  ;;  %v1384_v25 = vunpack.c.h.bf16 %v1360_v18  ;;  %v3746_v34 = vmul.bf16 %v3256_v36, %v3733_v47  ;;  %v1301_v53 = vunpack.c.l.bf16 %v1277_v37 }
 0x1b0   : > { %v1249_v6 = vadd.f32 %v1217_v23, %v1130_v45  ;;  %v1250_v35 = vadd.f32 %v1218_v2, %v1131_v49  ;;  %v1302_v59 = vunpack.c.h.bf16 %v1277_v37  ;;  %v3751_v7 = vmul.bf16 %v3261_v42, %v1042_v26 }
 0x1b1   : > { %4725 = vst [vmem:[#allocation47_spill] sm:$0xff] %v3746_v34  ;;  %v1415_v15 = vadd.f32 %v1383_v62, %v3623_v46  ;;  %v1416_v48 = vadd.f32 %v1384_v25, %v3631_v39  ;;  %v816_v34 = vrot.slane %v3668_v57, 7  ;;  %v931_v2 = vrot.slane %v3668_v57, 1 }
 0x1b2   : > { %v1333_v18 = vadd.f32 %v1301_v53, %v1249_v6  ;;  %v1334_v54 = vadd.f32 %v1302_v59, %v1250_v35  ;;  %v678_v45 = vadd.f32 %v2567_v33, %v3224_v4  ;;  %v670_v46 = vadd.f32 %v3224_v4, %v669_v40 }
 0x1b3   : > { %v3756_v23 = vadd.f32 %v1467_v19, %v1415_v15  ;;  %v3763_v26 = vadd.f32 %v1468_v44, %v1416_v48  ;;  %v4726_v49 = vunpack.c.l.bf16 %v3288_v12  ;;  %v4727_v37 = vunpack.c.h.bf16 %v3288_v12 }
 0x1b4   : > { %v3761_v39 = vadd.f32 %v1385_v61, %v1333_v18  ;;  %v3771_v15 = vadd.f32 %v1386_v10, %v1334_v54  ;;  %v752_v19 = vmax.f32 %v678_v45, 0.0  ;;  %v750_v25 = vmax.f32 %v670_v46, 0.0 }
 0x1b5   : > { %v1401_v59 = vadd.f32 %v4726_v49, %v3325_v16  ;;  %v1402_v62 = vadd.f32 %v4727_v37, %v3328_v21  ;;  %v1537_v33 = vunpack.c.l.bf16 %v3292_v14  ;;  %v4728_v4 = vunpack.c.l.bf16 %v3281_v60 }
 0x1b6   : > { %v4729_v44 = vunpack.c.h.bf16 %v3281_v60  ;;  %v1538_v35 = vunpack.c.h.bf16 %v3292_v14  ;;  %v1605_v16 = vmul.bf16 %v3261_v42, %v3393_v50  ;;  %v788_v53 = vmin.f32 %v752_v19, 6.0 }
 0x1b7   : > { %v1485_v61 = vadd.f32 %v4728_v4, %v1401_v59  ;;  %v786_v12 = vmin.f32 %v750_v25, 6.0  ;;  %v3785_v54 = vmul.bf16 %v3263_v43, %v3401_v30  ;;  %v1633_v5 = vunpack.c.l.bf16 %v3751_v7 }
 0x1b8   : > { %v1486_v6 = vadd.f32 %v4729_v44, %v1402_v62  ;;  %v1621_v18 = vunpack.c.l.bf16 %v1605_v16  ;;  %v835_v60 = vrot.slane %v788_v53, 7  ;;  %v950_v45 = vrot.slane %v788_v53, 1 }
 0x1b9   : > { %v1569_v40 = vadd.f32 %v1537_v33, %v1485_v61  ;;  %v1063_v14 = vpack.c.bf16 %v788_v53, %v3663_v52  ;;  %v1622_v46 = vunpack.c.h.bf16 %v1605_v16  ;;  %v834_v49 = vrot.slane %v786_v12, 7 }
 0x1ba   : > { %v1570_v48 = vadd.f32 %v1538_v35, %v1486_v6  ;;  %v949_v50 = vrot.slane %v786_v12, 1  ;;  %v1062_v59 = vpack.c.bf16 %v786_v12, %v3668_v57  ;;  %v4730_v62 = vrot.slane %v3663_v52, 7 }
 0x1bb   : > { %v3789_v37 = vadd.f32 %v1621_v18, %v1569_v40  ;;  %v4732_v33 = vrot.slane %v3663_v52, 1  ;;  %v1196_v16 = vmul.bf16 %v3241_v24, %v1063_v14  ;;  %v3813_v53 = vmul.bf16 %v3247_v29, %v1063_v14 }
 0x1bc   : > { %v854_v19 = vsel %vm842_vm1, %v4730_v62, %v835_v60  ;;  %v4731_v25 = vmov %v4730_v62  ;;  %v3818_v18 = vmul.bf16 %v3259_v38, %v1063_v14  ;;  %v1654_v52 = vadd.f32 %v1622_v46, %v1570_v48 }
 0x1bd   : > { %v872_v30 = vsel %vm842_vm1, %v835_v60, %v4731_v25  ;;  %v969_v4 = vsel %vm957_vm2, %v4732_v33, %v950_v45  ;;  %v4733_v61 = vmov %v4732_v33  ;;  %4734 = vst [vmem:[#allocation48_spill] sm:$0xff] %v3813_v53  ;;  %v1223_v60 = vunpack.c.l.bf16 %v1196_v16  ;;  %v4750_v53 = vld [vmem:[#allocation17_spill] sm:$0xff] }
 0x1be   : > { %v987_v44 = vsel %vm957_vm2, %v950_v45, %v4733_v61  ;;  %v905_v6 = vsel %vm804_vm0, 0.0, %v872_v30  ;;  %4736 = vst [vmem:[#allocation50_spill] sm:$0xff] %v3818_v18  ;;  %v1224_v45 = vunpack.c.h.bf16 %v1196_v16  ;;  %v853_v25 = vsel %vm842_vm1, %v816_v34, %v834_v49 }
 0x1bf   : > { %v1021_v35 = vsel %vm920_vm3, 0.0, %v987_v44  ;;  %v1045_v12 = vpack.c.bf16 %v854_v19, %v905_v6  ;;  %v871_v61 = vsel %vm842_vm1, %v834_v49, %v816_v34  ;;  %v986_v34 = vsel %vm957_vm2, %v949_v50, %v931_v2 }
 0x1c0   : > { %v3815_v40 = vpack.c.bf16 %v1021_v35, %v969_v4  ;;  %v903_v1 = vsel %vm804_vm0, 0.0, %v871_v61  ;;  %v1195_v61 = vmul.bf16 %v3241_v24, %v1062_v59  ;;  %v1446_v16 = vmul.bf16 %v3247_v29, %v1062_v59 }
 0x1c1   : > { %v1109_v30 = vmul.bf16 %v3245_v28, %v1045_v12  ;;  %v3827_v19 = vmul.bf16 %v3253_v32, %v1045_v12  ;;  %v3835_v14 = vmul.bf16 %v3261_v42, %v1045_v12  ;;  %v968_v12 = vsel %vm957_vm2, %v931_v2, %v949_v50 }
 0x1c2   : > { %4735 = vst [vmem:[#allocation49_spill] sm:$0xff] %v3815_v40  ;;  %v1280_v33 = vmul.bf16 %v3251_v31, %v3815_v40  ;;  %v3832_v48 = vmul.bf16 %v3256_v36, %v3815_v40  ;;  %v1044_v49 = vpack.c.bf16 %v853_v25, %v903_v1  ;;  %v3863_v57 = vmul.bf16 %v3259_v38, %v1062_v59  ;;  %v2570_v25 = vpop.f32.mrf.mxu0 }
 0x1c3   : > { %4738 = vst [vmem:[#allocation52_spill] sm:$0xff] %v3835_v14  ;;  %v1136_v44 = vunpack.c.l.bf16 %v1109_v30  ;;  %v1137_v6 = vunpack.c.h.bf16 %v1109_v30  ;;  %v1389_v4 = vunpack.c.l.bf16 %v3827_v19  ;;  %v1221_v1 = vunpack.c.l.bf16 %v1195_v61 }
 0x1c4   : > { %4737 = vst [vmem:[#allocation51_spill] sm:$0xff] %v3832_v48  ;;  %v1307_v35 = vunpack.c.l.bf16 %v1280_v33  ;;  %v1308_v62 = vunpack.c.h.bf16 %v1280_v33  ;;  %v1019_v33 = vsel %vm920_vm3, 0.0, %v986_v34  ;;  %v1222_v50 = vunpack.c.h.bf16 %v1195_v61  ;;  %v682_v40 = vpop.f32.mrf.mxu0 }
 0x1c5   : > { %v1255_v46 = vadd.f32 %v1223_v60, %v1136_v44  ;;  %v1256_v20 = vadd.f32 %v1224_v45, %v1137_v6  ;;  %v3859_v21 = vpack.c.bf16 %v1019_v33, %v968_v12  ;;  %v1108_v60 = vmul.bf16 %v3245_v28, %v1044_v49 }
 0x1c6   : > { %v1362_v45 = vmul.bf16 %v3253_v32, %v1044_v49  ;;  %v1472_v33 = vunpack.c.h.bf16 %v1446_v16  ;;  %v3875_v61 = vmul.bf16 %v3261_v42, %v1044_v49  ;;  %v4739_v14 = vunpack.c.l.bf16 %v3413_v22 }
 0x1c7   : > { %v3857_v10 = vadd.f32 %v1307_v35, %v1255_v46  ;;  %v3865_v2 = vadd.f32 %v1308_v62, %v1256_v20  ;;  %v1134_v44 = vunpack.c.l.bf16 %v1108_v60  ;;  %v1135_v6 = vunpack.c.h.bf16 %v1108_v60 }
 0x1c8   : > { %v1279_v46 = vmul.bf16 %v3251_v31, %v3859_v21  ;;  %v1471_v35 = vunpack.c.l.bf16 %v1446_v16  ;;  %v1387_v12 = vunpack.c.l.bf16 %v1362_v45  ;;  %v1388_v34 = vunpack.c.h.bf16 %v1362_v45  ;;  %v4748_v16 = vld [vmem:[#allocation21_spill] sm:$0xff] }
 0x1c9   : > { %v3872_v59 = vmul.bf16 %v3256_v36, %v3859_v21  ;;  %v1253_v20 = vadd.f32 %v1221_v1, %v1134_v44  ;;  %v1254_v62 = vadd.f32 %v1222_v50, %v1135_v6  ;;  %v1737_v1 = vadd.f32 %v4739_v14, %v3789_v37  ;;  %v2571_v14 = vpop.f32.mrf.mxu0 }
 0x1ca   : > { %v1305_v30 = vunpack.c.l.bf16 %v1279_v46  ;;  %v1306_v48 = vunpack.c.h.bf16 %v1279_v46  ;;  %v1419_v60 = vadd.f32 %v1387_v12, %v3731_v8  ;;  %v1420_v18 = vadd.f32 %v1388_v34, %v3739_v3 }
 0x1cb   : > { %v4740_v50 = vunpack.c.h.bf16 %v3413_v22  ;;  %v1789_v8 = vunpack.c.l.bf16 %v3785_v54  ;;  %v1790_v3 = vunpack.c.h.bf16 %v3785_v54  ;;  %v3902_v22 = vld [vmem:[%s4608_s2] ss:$0 sm:$0xff] }
 0x1cc   : > { %v1337_v45 = vadd.f32 %v1305_v30, %v1253_v20  ;;  %v1338_v49 = vadd.f32 %v1306_v48, %v1254_v62  ;;  %v3886_v6 = vadd.f32 %v1471_v35, %v1419_v60  ;;  %v3892_v12 = vadd.f32 %v1472_v33, %v1420_v18  ;;  %v3897_v30 = vld [vmem:[%s4608_s2 + $0x1] ss:$0 sm:$0xff] }
 0x1cd   : > { %v1738_v44 = vadd.f32 %v4740_v50, %v1654_v52  ;;  %v691_v37 = vadd.f32 %v3902_v22, %v2570_v25  ;;  %v683_v52 = vadd.f32 %v3902_v22, %v682_v40  ;;  %v1821_v48 = vadd.f32 %v1789_v8, %v1737_v1 }
 0x1ce   : > { %v3890_v46 = vadd.f32 %v1389_v4, %v1337_v45  ;;  %v1539_v4 = vunpack.c.l.bf16 %v3420_v41  ;;  %v1540_v18 = vunpack.c.h.bf16 %v3420_v41  ;;  %v1623_v33 = vunpack.c.l.bf16 %v3374_v9 }
 0x1cf   : > { %v1822_v54 = vadd.f32 %v1790_v3, %v1738_v44  ;;  %v755_v35 = vmax.f32 %v691_v37, 0.0  ;;  %v753_v34 = vmax.f32 %v683_v52, 0.0  ;;  %v1624_v20 = vunpack.c.h.bf16 %v3374_v9  ;;  %v685_v37 = vpop.f32.mrf.mxu0 }
 0x1d0   : > { %v1858_v62 = vadd.f32 %v3897_v30, %v1821_v48  ;;  %v1571_v25 = vadd.f32 %v1539_v4, %v3430_v27  ;;  %v1572_v40 = vadd.f32 %v1540_v18, %v3432_v13  ;;  %v1774_v41 = vmul.bf16 %v3263_v43, %v3352_v56 }
 0x1d1   : > { %v1859_v60 = vadd.f32 %v3897_v30, %v1822_v54  ;;  %v791_v45 = vmin.f32 %v755_v35, 6.0  ;;  %v3914_v1 = vmin.f32 %v753_v34, 6.0  ;;  %v694_v50 = vadd.f32 %v3902_v22, %v2571_v14 }
 0x1d2   : > { %v1890_v44 = vmax.f32 %v1858_v62, 0.0  ;;  %v1655_v3 = vadd.f32 %v1623_v33, %v1571_v25  ;;  %v1656_v9 = vadd.f32 %v1624_v20, %v1572_v40  ;;  %v4741_v52 = vunpack.c.h.bf16 %v3827_v19  ;;  %v4746_v25 = vld [vmem:[#allocation16_spill] sm:$0xff] }
 0x1d3   : > { %v1891_v8 = vmax.f32 %v1859_v60, 0.0  ;;  %v819_v27 = vrot.slane %v791_v45, 7  ;;  %v934_v54 = vrot.slane %v791_v45, 1  ;;  %v4743_v35 = vunpack.c.l.bf16 %v3355_v55 }
 0x1d4   : > { %v3921_v48 = vadd.f32 %v4741_v52, %v1338_v49  ;;  %v1922_v4 = vmin.f32 %v1890_v44, 6.0  ;;  %v4744_v14 = vunpack.c.h.bf16 %v3355_v55  ;;  %v1791_v62 = vunpack.c.l.bf16 %v1774_v41  ;;  %v4745_v49 = vld [vmem:[#allocation18_spill] sm:$0xff] }
 0x1d5   : > { %v1923_v18 = vmin.f32 %v1891_v8, 6.0  ;;  %v1739_v56 = vadd.f32 %v4743_v35, %v1655_v3  ;;  %v1792_v33 = vunpack.c.h.bf16 %v1774_v41  ;;  %v756_v20 = vmax.f32 %v694_v50, 0.0 }
 0x1d6   : > { %4742 = vst [vmem:[#allocation53_spill] sm:$0xff] %v3921_v48  ;;  %v1740_v34 = vadd.f32 %v4744_v14, %v1656_v9  ;;  %v686_v60 = vadd.f32 %v3902_v22, %v685_v37  ;;  %v4747_v40 = vunpack.c.l.bf16 %v4746_v25  ;;  %v4749_v44 = vunpack.c.h.bf16 %v4746_v25 }
 0x1d7   : > { %v1954_v19 = vpack.c.bf16 %v1923_v18, %v1922_v4  ;;  %v1541_v13 = vunpack.c.l.bf16 %v4750_v53  ;;  %v1823_v3 = vadd.f32 %v1791_v62, %v1739_v56  ;;  %v792_v55 = vmin.f32 %v756_v20, 6.0  ;;  %v4751_v4 = vld [vmem:[#allocation25_spill] sm:$0xff] }
 0x1d8   : > { %v1489_v52 = vadd.f32 %v4747_v40, %v4745_v49  ;;  %v1490_v8 = vadd.f32 %v4749_v44, %v4748_v16  ;;  %v1824_v35 = vadd.f32 %v1792_v33, %v1740_v34  ;;  %v754_v9 = vmax.f32 %v686_v60, 0.0 }
 0x1d9   : > { %2596 = vmatprep.mubr.bf16.mxu1 %v1954_v19  ;;  %v933_v41 = vrot.slane %v3914_v1, 1  ;;  %v1542_v50 = vunpack.c.h.bf16 %v4750_v53  ;;  %v1625_v18 = vunpack.c.l.bf16 %v4751_v4  ;;  %v1860_v14 = vadd.f32 %v3897_v30, %v1823_v3 }
 0x1da   : > { %v1573_v37 = vadd.f32 %v1541_v13, %v1489_v52  ;;  %v1861_v49 = vadd.f32 %v3897_v30, %v1824_v35  ;;  %v837_v25 = vrot.slane %v792_v55, 7  ;;  %v952_v16 = vrot.slane %v792_v55, 1 }
 0x1db   : > { %v1065_v40 = vpack.c.bf16 %v792_v55, %v791_v45  ;;  %v790_v44 = vmin.f32 %v754_v9, 6.0  ;;  %v1574_v56 = vadd.f32 %v1542_v50, %v1490_v8  ;;  %v1626_v34 = vunpack.c.h.bf16 %v4751_v4 }
 0x1dc   : > { %v1892_v62 = vmax.f32 %v1860_v14, 0.0  ;;  %v1893_v33 = vmax.f32 %v1861_v49, 0.0  ;;  %v856_v20 = vsel %vm842_vm1, %v819_v27, %v837_v25  ;;  %v874_v53 = vsel %vm842_vm1, %v837_v25, %v819_v27 }
 0x1dd   : > { %v909_v13 = vsel %vm804_vm0, 0.0, %v874_v53  ;;  %v971_v60 = vsel %vm957_vm2, %v934_v54, %v952_v16  ;;  %v989_v45 = vsel %vm957_vm2, %v952_v16, %v934_v54  ;;  %v1198_v19 = vmul.bf16 %v3241_v24, %v1065_v40 }
 0x1de   : > { %v1924_v52 = vmin.f32 %v1892_v62, 6.0  ;;  %v1925_v8 = vmin.f32 %v1893_v33, 6.0  ;;  %v1025_v3 = vsel %vm920_vm3, 0.0, %v989_v45  ;;  %v1047_v35 = vpack.c.bf16 %v856_v20, %v909_v13 }
 0x1df   : > { %v3955_v55 = vpack.c.bf16 %v1025_v3, %v971_v60  ;;  %v1227_v27 = vunpack.c.l.bf16 %v1198_v19  ;;  %v3958_v9 = vmul.bf16 %v3247_v29, %v1065_v40  ;;  %v1657_v50 = vadd.f32 %v1625_v18, %v1573_v37 }
 0x1e0   : > { %v1955_v4 = vpack.c.bf16 %v1925_v8, %v1924_v52  ;;  %v1111_v14 = vmul.bf16 %v3245_v28, %v1047_v35  ;;  %v1228_v49 = vunpack.c.h.bf16 %v1198_v19  ;;  %v3962_v54 = vmul.bf16 %v3253_v32, %v1047_v35 }
 0x1e1   : > { %4752 = vst [vmem:[#allocation18_spill] sm:$0xff] %v3955_v55  ;;  %4753 = vst [vmem:[#allocation16_spill] sm:$0xff] %v3958_v9  ;;  %v1282_v25 = vmul.bf16 %v3251_v31, %v3955_v55  ;;  %v3969_v33 = vmul.bf16 %v3261_v42, %v1047_v35  ;;  %v3974_v53 = vmul.bf16 %v3256_v36, %v3955_v55  ;;  %v836_v19 = vrot.slane %v790_v44, 7 }
 0x1e2   : > { %2597 = vmatmul.mubr.bf16.vlgmr.msra.gmra.mxu1 %v1955_v4  ;;  %v1140_v20 = vunpack.c.l.bf16 %v1111_v14  ;;  %v1141_v37 = vunpack.c.h.bf16 %v1111_v14  ;;  %v1393_v18 = vunpack.c.l.bf16 %v3962_v54  ;;  %v3978_v45 = vmul.bf16 %v3259_v38, %v1065_v40 }
 0x1e3   : > { %4754 = vst [vmem:[#allocation21_spill] sm:$0xff] %v3969_v33  ;;  %4755 = vst [vmem:[#allocation17_spill] sm:$0xff] %v3974_v53  ;;  %v1311_v13 = vunpack.c.l.bf16 %v1282_v25  ;;  %v951_v3 = vrot.slane %v790_v44, 1  ;;  %v1064_v35 = vpack.c.bf16 %v790_v44, %v3914_v1  ;;  %v1312_v4 = vunpack.c.h.bf16 %v1282_v25 }
 0x1e4   : > { %4756 = vst [vmem:[#allocation25_spill] sm:$0xff] %v3978_v45  ;;  %v1259_v52 = vadd.f32 %v1227_v27, %v1140_v20  ;;  %v1260_v8 = vadd.f32 %v1228_v49, %v1141_v37  ;;  %v4757_v62 = vrot.slane %v3914_v1, 7 }
 0x1e5   : > { %v970_v49 = vsel %vm957_vm2, %v933_v41, %v951_v3  ;;  %v988_v25 = vsel %vm957_vm2, %v951_v3, %v933_v41  ;;  %v1448_v1 = vmul.bf16 %v3247_v29, %v1064_v35 }
 0x1e6   : > { %v855_v16 = vsel %vm842_vm1, %v4757_v62, %v836_v19  ;;  %v4758_v53 = vmov %v4757_v62  ;;  %v3990_v60 = vadd.f32 %v1311_v13, %v1259_v52  ;;  %v1197_v62 = vmul.bf16 %v3241_v24, %v1064_v35  ;;  %v2574_v52 = vpop.f32.mrf.mxu0 }
 0x1e7   : > { %v873_v40 = vsel %vm842_vm1, %v836_v19, %v4758_v53  ;;  %v4001_v37 = vadd.f32 %v1312_v4, %v1260_v8  ;;  %v1023_v53 = vsel %vm920_vm3, 0.0, %v988_v25  ;;  %v4006_v13 = vmul.bf16 %v3259_v38, %v1064_v35 }
 0x1e8   : > { %v907_v44 = vsel %vm804_vm0, 0.0, %v873_v40  ;;  %v1658_v19 = vadd.f32 %v1626_v34, %v1574_v56  ;;  %v4008_v40 = vpack.c.bf16 %v1023_v53, %v970_v49  ;;  %v1225_v41 = vunpack.c.l.bf16 %v1197_v62 }
 0x1e9   : > { %v1046_v20 = vpack.c.bf16 %v855_v16, %v907_v44  ;;  %4759 = vst [vmem:[#allocation54_spill] sm:$0xff] %v4006_v13  ;;  %v4760_v16 = vunpack.c.l.bf16 %v3515_v17  ;;  %v1226_v44 = vunpack.c.h.bf16 %v1197_v62  ;;  %v1475_v4 = vunpack.c.l.bf16 %v1448_v1  ;;  %v698_v62 = vpop.f32.mrf.mxu0 }
 0x1ea   : > { %v1476_v14 = vunpack.c.h.bf16 %v1448_v1  ;;  %v1281_v35 = vmul.bf16 %v3251_v31, %v4008_v40  ;;  %v4021_v53 = vmul.bf16 %v3256_v36, %v4008_v40 }
 0x1eb   : > { %v1110_v27 = vmul.bf16 %v3245_v28, %v1046_v20  ;;  %v1741_v3 = vadd.f32 %v4760_v16, %v1657_v50  ;;  %v1364_v8 = vmul.bf16 %v3253_v32, %v1046_v20  ;;  %v4017_v56 = vmul.bf16 %v3261_v42, %v1046_v20 }
 0x1ec   : > { %4762 = vst [vmem:[#allocation56_spill] sm:$0xff] %v4021_v53  ;;  %v1309_v1 = vunpack.c.l.bf16 %v1281_v35  ;;  %v1310_v55 = vunpack.c.h.bf16 %v1281_v35  ;;  %v4763_v20 = vunpack.c.h.bf16 %v3515_v17  ;;  %v707_v50 = vadd.f32 %v3902_v22, %v2574_v52  ;;  %v2575_v35 = vpop.f32.mrf.mxu0 }
 0x1ed   : > { %v1138_v45 = vunpack.c.l.bf16 %v1110_v27  ;;  %v1139_v25 = vunpack.c.h.bf16 %v1110_v27  ;;  %4761 = vst [vmem:[#allocation55_spill] sm:$0xff] %v4017_v56  ;;  %v1391_v34 = vunpack.c.l.bf16 %v1364_v8  ;;  %v1392_v49 = vunpack.c.h.bf16 %v1364_v8 }
 0x1ee   : > { %v1742_v56 = vadd.f32 %v4763_v20, %v1658_v19  ;;  %v1775_v8 = vmul.bf16 %v3263_v43, %v3511_v63  ;;  %v759_v19 = vmax.f32 %v707_v50, 0.0  ;;  %v4770_v50 = vld [vmem:[#allocation29_spill] sm:$0xff] }
 0x1ef   : > { %v1257_v16 = vadd.f32 %v1225_v41, %v1138_v45  ;;  %v1258_v9 = vadd.f32 %v1226_v44, %v1139_v25  ;;  %v1423_v27 = vadd.f32 %v1391_v34, %v3857_v10  ;;  %v1424_v33 = vadd.f32 %v1392_v49, %v3865_v2 }
 0x1f0   : > { %v699_v45 = vadd.f32 %v3902_v22, %v698_v62  ;;  %v1793_v25 = vunpack.c.l.bf16 %v1775_v8  ;;  %v1794_v10 = vunpack.c.h.bf16 %v1775_v8  ;;  %v795_v20 = vmin.f32 %v759_v19, 6.0 }
 0x1f1   : > { %v1341_v48 = vadd.f32 %v1309_v1, %v1257_v16  ;;  %v1342_v41 = vadd.f32 %v1310_v55, %v1258_v9  ;;  %v4033_v44 = vadd.f32 %v1475_v4, %v1423_v27  ;;  %v4037_v17 = vadd.f32 %v1476_v14, %v1424_v33  ;;  %v4767_v16 = vld [vmem:[#allocation26_spill] sm:$0xff]  ;;  %v4768_v55 = vld [vmem:[#allocation24_spill] sm:$0xff] }
 0x1f2   : > { %v757_v34 = vmax.f32 %v699_v45, 0.0  ;;  %v1825_v63 = vadd.f32 %v1793_v25, %v1741_v3  ;;  %v1826_v49 = vadd.f32 %v1794_v10, %v1742_v56  ;;  %v1543_v1 = vunpack.c.l.bf16 %v4767_v16  ;;  %v701_v56 = vpop.f32.mrf.mxu0 }
 0x1f3   : > { %4764 = vst [vmem:[#allocation57_spill] sm:$0xff] %v4033_v44  ;;  %v4035_v2 = vadd.f32 %v1393_v18, %v1341_v48  ;;  %4766 = vst [vmem:[#allocation59_spill] sm:$0xff] %v4037_v17  ;;  %v1544_v52 = vunpack.c.h.bf16 %v4767_v16  ;;  %v1627_v9 = vunpack.c.l.bf16 %v4768_v55  ;;  %v1628_v4 = vunpack.c.h.bf16 %v4768_v55  ;;  %v4769_v18 = vld [vmem:[#allocation27_spill] sm:$0xff] }
 0x1f4   : > { %v4041_v62 = vmin.f32 %v757_v34, 6.0  ;;  %v1862_v48 = vadd.f32 %v3897_v30, %v1825_v63  ;;  %v1863_v33 = vadd.f32 %v3897_v30, %v1826_v49  ;;  %v1575_v14 = vadd.f32 %v1543_v1, %v4769_v18  ;;  %v4773_v63 = vld [vmem:[#allocation22_spill] sm:$0xff]  ;;  %v4774_v18 = vld [vmem:[#allocation28_spill] sm:$0xff]  ;;  %v4782_v44 = vld [vmem:[#allocation23_spill] sm:$0xff] }
 0x1f5   : > { %4765 = vst [vmem:[#allocation58_spill] sm:$0xff] %v4035_v2  ;;  %v1576_v3 = vadd.f32 %v1544_v52, %v4770_v50  ;;  %v4771_v27 = vunpack.c.h.bf16 %v3962_v54  ;;  %v821_v45 = vrot.slane %v795_v20, 7  ;;  %v936_v25 = vrot.slane %v795_v20, 1  ;;  %v4775_v50 = vld [vmem:[#allocation19_spill] sm:$0xff] }
 0x1f6   : > { %v1894_v19 = vmax.f32 %v1862_v48, 0.0  ;;  %v1895_v34 = vmax.f32 %v1863_v33, 0.0  ;;  %v1659_v16 = vadd.f32 %v1627_v9, %v1575_v14  ;;  %v1776_v49 = vmul.bf16 %v3263_v43, %v4773_v63 }
 0x1f7   : > { %v4051_v8 = vadd.f32 %v4771_v27, %v1342_v41  ;;  %v1660_v55 = vadd.f32 %v1628_v4, %v1576_v3  ;;  %v710_v1 = vadd.f32 %v3902_v22, %v2575_v35  ;;  %v702_v52 = vadd.f32 %v3902_v22, %v701_v56  ;;  %v4780_v35 = vld [vmem:[#allocation30_spill] sm:$0xff] }
 0x1f8   : > { %v4776_v54 = vunpack.c.l.bf16 %v4775_v50  ;;  %v1926_v27 = vmin.f32 %v1894_v19, 6.0  ;;  %v1927_v53 = vmin.f32 %v1895_v34, 6.0  ;;  %v1795_v4 = vunpack.c.l.bf16 %v1776_v49 }
 0x1f9   : > { %4772 = vst [vmem:[#allocation26_spill] sm:$0xff] %v4051_v8  ;;  %v4777_v8 = vld [vmem:[#allocation20_spill] sm:$0xff]  ;;  %v1796_v33 = vunpack.c.h.bf16 %v1776_v49  ;;  %v760_v14 = vmax.f32 %v710_v1, 0.0  ;;  %v758_v3 = vmax.f32 %v702_v52, 0.0  ;;  %v4781_v56 = vunpack.c.h.bf16 %v4775_v50 }
 0x1fa   : > { %v1493_v41 = vadd.f32 %v4776_v54, %v4774_v18  ;;  %v4778_v2 = vunpack.c.l.bf16 %v4777_v8  ;;  %v4779_v48 = vunpack.c.h.bf16 %v4777_v8  ;;  %v1956_v63 = vpack.c.bf16 %v1927_v53, %v1926_v27 }
 0x1fb   : > { %v1494_v17 = vadd.f32 %v4781_v56, %v4780_v35  ;;  %v1545_v13 = vunpack.c.l.bf16 %v4782_v44  ;;  %v1546_v19 = vunpack.c.h.bf16 %v4782_v44  ;;  %v796_v54 = vmin.f32 %v760_v14, 6.0 }
 0x1fc   : > { %v1743_v10 = vadd.f32 %v4778_v2, %v1659_v16  ;;  %v1744_v9 = vadd.f32 %v4779_v48, %v1660_v55  ;;  %v794_v2 = vmin.f32 %v758_v3, 6.0  ;;  %2600 = vmatprep.mubr.bf16.mxu1 %v1956_v63  ;;  %v935_v8 = vrot.slane %v4041_v62, 1 }
 0x1fd   : > { %v4071_v16 = vadd.f32 %v1545_v13, %v1493_v41  ;;  %v4073_v55 = vadd.f32 %v1546_v19, %v1494_v17  ;;  %v1629_v53 = vunpack.c.l.bf16 %v3643_v51  ;;  %v839_v52 = vrot.slane %v796_v54, 7 }
 0x1fe   : > { %v1827_v34 = vadd.f32 %v1795_v4, %v1743_v10  ;;  %v1828_v18 = vadd.f32 %v1796_v33, %v1744_v9  ;;  %v954_v50 = vrot.slane %v796_v54, 1  ;;  %v1067_v44 = vpack.c.bf16 %v796_v54, %v795_v20 }
 0x1ff   : > { %v838_v10 = vrot.slane %v794_v2, 7  ;;  %v953_v27 = vrot.slane %v794_v2, 1  ;;  %v858_v13 = vsel %vm842_vm1, %v821_v45, %v839_v52  ;;  %v876_v17 = vsel %vm842_vm1, %v839_v52, %v821_v45 }
 0x200   : > { %v1864_v49 = vadd.f32 %v3897_v30, %v1827_v34  ;;  %v1865_v1 = vadd.f32 %v3897_v30, %v1828_v18  ;;  %v913_v41 = vsel %vm804_vm0, 0.0, %v876_v17  ;;  %v973_v33 = vsel %vm957_vm2, %v936_v25, %v954_v50 }
 0x201   : > { %v991_v20 = vsel %vm957_vm2, %v954_v50, %v936_v25  ;;  %v1200_v14 = vmul.bf16 %v3241_v24, %v1067_v44  ;;  %v1049_v56 = vpack.c.bf16 %v858_v13, %v913_v41  ;;  %v4095_v34 = vmul.bf16 %v3247_v29, %v1067_v44 }
 0x202   : > { %v1896_v9 = vmax.f32 %v1864_v49, 0.0  ;;  %v1897_v4 = vmax.f32 %v1865_v1, 0.0  ;;  %v1029_v35 = vsel %vm920_vm3, 0.0, %v991_v20  ;;  %v1066_v18 = vpack.c.bf16 %v794_v2, %v4041_v62 }
 0x203   : > { %v4092_v19 = vpack.c.bf16 %v1029_v35, %v973_v33  ;;  %v1231_v45 = vunpack.c.l.bf16 %v1200_v14  ;;  %4784 = vst [vmem:[#allocation27_spill] sm:$0xff] %v4095_v34  ;;  %v1113_v49 = vmul.bf16 %v3245_v28, %v1049_v56  ;;  %v1232_v25 = vunpack.c.h.bf16 %v1200_v14 }
 0x204   : > { %v1928_v3 = vmin.f32 %v1896_v9, 6.0  ;;  %v1929_v63 = vmin.f32 %v1897_v4, 6.0  ;;  %v4100_v1 = vmul.bf16 %v3253_v32, %v1049_v56  ;;  %v4109_v4 = vmul.bf16 %v3261_v42, %v1049_v56 }
 0x205   : > { %4783 = vst [vmem:[#allocation24_spill] sm:$0xff] %v4092_v19  ;;  %v4104_v52 = vmul.bf16 %v3251_v31, %v4092_v19  ;;  %v1144_v2 = vunpack.c.l.bf16 %v1113_v49  ;;  %v1145_v13 = vunpack.c.h.bf16 %v1113_v49  ;;  %v4114_v41 = vmul.bf16 %v3256_v36, %v4092_v19 }
 0x206   : > { %v1957_v54 = vpack.c.bf16 %v1929_v63, %v1928_v3  ;;  %v1397_v17 = vunpack.c.l.bf16 %v4100_v1  ;;  %v4117_v33 = vmul.bf16 %v3259_v38, %v1067_v44  ;;  %v4787_v20 = vrot.slane %v4041_v62, 7 }
 0x207   : > { %4785 = vst [vmem:[#allocation29_spill] sm:$0xff] %v4114_v41  ;;  %v972_v35 = vsel %vm957_vm2, %v935_v8, %v953_v27  ;;  %v4129_v56 = vadd.f32 %v1231_v45, %v1144_v2  ;;  %v990_v49 = vsel %vm957_vm2, %v953_v27, %v935_v8  ;;  %v4136_v9 = vadd.f32 %v1232_v25, %v1145_v13  ;;  %v2578_v13 = vpop.f32.mrf.mxu0 }
 0x208   : > { %2601 = vmatmul.mubr.bf16.gmra.mxu1 %v1957_v54  ;;  %4786 = vst [vmem:[#allocation22_spill] sm:$0xff] %v4117_v33  ;;  %v857_v14 = vsel %vm842_vm1, %v4787_v20, %v838_v10  ;;  %v4788_v3 = vmov %v4787_v20  ;;  %v1199_v2 = vmul.bf16 %v3241_v24, %v1066_v18  ;;  %v1450_v50 = vmul.bf16 %v3247_v29, %v1066_v18 }
 0x209   : > { %v875_v63 = vsel %vm842_vm1, %v838_v10, %v4788_v3  ;;  %v1027_v10 = vsel %vm920_vm3, 0.0, %v990_v49  ;;  %v4152_v25 = vmul.bf16 %v3259_v38, %v1066_v18  ;;  %v1661_v24 = vadd.f32 %v1629_v53, %v4071_v16 }
 0x20a   : > { %v911_v44 = vsel %vm804_vm0, 0.0, %v875_v63  ;;  %v4142_v45 = vpack.c.bf16 %v1027_v10, %v972_v35  ;;  %v1479_v48 = vunpack.c.l.bf16 %v1450_v50 }
 0x20b   : > { %v1048_v20 = vpack.c.bf16 %v857_v14, %v911_v44  ;;  %v1229_v14 = vunpack.c.l.bf16 %v1199_v2  ;;  %v1230_v44 = vunpack.c.h.bf16 %v1199_v2  ;;  %v714_v2 = vpop.f32.mrf.mxu0 }
 0x20c   : > { %v1283_v35 = vmul.bf16 %v3251_v31, %v4142_v45  ;;  %v4161_v31 = vmul.bf16 %v3256_v36, %v4142_v45  ;;  %v715_v53 = vadd.f32 %v3902_v22, %v714_v2 }
 0x20d   : > { %v1112_v63 = vmul.bf16 %v3245_v28, %v1048_v20  ;;  %v1366_v8 = vmul.bf16 %v3253_v32, %v1048_v20  ;;  %v4149_v27 = vmul.bf16 %v3261_v42, %v1048_v20  ;;  %v1480_v20 = vunpack.c.h.bf16 %v1450_v50 }
 0x20e   : > { %v1313_v62 = vunpack.c.l.bf16 %v1283_v35  ;;  %v1314_v54 = vunpack.c.h.bf16 %v1283_v35 }
 0x20f   : > { %v1142_v49 = vunpack.c.l.bf16 %v1112_v63  ;;  %v1143_v10 = vunpack.c.h.bf16 %v1112_v63  ;;  %v1395_v3 = vunpack.c.l.bf16 %v1366_v8  ;;  %v1396_v28 = vunpack.c.h.bf16 %v1366_v8 }
 0x210   : > { %v4789_v63 = vunpack.c.h.bf16 %v3643_v51 }
 0x211   : > { %v1261_v41 = vadd.f32 %v1229_v14, %v1142_v49  ;;  %v1262_v33 = vadd.f32 %v1230_v44, %v1143_v10  ;;  %v1427_v18 = vadd.f32 %v1395_v3, %v3990_v60  ;;  %v1428_v34 = vadd.f32 %v1396_v28, %v4001_v37  ;;  %v4792_v49 = vld [vmem:[#allocation36_spill] sm:$0xff] }
 0x212   : > { %v1662_v8 = vadd.f32 %v4789_v63, %v4073_v55  ;;  %v4790_v60 = vunpack.c.l.bf16 %v3629_v0  ;;  %v4791_v3 = vunpack.c.h.bf16 %v3629_v0  ;;  %v1777_v10 = vmul.bf16 %v3263_v43, %v4792_v49  ;;  %v4794_v55 = vld [vmem:[#allocation37_spill] sm:$0xff] }
 0x213   : > { %v1345_v50 = vadd.f32 %v1313_v62, %v1261_v41  ;;  %v1346_v14 = vadd.f32 %v1314_v54, %v1262_v33  ;;  %v4168_v44 = vadd.f32 %v1479_v48, %v1427_v18  ;;  %v723_v28 = vadd.f32 %v3902_v22, %v2578_v13  ;;  %v4795_v18 = vld [vmem:[#allocation38_spill] sm:$0xff]  ;;  %v4797_v13 = vld [vmem:[#allocation35_spill] sm:$0xff] }
 0x214   : > { %v1745_v37 = vadd.f32 %v4790_v60, %v1661_v24  ;;  %v1746_v35 = vadd.f32 %v4791_v3, %v1662_v8  ;;  %v4180_v51 = vadd.f32 %v1480_v20, %v1428_v34  ;;  %v1547_v48 = vunpack.c.l.bf16 %v4794_v55  ;;  %v2579_v24 = vpop.f32.mrf.mxu0  ;;  %v4796_v8 = vld [vmem:[#allocation41_spill] sm:$0xff] }
 0x215   : > { %v4178_v16 = vadd.f32 %v1397_v17, %v1345_v50  ;;  %v1548_v41 = vunpack.c.h.bf16 %v4794_v55  ;;  %v1797_v33 = vunpack.c.l.bf16 %v1777_v10  ;;  %v1798_v54 = vunpack.c.h.bf16 %v1777_v10 }
 0x216   : > { %v763_v62 = vmax.f32 %v723_v28, 0.0  ;;  %v761_v0 = vmax.f32 %v715_v53, 0.0  ;;  %v1579_v63 = vadd.f32 %v1547_v48, %v4795_v18  ;;  %v1631_v3 = vunpack.c.l.bf16 %v4797_v13 }
 0x217   : > { %4793 = vst [vmem:[#allocation28_spill] sm:$0xff] %v4178_v16  ;;  %v1580_v60 = vadd.f32 %v1548_v41, %v4796_v8  ;;  %v1632_v17 = vunpack.c.h.bf16 %v4797_v13  ;;  %v1829_v2 = vadd.f32 %v1797_v33, %v1745_v37  ;;  %v1830_v34 = vadd.f32 %v1798_v54, %v1746_v35  ;;  %v4798_v16 = vld [vmem:[#allocation32_spill] sm:$0xff]  ;;  %v717_v35 = vpop.f32.mrf.mxu0 }
 0x218   : > { %v799_v20 = vmin.f32 %v763_v62, 6.0  ;;  %v4188_v50 = vmin.f32 %v761_v0, 6.0  ;;  %v1663_v49 = vadd.f32 %v1631_v3, %v1579_v63  ;;  %v1778_v10 = vmul.bf16 %v3263_v43, %v4798_v16  ;;  %v4801_v62 = vld [vmem:[#allocation33_spill] sm:$0xff] }
 0x219   : > { %v1664_v55 = vadd.f32 %v1632_v17, %v1580_v60  ;;  %v726_v53 = vadd.f32 %v3902_v22, %v2579_v24  ;;  %v4799_v28 = vunpack.c.h.bf16 %v4100_v1  ;;  %v1866_v41 = vadd.f32 %v3897_v30, %v1829_v2 }
 0x21a   : > { %v1867_v18 = vadd.f32 %v3897_v30, %v1830_v34  ;;  %v823_v37 = vrot.slane %v799_v20, 7  ;;  %v938_v33 = vrot.slane %v799_v20, 1  ;;  %v822_v54 = vrot.slane %v4188_v50, 7 }
 0x21b   : > { %v4195_v48 = vadd.f32 %v4799_v28, %v1346_v14  ;;  %v4802_v0 = vunpack.c.l.bf16 %v4801_v62  ;;  %v4803_v16 = vunpack.c.h.bf16 %v4801_v62  ;;  %v1898_v24 = vmax.f32 %v1866_v41, 0.0 }
 0x21c   : > { %v1899_v60 = vmax.f32 %v1867_v18, 0.0  ;;  %v1799_v1 = vunpack.c.l.bf16 %v1778_v10  ;;  %v1800_v14 = vunpack.c.h.bf16 %v1778_v10  ;;  %v764_v13 = vmax.f32 %v726_v53, 0.0 }
 0x21d   : > { %4800 = vst [vmem:[#allocation19_spill] sm:$0xff] %v4195_v48  ;;  %v1747_v63 = vadd.f32 %v4802_v0, %v1663_v49  ;;  %v1748_v8 = vadd.f32 %v4803_v16, %v1664_v55  ;;  %v718_v3 = vadd.f32 %v3902_v22, %v717_v35  ;;  %v1315_v17 = vunpack.c.l.bf16 %v4104_v52 }
 0x21e   : > { %v1316_v2 = vunpack.c.h.bf16 %v4104_v52  ;;  %v1930_v34 = vmin.f32 %v1898_v24, 6.0  ;;  %v1931_v28 = vmin.f32 %v1899_v60, 6.0  ;;  %v937_v49 = vrot.slane %v4188_v50, 1  ;;  %v4804_v24 = vld [vmem:[#allocation39_spill] sm:$0xff] }
 0x21f   : > { %v1831_v48 = vadd.f32 %v1799_v1, %v1747_v63  ;;  %v1832_v19 = vadd.f32 %v1800_v14, %v1748_v8  ;;  %v800_v0 = vmin.f32 %v764_v13, 6.0  ;;  %v762_v62 = vmax.f32 %v718_v3, 0.0  ;;  %v4805_v60 = vld [vmem:[#allocation31_spill] sm:$0xff]  ;;  %v4807_v14 = vld [vmem:[#allocation40_spill] sm:$0xff] }
 0x220   : > { %v4209_v55 = vadd.f32 %v1315_v17, %v4129_v56  ;;  %v1958_v41 = vpack.c.bf16 %v1931_v28, %v1930_v34  ;;  %v4214_v53 = vadd.f32 %v1316_v2, %v4136_v9  ;;  %v4806_v1 = vunpack.c.l.bf16 %v4805_v60 }
 0x221   : > { %v1868_v10 = vadd.f32 %v3897_v30, %v1831_v48  ;;  %v1869_v22 = vadd.f32 %v3897_v30, %v1832_v19  ;;  %v841_v52 = vrot.slane %v800_v0, 7  ;;  %v956_v18 = vrot.slane %v800_v0, 1 }
 0x222   : > { %v1069_v35 = vpack.c.bf16 %v800_v0, %v799_v20  ;;  %v798_v63 = vmin.f32 %v762_v62, 6.0  ;;  %2604 = vmatprep.mubr.bf16.mxu1 %v1958_v41  ;;  %v1497_v56 = vadd.f32 %v4806_v1, %v4804_v24  ;;  %v4808_v13 = vunpack.c.h.bf16 %v4805_v60  ;;  %v4809_v41 = vld [vmem:[#allocation34_spill] sm:$0xff] }
 0x223   : > { %v1900_v16 = vmax.f32 %v1868_v10, 0.0  ;;  %v1901_v8 = vmax.f32 %v1869_v22, 0.0  ;;  %v860_v19 = vsel %vm842_vm1, %v823_v37, %v841_v52  ;;  %v878_v9 = vsel %vm842_vm1, %v841_v52, %v823_v37 }
 0x224   : > { %v1498_v48 = vadd.f32 %v4808_v13, %v4807_v14  ;;  %v4228_v20 = vsel %vm957_vm2, %v938_v33, %v956_v18  ;;  %v993_v3 = vsel %vm957_vm2, %v956_v18, %v938_v33  ;;  %v917_v34 = vsel %vm804_vm0, 0.0, %v878_v9 }
 0x225   : > { %v1932_v17 = vmin.f32 %v1900_v16, 6.0  ;;  %v1933_v2 = vmin.f32 %v1901_v8, 6.0  ;;  %v4236_v28 = vsel %vm920_vm3, 0.0, %v993_v3  ;;  %v1051_v0 = vpack.c.bf16 %v860_v19, %v917_v34 }
 0x226   : > { %v4239_v62 = vmul.bf16 %v3259_v38, %v1069_v35  ;;  %v840_v37 = vrot.slane %v798_v63, 7  ;;  %v1549_v10 = vunpack.c.l.bf16 %v4809_v41  ;;  %v1087_v33 = vpack.c.bf16 %v4236_v28, %v4228_v20 }
 0x227   : > { %v1959_v22 = vpack.c.bf16 %v1933_v2, %v1932_v17  ;;  %v955_v52 = vrot.slane %v798_v63, 1  ;;  %v1068_v18 = vpack.c.bf16 %v798_v63, %v4188_v50  ;;  %v4246_v16 = vmul.bf16 %v3261_v42, %v1051_v0 }
 0x228   : > { %v1735_v8 = vunpack.c.l.bf16 %v4239_v62  ;;  %v859_v24 = vsel %vm842_vm1, %v822_v54, %v840_v37  ;;  %v1550_v35 = vunpack.c.h.bf16 %v4809_v41  ;;  %v877_v60 = vsel %vm842_vm1, %v840_v37, %v822_v54 }
 0x229   : > { %2605 = vmatmul.mubr.bf16.gmra.mxu1 %v1959_v22  ;;  %v974_v1 = vsel %vm957_vm2, %v937_v49, %v955_v52  ;;  %v992_v50 = vsel %vm957_vm2, %v955_v52, %v937_v49  ;;  %v1452_v63 = vmul.bf16 %v3247_v29, %v1068_v18  ;;  %v915_v14 = vsel %vm804_vm0, 0.0, %v877_v60 }
 0x22a   : > { %v1031_v13 = vsel %vm920_vm3, 0.0, %v992_v50  ;;  %v4264_v19 = vmul.bf16 %v3259_v38, %v1068_v18  ;;  %v1581_v9 = vadd.f32 %v1549_v10, %v1497_v56  ;;  %v1736_v54 = vunpack.c.h.bf16 %v4239_v62 }
 0x22b   : > { %v1050_v3 = vpack.c.bf16 %v859_v24, %v915_v14  ;;  %v4267_v17 = vpack.c.bf16 %v1031_v13, %v974_v1  ;;  %v1483_v2 = vunpack.c.l.bf16 %v1452_v63  ;;  %v1484_v34 = vunpack.c.h.bf16 %v1452_v63 }
 0x22c   : > { %v1733_v49 = vunpack.c.l.bf16 %v4264_v19  ;;  %v1582_v29 = vadd.f32 %v1550_v35, %v1498_v48  ;;  %v1734_v56 = vunpack.c.h.bf16 %v4264_v19  ;;  %v1634_v37 = vunpack.c.h.bf16 %v3751_v7  ;;  %v4810_v48 = vld [vmem:[#allocation47_spill] sm:$0xff] }
 0x22d   : > { %v1368_v0 = vmul.bf16 %v3253_v32, %v1050_v3  ;;  %v4274_v11 = vmul.bf16 %v3256_v36, %v4267_v17  ;;  %v4277_v38 = vmul.bf16 %v3261_v42, %v1050_v3  ;;  %v1665_v41 = vadd.f32 %v1633_v5, %v1581_v9  ;;  %v4813_v3 = vld [vmem:[#allocation46_spill] sm:$0xff] }
 0x22e   : > { %v1779_v10 = vmul.bf16 %v3263_v43, %v3733_v47  ;;  %v1551_v22 = vunpack.c.l.bf16 %v4810_v48  ;;  %v1552_v36 = vunpack.c.h.bf16 %v4810_v48  ;;  %v1666_v24 = vadd.f32 %v1634_v37, %v1582_v29 }
 0x22f   : > { %v1399_v52 = vunpack.c.l.bf16 %v1368_v0  ;;  %v1400_v18 = vunpack.c.h.bf16 %v1368_v0  ;;  %v1567_v32 = vunpack.c.l.bf16 %v4274_v11  ;;  %v4811_v42 = vunpack.c.l.bf16 %v3737_v58 }
 0x230   : > { %v1801_v60 = vunpack.c.l.bf16 %v1779_v10  ;;  %v1802_v1 = vunpack.c.h.bf16 %v1779_v10  ;;  %v1583_v47 = vadd.f32 %v1551_v22, %v3756_v23  ;;  %v1584_v63 = vadd.f32 %v1552_v36, %v3763_v26 }
 0x231   : > { %v1749_v35 = vadd.f32 %v4811_v42, %v1665_v41  ;;  %v1431_v7 = vadd.f32 %v1399_v52, %v4209_v55  ;;  %v1432_v50 = vadd.f32 %v1400_v18, %v4214_v53  ;;  %v4812_v14 = vunpack.c.h.bf16 %v3737_v58  ;;  %v4814_v55 = vld [vmem:[#allocation43_spill] sm:$0xff]  ;;  %v4815_v18 = vld [vmem:[#allocation42_spill] sm:$0xff]  ;;  %v4817_v42 = vld [vmem:[#allocation44_spill] sm:$0xff] }
 0x232   : > { %v1635_v5 = vunpack.c.l.bf16 %v4813_v3  ;;  %v1636_v29 = vunpack.c.h.bf16 %v4813_v3  ;;  %v1568_v41 = vunpack.c.h.bf16 %v4274_v11  ;;  %v1780_v53 = vmul.bf16 %v3263_v43, %v4814_v55 }
 0x233   : > { %v1750_v13 = vadd.f32 %v4812_v14, %v1666_v24  ;;  %v1833_v9 = vadd.f32 %v1801_v60, %v1749_v35  ;;  %v1515_v0 = vadd.f32 %v1483_v2, %v1431_v7  ;;  %v4296_v37 = vadd.f32 %v1484_v34, %v1432_v50 }
 0x234   : > { %v1667_v26 = vadd.f32 %v1635_v5, %v1583_v47  ;;  %v1668_v48 = vadd.f32 %v1636_v29, %v1584_v63  ;;  %v1803_v22 = vunpack.c.l.bf16 %v1780_v53  ;;  %v1804_v52 = vunpack.c.h.bf16 %v1780_v53  ;;  %v4821_v47 = vld [vmem:[#allocation45_spill] sm:$0xff] }
 0x235   : > { %v1834_v10 = vadd.f32 %v1802_v1, %v1750_v13  ;;  %v1870_v23 = vadd.f32 %v3897_v30, %v1833_v9  ;;  %v4302_v58 = vadd.f32 %v1567_v32, %v1515_v0  ;;  %v4816_v36 = vunpack.c.l.bf16 %v4815_v18 }
 0x236   : > { %v4818_v35 = vunpack.c.l.bf16 %v4817_v42  ;;  %v4819_v1 = vunpack.c.h.bf16 %v4817_v42  ;;  %v4820_v50 = vunpack.c.h.bf16 %v4815_v18  ;;  %v1553_v63 = vunpack.c.l.bf16 %v4821_v47 }
 0x237   : > { %v1501_v2 = vadd.f32 %v4816_v36, %v3761_v39  ;;  %v1871_v34 = vadd.f32 %v3897_v30, %v1834_v10  ;;  %v1902_v24 = vmax.f32 %v1870_v23, 0.0  ;;  %v1554_v14 = vunpack.c.h.bf16 %v4821_v47 }
 0x238   : > { %v1751_v60 = vadd.f32 %v4818_v35, %v1667_v26  ;;  %v1752_v7 = vadd.f32 %v4819_v1, %v1668_v48  ;;  %v1502_v32 = vadd.f32 %v4820_v50, %v3771_v15  ;;  %v1637_v13 = vunpack.c.l.bf16 %v3875_v61  ;;  %v4824_v1 = vld [vmem:[#allocation52_spill] sm:$0xff] }
 0x239   : > { %v1903_v39 = vmax.f32 %v1871_v34, 0.0  ;;  %v1934_v9 = vmin.f32 %v1902_v24, 6.0  ;;  %v1585_v29 = vadd.f32 %v1553_v63, %v1501_v2  ;;  %v1638_v55 = vunpack.c.h.bf16 %v3875_v61 }
 0x23a   : > { %v1835_v3 = vadd.f32 %v1803_v22, %v1751_v60  ;;  %v1836_v5 = vadd.f32 %v1804_v52, %v1752_v7  ;;  %v1586_v0 = vadd.f32 %v1554_v14, %v1502_v32  ;;  %v1781_v53 = vmul.bf16 %v3263_v43, %v3859_v21 }
 0x23b   : > { %v1935_v10 = vmin.f32 %v1903_v39, 6.0  ;;  %v1555_v26 = vunpack.c.l.bf16 %v3872_v59  ;;  %v1669_v48 = vadd.f32 %v1637_v13, %v1585_v29  ;;  %v1556_v24 = vunpack.c.h.bf16 %v3872_v59  ;;  %v4825_v39 = vld [vmem:[#allocation49_spill] sm:$0xff] }
 0x23c   : > { %v1872_v15 = vadd.f32 %v3897_v30, %v1835_v3  ;;  %v1873_v23 = vadd.f32 %v3897_v30, %v1836_v5  ;;  %v1670_v18 = vadd.f32 %v1638_v55, %v1586_v0  ;;  %v1805_v36 = vunpack.c.l.bf16 %v1781_v53  ;;  %v4826_v5 = vld [vmem:[#allocation48_spill] sm:$0xff]  ;;  %v4828_v0 = vld [vmem:[#allocation53_spill] sm:$0xff] }
 0x23d   : > { %v1806_v34 = vunpack.c.h.bf16 %v1781_v53  ;;  %v1960_v22 = vpack.c.bf16 %v1935_v10, %v1934_v9  ;;  %v4822_v61 = vunpack.c.l.bf16 %v3863_v57  ;;  %v4823_v21 = vunpack.c.h.bf16 %v3863_v57 }
 0x23e   : > { %v1904_v52 = vmax.f32 %v1872_v15, 0.0  ;;  %v1905_v2 = vmax.f32 %v1873_v23, 0.0  ;;  %v1587_v60 = vadd.f32 %v1555_v26, %v3886_v6  ;;  %v1639_v7 = vunpack.c.l.bf16 %v4824_v1  ;;  %v4830_v15 = vld [vmem:[#allocation50_spill] sm:$0xff] }
 0x23f   : > { %v1753_v42 = vadd.f32 %v4822_v61, %v1669_v48  ;;  %v1754_v35 = vadd.f32 %v4823_v21, %v1670_v18  ;;  %2608 = vmatprep.mubr.bf16.mxu1 %v1960_v22  ;;  %v1588_v47 = vadd.f32 %v1556_v24, %v3892_v12  ;;  %v1640_v63 = vunpack.c.h.bf16 %v4824_v1  ;;  %v4833_v22 = vld [vmem:[#allocation51_spill] sm:$0xff] }
 0x240   : > { %v1936_v50 = vmin.f32 %v1904_v52, 6.0  ;;  %v1937_v32 = vmin.f32 %v1905_v2, 6.0  ;;  %v1671_v59 = vadd.f32 %v1639_v7, %v1587_v60  ;;  %v1782_v9 = vmul.bf16 %v3263_v43, %v4825_v39  ;;  %v4835_v39 = vld [vmem:[#allocation56_spill] sm:$0xff] }
 0x241   : > { %v1837_v14 = vadd.f32 %v1805_v36, %v1753_v42  ;;  %v1838_v13 = vadd.f32 %v1806_v34, %v1754_v35  ;;  %v1672_v57 = vadd.f32 %v1640_v63, %v1588_v47  ;;  %v4827_v6 = vunpack.c.l.bf16 %v4826_v5  ;;  %v4834_v42 = vld [vmem:[#allocation55_spill] sm:$0xff] }
 0x242   : > { %v1961_v3 = vpack.c.bf16 %v1937_v32, %v1936_v50  ;;  %v4829_v55 = vunpack.c.h.bf16 %v4826_v5  ;;  %v4831_v23 = vunpack.c.l.bf16 %v4830_v15  ;;  %v1807_v48 = vunpack.c.l.bf16 %v1782_v9 }
 0x243   : > { %v1505_v29 = vadd.f32 %v4827_v6, %v3890_v46  ;;  %v1874_v12 = vadd.f32 %v3897_v30, %v1837_v14  ;;  %v1875_v10 = vadd.f32 %v3897_v30, %v1838_v13  ;;  %v4832_v18 = vunpack.c.h.bf16 %v4830_v15 }
 0x244   : > { %v1506_v53 = vadd.f32 %v4829_v55, %v4828_v0  ;;  %v1755_v26 = vadd.f32 %v4831_v23, %v1671_v59  ;;  %2609 = vmatmul.mubr.bf16.gmra.mxu1 %v1961_v3  ;;  %v1808_v34 = vunpack.c.h.bf16 %v1782_v9  ;;  %v1557_v52 = vunpack.c.l.bf16 %v4833_v22  ;;  %v4836_v0 = vld [vmem:[#allocation54_spill] sm:$0xff]  ;;  %v4839_v23 = vld [vmem:[#allocation57_spill] sm:$0xff] }
 0x245   : > { %v1756_v36 = vadd.f32 %v4832_v18, %v1672_v57  ;;  %v1558_v46 = vunpack.c.h.bf16 %v4833_v22  ;;  %v1906_v2 = vmax.f32 %v1874_v12, 0.0  ;;  %v1907_v24 = vmax.f32 %v1875_v10, 0.0 }
 0x246   : > { %v1839_v61 = vadd.f32 %v1807_v48, %v1755_v26  ;;  %v1641_v21 = vunpack.c.l.bf16 %v4834_v42  ;;  %v1589_v60 = vadd.f32 %v1557_v52, %v1505_v29  ;;  %v1642_v7 = vunpack.c.h.bf16 %v4834_v42  ;;  %v4840_v48 = vld [vmem:[#allocation21_spill] sm:$0xff] }
 0x247   : > { %v1840_v35 = vadd.f32 %v1808_v34, %v1756_v36  ;;  %v1590_v1 = vadd.f32 %v1558_v46, %v1506_v53  ;;  %v1938_v50 = vmin.f32 %v1906_v2, 6.0  ;;  %v1939_v32 = vmin.f32 %v1907_v24, 6.0  ;;  %v4841_v46 = vld [vmem:[#allocation59_spill] sm:$0xff] }
 0x248   : > { %v1876_v47 = vadd.f32 %v3897_v30, %v1839_v61  ;;  %v1783_v63 = vmul.bf16 %v3263_v43, %v4008_v40  ;;  %v1673_v13 = vadd.f32 %v1641_v21, %v1589_v60  ;;  %v1559_v9 = vunpack.c.l.bf16 %v4835_v39  ;;  %v4842_v61 = vld [vmem:[#allocation18_spill] sm:$0xff] }
 0x249   : > { %v1877_v14 = vadd.f32 %v3897_v30, %v1840_v35  ;;  %v1674_v59 = vadd.f32 %v1642_v7, %v1590_v1  ;;  %v1962_v3 = vpack.c.bf16 %v1939_v32, %v1938_v50  ;;  %v4837_v55 = vunpack.c.l.bf16 %v4836_v0  ;;  %v4843_v21 = vld [vmem:[#allocation58_spill] sm:$0xff]  ;;  %v4844_v35 = vld [vmem:[#allocation16_spill] sm:$0xff] }
 0x24a   : > { %v1908_v57 = vmax.f32 %v1876_v47, 0.0  ;;  %v1809_v5 = vunpack.c.l.bf16 %v1783_v63  ;;  %v1810_v6 = vunpack.c.h.bf16 %v1783_v63  ;;  %v4838_v12 = vunpack.c.h.bf16 %v4836_v0  ;;  %v4846_v7 = vld [vmem:[#allocation26_spill] sm:$0xff] }
 0x24b   : > { %v1909_v29 = vmax.f32 %v1877_v14, 0.0  ;;  %v1757_v53 = vadd.f32 %v4837_v55, %v1673_v13  ;;  %v1560_v15 = vunpack.c.h.bf16 %v4835_v39  ;;  %2612 = vmatprep.mubr.bf16.mxu1 %v1962_v3  ;;  %v1591_v26 = vadd.f32 %v1559_v9, %v4839_v23 }
 0x24c   : > { %v1758_v10 = vadd.f32 %v4838_v12, %v1674_v59  ;;  %v1940_v40 = vmin.f32 %v1908_v57, 6.0  ;;  %v1643_v18 = vunpack.c.l.bf16 %v4840_v48  ;;  %v1644_v36 = vunpack.c.h.bf16 %v4840_v48  ;;  %v4848_v59 = vld [vmem:[#allocation25_spill] sm:$0xff] }
 0x24d   : > { %v1941_v34 = vmin.f32 %v1909_v29, 6.0  ;;  %v1841_v22 = vadd.f32 %v1809_v5, %v1757_v53  ;;  %v1592_v2 = vadd.f32 %v1560_v15, %v4841_v46  ;;  %v1784_v42 = vmul.bf16 %v3263_v43, %v4842_v61  ;;  %v4850_v5 = vld [vmem:[#allocation17_spill] sm:$0xff] }
 0x24e   : > { %v1842_v52 = vadd.f32 %v1810_v6, %v1758_v10  ;;  %v1675_v24 = vadd.f32 %v1643_v18, %v1591_v26  ;;  %v4845_v60 = vunpack.c.l.bf16 %v4844_v35  ;;  %v4847_v50 = vunpack.c.h.bf16 %v4844_v35 }
 0x24f   : > { %v1963_v47 = vpack.c.bf16 %v1941_v34, %v1940_v40  ;;  %v1878_v63 = vadd.f32 %v3897_v30, %v1841_v22  ;;  %v1676_v13 = vadd.f32 %v1644_v36, %v1592_v2  ;;  %v4849_v39 = vunpack.c.l.bf16 %v4848_v59  ;;  %v4386_v36 = vld [vmem:[%s4608_s2 + $0x1] ss:$0 sm:$0xff] }
 0x250   : > { %v1509_v1 = vadd.f32 %v4845_v60, %v4843_v21  ;;  %v1510_v32 = vadd.f32 %v4847_v50, %v4846_v7  ;;  %v1879_v14 = vadd.f32 %v3897_v30, %v1842_v52  ;;  %v1811_v3 = vunpack.c.l.bf16 %v1784_v42 }
 0x251   : > { %v1759_v9 = vadd.f32 %v4849_v39, %v1675_v24  ;;  %v1812_v57 = vunpack.c.h.bf16 %v1784_v42  ;;  %v1561_v6 = vunpack.c.l.bf16 %v4850_v5  ;;  %2613 = vmatmul.mubr.bf16.gmra.mxu1 %v1963_v47  ;;  %v1910_v29 = vmax.f32 %v1878_v63, 0.0 }
 0x252   : > { %v1911_v0 = vmax.f32 %v1879_v14, 0.0  ;;  %v4851_v55 = vunpack.c.h.bf16 %v4848_v59  ;;  %v1562_v12 = vunpack.c.h.bf16 %v4850_v5  ;;  %v1645_v30 = vunpack.c.l.bf16 %v4149_v27  ;;  %v4856_v5 = vld [vmem:[#allocation27_spill] sm:$0xff] }
 0x253   : > { %v1843_v10 = vadd.f32 %v1811_v3, %v1759_v9  ;;  %v1593_v15 = vadd.f32 %v1561_v6, %v1509_v1  ;;  %v1646_v40 = vunpack.c.h.bf16 %v4149_v27  ;;  %v1942_v23 = vmin.f32 %v1910_v29, 6.0  ;;  %v4854_v9 = vld [vmem:[#allocation24_spill] sm:$0xff] }
 0x254   : > { %v1760_v53 = vadd.f32 %v4851_v55, %v1676_v13  ;;  %v1943_v26 = vmin.f32 %v1911_v0, 6.0  ;;  %v1594_v18 = vadd.f32 %v1562_v12, %v1510_v32  ;;  %v1785_v52 = vmul.bf16 %v3263_v43, %v4142_v45 }
 0x255   : > { %v1880_v34 = vadd.f32 %v4386_v36, %v1843_v10  ;;  %v1677_v22 = vadd.f32 %v1645_v30, %v1593_v15  ;;  %v1563_v46 = vunpack.c.l.bf16 %v4161_v31  ;;  %v1564_v61 = vunpack.c.h.bf16 %v4161_v31 }
 0x256   : > { %v1844_v48 = vadd.f32 %v1812_v57, %v1760_v53  ;;  %v1964_v2 = vpack.c.bf16 %v1943_v26, %v1942_v23  ;;  %v1678_v24 = vadd.f32 %v1646_v40, %v1594_v18  ;;  %v4852_v21 = vunpack.c.l.bf16 %v4152_v25  ;;  %v4855_v57 = vld [vmem:[#allocation28_spill] sm:$0xff]  ;;  %v4860_v40 = vld [vmem:[#allocation22_spill] sm:$0xff] }
 0x257   : > { %v1912_v42 = vmax.f32 %v1880_v34, 0.0  ;;  %v1813_v60 = vunpack.c.l.bf16 %v1785_v52  ;;  %v1814_v1 = vunpack.c.h.bf16 %v1785_v52  ;;  %v4853_v50 = vunpack.c.h.bf16 %v4152_v25  ;;  %v4863_v34 = vld [vmem:[#allocation29_spill] sm:$0xff] }
 0x258   : > { %v1881_v27 = vadd.f32 %v4386_v36, %v1844_v48  ;;  %v1761_v35 = vadd.f32 %v4852_v21, %v1677_v22  ;;  %2616 = vmatprep.mubr.bf16.mxu1 %v1964_v2  ;;  %v1595_v45 = vadd.f32 %v1563_v46, %v4168_v44  ;;  %v1596_v47 = vadd.f32 %v1564_v61, %v4180_v51  ;;  %v4858_v51 = vld [vmem:[#allocation19_spill] sm:$0xff] }
 0x259   : > { %v1762_v32 = vadd.f32 %v4853_v50, %v1678_v24  ;;  %v1944_v63 = vmin.f32 %v1912_v42, 6.0  ;;  %v1647_v13 = vunpack.c.l.bf16 %v4109_v4  ;;  %v1648_v31 = vunpack.c.h.bf16 %v4109_v4 }
 0x25a   : > { %v1913_v7 = vmax.f32 %v1881_v27, 0.0  ;;  %v1845_v14 = vadd.f32 %v1813_v60, %v1761_v35  ;;  %v1786_v3 = vmul.bf16 %v3263_v43, %v4854_v9  ;;  %v4857_v6 = vunpack.c.l.bf16 %v4856_v5 }
 0x25b   : > { %v1846_v39 = vadd.f32 %v1814_v1, %v1762_v32  ;;  %v1679_v44 = vadd.f32 %v1647_v13, %v1595_v45  ;;  %v1680_v0 = vadd.f32 %v1648_v31, %v1596_v47  ;;  %v4859_v55 = vunpack.c.h.bf16 %v4856_v5 }
 0x25c   : > { %v1945_v59 = vmin.f32 %v1913_v7, 6.0  ;;  %v1513_v25 = vadd.f32 %v4857_v6, %v4855_v57  ;;  %v1882_v29 = vadd.f32 %v4386_v36, %v1845_v14  ;;  %v1815_v10 = vunpack.c.l.bf16 %v1786_v3 }
 0x25d   : > { %v1514_v53 = vadd.f32 %v4859_v55, %v4858_v51  ;;  %v1883_v4 = vadd.f32 %v4386_v36, %v1846_v39  ;;  %v1816_v15 = vunpack.c.h.bf16 %v1786_v3  ;;  %v4861_v23 = vunpack.c.l.bf16 %v4860_v40 }
 0x25e   : > { %v1965_v12 = vpack.c.bf16 %v1945_v59, %v1944_v63  ;;  %v1914_v30 = vmax.f32 %v1882_v29, 0.0  ;;  %v4862_v48 = vunpack.c.h.bf16 %v4860_v40  ;;  %v1565_v22 = vunpack.c.l.bf16 %v4863_v34  ;;  %v2746_v40 = vld [vmem:[%s3173_s14 + $0x10] sm:$0xff] }
 0x25f   : > { %v1763_v26 = vadd.f32 %v4861_v23, %v1679_v44  ;;  %v1600_v52 = vadd.f32 %v1568_v41, %v4296_v37  ;;  %v1915_v46 = vmax.f32 %v1883_v4, 0.0  ;;  %v1566_v2 = vunpack.c.h.bf16 %v4863_v34 }
 0x260   : > { %v1764_v18 = vadd.f32 %v4862_v48, %v1680_v0  ;;  %2617 = vmatmul.mubr.bf16.gmra.mxu1 %v1965_v12  ;;  %v1649_v27 = vunpack.c.l.bf16 %v4277_v38  ;;  %v1946_v24 = vmin.f32 %v1914_v30, 6.0  ;;  %v1597_v21 = vadd.f32 %v1565_v22, %v1513_v25 }
 0x261   : > { %v1847_v61 = vadd.f32 %v1815_v10, %v1763_v26  ;;  %v1947_v35 = vmin.f32 %v1915_v46, 6.0  ;;  %v1598_v60 = vadd.f32 %v1566_v2, %v1514_v53  ;;  %v1650_v1 = vunpack.c.h.bf16 %v4277_v38  ;;  %v4449_v10 = vld [vmem:[%s4611_s5] ss:$0 sm:$0xff]  ;;  %v2748_v46 = vld [vmem:[%s3173_s14 + $0x18] sm:$0xff] }
 0x262   : > { %v1848_v42 = vadd.f32 %v1816_v15, %v1764_v18  ;;  %v1787_v7 = vmul.bf16 %v3263_v43, %v4267_v17  ;;  %v1681_v41 = vadd.f32 %v1649_v27, %v1597_v21  ;;  %v1651_v50 = vunpack.c.l.bf16 %v4246_v16  ;;  %v2747_v18 = vld [vmem:[%s3173_s14] sm:$0xff] }
 0x263   : > { %v1884_v11 = vadd.f32 %v4386_v36, %v1847_v61  ;;  %v1966_v32 = vpack.c.bf16 %v1947_v35, %v1946_v24  ;;  %v1682_v45 = vadd.f32 %v1650_v1, %v1598_v60  ;;  %v1652_v63 = vunpack.c.h.bf16 %v4246_v16  ;;  %v2749_v24 = vld [vmem:[%s3173_s14 + $0x8] sm:$0xff]  ;;  %v2750_v60 = vld [vmem:[%s3173_s14 + $0x30] sm:$0xff] }
 0x264   : > { %v1885_v37 = vadd.f32 %v4386_v36, %v1848_v42  ;;  %v1817_v47 = vunpack.c.l.bf16 %v1787_v7  ;;  %v1765_v38 = vadd.f32 %v1733_v49, %v1681_v41  ;;  %v1683_v31 = vadd.f32 %v1651_v50, %v4302_v58 }
 0x265   : > { %v1916_v14 = vmax.f32 %v1884_v11, 0.0  ;;  %2620 = vmatprep.mubr.bf16.mxu1 %v1966_v32  ;;  %v1766_v17 = vadd.f32 %v1734_v56, %v1682_v45  ;;  %v1818_v59 = vunpack.c.h.bf16 %v1787_v7  ;;  %v1684_v39 = vadd.f32 %v1652_v63, %v1600_v52  ;;  %v2752_v45 = vld [vmem:[%s3173_s14 + $0x38] sm:$0xff] }
 0x266   : > { %v1917_v13 = vmax.f32 %v1885_v37, 0.0  ;;  %v1788_v9 = vmul.bf16 %v3263_v43, %v1087_v33  ;;  %v1849_v57 = vadd.f32 %v1817_v47, %v1765_v38  ;;  %v1767_v5 = vadd.f32 %v1735_v8, %v1683_v31  ;;  %v2751_v37 = vld [vmem:[%s3173_s14 + $0x20] sm:$0xff] }
 0x267   : > { %v1948_v3 = vmin.f32 %v1916_v14, 6.0  ;;  %v1850_v49 = vadd.f32 %v1818_v59, %v1766_v17  ;;  %v1768_v58 = vadd.f32 %v1736_v54, %v1684_v39  ;;  %v2753_v14 = vld [vmem:[%s3173_s14 + $0x28] sm:$0xff]  ;;  %v2754_v59 = vld [vmem:[%s3173_s14 + $0x50] sm:$0xff] }
 0x268   : > { %v1949_v16 = vmin.f32 %v1917_v13, 6.0  ;;  %v1819_v6 = vunpack.c.l.bf16 %v1788_v9  ;;  %v1820_v19 = vunpack.c.h.bf16 %v1788_v9  ;;  %v1886_v25 = vadd.f32 %v4386_v36, %v1849_v57 }
 0x269   : > { %v1887_v29 = vadd.f32 %v4386_v36, %v1850_v49 }
 0x26a   : > { %v1967_v56 = vpack.c.bf16 %v1949_v16, %v1948_v3  ;;  %v1851_v20 = vadd.f32 %v1819_v6, %v1767_v5  ;;  %v1852_v28 = vadd.f32 %v1820_v19, %v1768_v58  ;;  %v1918_v43 = vmax.f32 %v1886_v25, 0.0  ;;  %v2755_v16 = vld [vmem:[%s3173_s14 + $0x40] sm:$0xff]  ;;  %v2756_v58 = vld [vmem:[%s3173_s14 + $0x58] sm:$0xff] }
 0x26b   : > { %v1919_v33 = vmax.f32 %v1887_v29, 0.0 }
 0x26c   : > { %2621 = vmatmul.mubr.bf16.gmra.mxu1 %v1967_v56  ;;  %v1888_v44 = vadd.f32 %v4386_v36, %v1851_v20  ;;  %v1889_v8 = vadd.f32 %v4386_v36, %v1852_v28  ;;  %v1950_v0 = vmin.f32 %v1918_v43, 6.0  ;;  %v2757_v56 = vld [vmem:[%s3173_s14 + $0x48] sm:$0xff]  ;;  %v2758_v43 = vld [vmem:[%s3173_s14 + $0x70] sm:$0xff] }
 0x26d   : > { %v1951_v62 = vmin.f32 %v1919_v33, 6.0 }
 0x26e   : > { %v1920_v54 = vmax.f32 %v1888_v44, 0.0  ;;  %v1921_v51 = vmax.f32 %v1889_v8, 0.0 }
 0x26f   : > { %v1968_v55 = vpack.c.bf16 %v1951_v62, %v1950_v0  ;;  %v2759_v0 = vld [vmem:[%s3173_s14 + $0x60] sm:$0xff] }
 0x270   : > { %v1952_v53 = vmin.f32 %v1920_v54, 6.0  ;;  %v1953_v12 = vmin.f32 %v1921_v51, 6.0 }
 0x271   : > { %2624 = vmatprep.mubr.bf16.mxu1 %v1968_v55  ;;  %v2760_v55 = vld [vmem:[%s3173_s14 + $0x78] sm:$0xff] }
 0x272   : > { %v1969_v4 = vpack.c.bf16 %v1953_v12, %v1952_v53 }
 0x274   : > { %2625 = vmatmul.mubr.bf16.gmra.mxu1 %v1969_v4  ;;  %v2761_v4 = vld [vmem:[%s3173_s14 + $0x68] sm:$0xff] }
 0x2a2   : > { %v2598_v15 = vpop.f32.mrf.mxu1 }
 0x2a3   : > { %v2084_v36 = vadd.f32 %v2598_v15, %v4449_v10 }
 0x2a4   : > { %v2075_v30 = vpop.f32.mrf.mxu1 }
 0x2a5   : > { %v2236_v23 = vadd.f32 %v2746_v40, %v2084_v36  ;;  %v2076_v26 = vadd.f32 %v4449_v10, %v2075_v30 }
 0x2a6   : > { %v2599_v48 = vpop.f32.mrf.mxu1 }
 0x2a7   : > { %2268 = vst [vmem:[%s4456_s18 + $0x10] sm:$0xff] %v2236_v23  ;;  %v2234_v34 = vadd.f32 %v2747_v18, %v2076_v26  ;;  %v2087_v22 = vadd.f32 %v2599_v48, %v4449_v10  ;;  %v2762_v23 = vld [vmem:[%s3173_s14 + $0x90] sm:$0xff] }
 0x2a8   : > { %v2078_v52 = vpop.f32.mrf.mxu1 }
 0x2a9   : > { %2266 = vst [vmem:[%s4456_s18] sm:$0xff] %v2234_v34  ;;  %v2237_v2 = vadd.f32 %v2748_v46, %v2087_v22  ;;  %v2079_v27 = vadd.f32 %v4449_v10, %v2078_v52  ;;  %v2763_v34 = vld [vmem:[%s3173_s14 + $0x80] sm:$0xff] }
 0x2ab   : > { %2269 = vst [vmem:[%s4456_s18 + $0x18] sm:$0xff] %v2237_v2  ;;  %v2235_v61 = vadd.f32 %v2749_v24, %v2079_v27  ;;  %v2764_v2 = vld [vmem:[%s3173_s14 + $0x98] sm:$0xff] }
 0x2ad   : > { %2267 = vst [vmem:[%s4456_s18 + $0x8] sm:$0xff] %v2235_v61  ;;  %v2765_v61 = vld [vmem:[%s3173_s14 + $0x88] sm:$0xff] }
 0x2c8   : > { %v2602_v42 = vpop.f32.mrf.mxu1 }
 0x2c9   : > { %v2100_v21 = vadd.f32 %v2602_v42, %v4449_v10 }
 0x2ca   : > { %v2091_v35 = vpop.f32.mrf.mxu1 }
 0x2cb   : > { %v2240_v1 = vadd.f32 %v2750_v60, %v2100_v21  ;;  %v2092_v7 = vadd.f32 %v4449_v10, %v2091_v35 }
 0x2cc   : > { %v2603_v11 = vpop.f32.mrf.mxu1 }
 0x2cd   : > { %2272 = vst [vmem:[%s4456_s18 + $0x30] sm:$0xff] %v2240_v1  ;;  %v2238_v41 = vadd.f32 %v2751_v37, %v2092_v7  ;;  %v2103_v50 = vadd.f32 %v2603_v11, %v4449_v10  ;;  %v2766_v1 = vld [vmem:[%s3173_s14 + $0xb0] sm:$0xff] }
 0x2ce   : > { %v2094_v32 = vpop.f32.mrf.mxu1 }
 0x2cf   : > { %2270 = vst [vmem:[%s4456_s18 + $0x20] sm:$0xff] %v2238_v41  ;;  %v2241_v47 = vadd.f32 %v2752_v45, %v2103_v50  ;;  %v2095_v63 = vadd.f32 %v4449_v10, %v2094_v32  ;;  %v2767_v41 = vld [vmem:[%s3173_s14 + $0xa0] sm:$0xff] }
 0x2d1   : > { %2273 = vst [vmem:[%s4456_s18 + $0x38] sm:$0xff] %v2241_v47  ;;  %v2239_v13 = vadd.f32 %v2753_v14, %v2095_v63  ;;  %v2768_v47 = vld [vmem:[%s3173_s14 + $0xb8] sm:$0xff] }
 0x2d3   : > { %2271 = vst [vmem:[%s4456_s18 + $0x28] sm:$0xff] %v2239_v13  ;;  %v2769_v13 = vld [vmem:[%s3173_s14 + $0xa8] sm:$0xff] }
 0x2e9   : > { %v2606_v38 = vpop.f32.mrf.mxu1 }
 0x2ea   : > { %v2116_v31 = vadd.f32 %v2606_v38, %v4449_v10 }
 0x2eb   : > { %v2107_v17 = vpop.f32.mrf.mxu1 }
 0x2ec   : > { %v2244_v39 = vadd.f32 %v2754_v59, %v2116_v31  ;;  %v2108_v9 = vadd.f32 %v4449_v10, %v2107_v17 }
 0x2ed   : > { %v2607_v3 = vpop.f32.mrf.mxu1 }
 0x2ee   : > { %2276 = vst [vmem:[%s4456_s18 + $0x50] sm:$0xff] %v2244_v39  ;;  %v2242_v57 = vadd.f32 %v2755_v16, %v2108_v9  ;;  %v2119_v5 = vadd.f32 %v2607_v3, %v4449_v10  ;;  %v2770_v39 = vld [vmem:[%s3173_s14 + $0xd0] sm:$0xff] }
 0x2ef   : > { %v2110_v49 = vpop.f32.mrf.mxu1 }
 0x2f0   : > { %2274 = vst [vmem:[%s4456_s18 + $0x40] sm:$0xff] %v2242_v57  ;;  %v2245_v6 = vadd.f32 %v2756_v58, %v2119_v5  ;;  %v2111_v19 = vadd.f32 %v4449_v10, %v2110_v49  ;;  %v2771_v57 = vld [vmem:[%s3173_s14 + $0xc0] sm:$0xff] }
 0x2f2   : > { %2277 = vst [vmem:[%s4456_s18 + $0x58] sm:$0xff] %v2245_v6  ;;  %v2243_v25 = vadd.f32 %v2757_v56, %v2111_v19  ;;  %v2772_v6 = vld [vmem:[%s3173_s14 + $0xd8] sm:$0xff] }
 0x2f4   : > { %2275 = vst [vmem:[%s4456_s18 + $0x48] sm:$0xff] %v2243_v25  ;;  %v2773_v25 = vld [vmem:[%s3173_s14 + $0xc8] sm:$0xff] }
 0x304   : > { %v2610_v29 = vpop.f32.mrf.mxu1 }
 0x305   : > { %v2132_v20 = vadd.f32 %v2610_v29, %v4449_v10 }
 0x306   : > { %v2123_v28 = vpop.f32.mrf.mxu1 }
 0x307   : > { %v2248_v33 = vadd.f32 %v2758_v43, %v2132_v20  ;;  %v2124_v44 = vadd.f32 %v4449_v10, %v2123_v28 }
 0x308   : > { %v2611_v8 = vpop.f32.mrf.mxu1 }
 0x309   : > { %2280 = vst [vmem:[%s4456_s18 + $0x70] sm:$0xff] %v2248_v33  ;;  %v2246_v62 = vadd.f32 %v2759_v0, %v2124_v44  ;;  %v2135_v54 = vadd.f32 %v2611_v8, %v4449_v10  ;;  %v2774_v33 = vld [vmem:[%s3173_s14 + $0xf0] sm:$0xff] }
 0x30a   : > { %v2126_v51 = vpop.f32.mrf.mxu1 }
 0x30b   : > { %2278 = vst [vmem:[%s4456_s18 + $0x60] sm:$0xff] %v2246_v62  ;;  %v2249_v53 = vadd.f32 %v2760_v55, %v2135_v54  ;;  %v2127_v12 = vadd.f32 %v4449_v10, %v2126_v51  ;;  %v2775_v62 = vld [vmem:[%s3173_s14 + $0xe0] sm:$0xff] }
 0x30d   : > { %2281 = vst [vmem:[%s4456_s18 + $0x78] sm:$0xff] %v2249_v53  ;;  %v2247_v15 = vadd.f32 %v2761_v4, %v2127_v12  ;;  %v2776_v53 = vld [vmem:[%s3173_s14 + $0xf8] sm:$0xff] }
 0x30f   : > { %2279 = vst [vmem:[%s4456_s18 + $0x68] sm:$0xff] %v2247_v15  ;;  %v2777_v15 = vld [vmem:[%s3173_s14 + $0xe8] sm:$0xff] }
 0x311   : > { %v2614_v36 = vpop.f32.mrf.mxu1 }
 0x312   : > { %v2148_v30 = vadd.f32 %v2614_v36, %v4449_v10 }
 0x313   : > { %v2139_v40 = vpop.f32.mrf.mxu1 }
 0x314   : > { %v2252_v26 = vadd.f32 %v2762_v23, %v2148_v30  ;;  %v2140_v48 = vadd.f32 %v4449_v10, %v2139_v40 }
 0x315   : > { %v2615_v18 = vpop.f32.mrf.mxu1 }
 0x316   : > { %2284 = vst [vmem:[%s4456_s18 + $0x90] sm:$0xff] %v2252_v26  ;;  %v2250_v22 = vadd.f32 %v2763_v34, %v2140_v48  ;;  %v2151_v52 = vadd.f32 %v2615_v18, %v4449_v10 }
 0x317   : > { %v2142_v46 = vpop.f32.mrf.mxu1 }
 0x318   : > { %2282 = vst [vmem:[%s4456_s18 + $0x80] sm:$0xff] %v2250_v22  ;;  %v2253_v27 = vadd.f32 %v2764_v2, %v2151_v52  ;;  %v2143_v24 = vadd.f32 %v4449_v10, %v2142_v46 }
 0x31a   : > { %2285 = vst [vmem:[%s4456_s18 + $0x98] sm:$0xff] %v2253_v27  ;;  %v2251_v42 = vadd.f32 %v2765_v61, %v2143_v24 }
 0x31c   : > { %2283 = vst [vmem:[%s4456_s18 + $0x88] sm:$0xff] %v2251_v42 }
 0x320   : > { %v2618_v21 = vpop.f32.mrf.mxu1 }
 0x321   : > { %v2164_v35 = vadd.f32 %v2618_v21, %v4449_v10 }
 0x322   : > { %v2155_v60 = vpop.f32.mrf.mxu1 }
 0x323   : > { %v2256_v7 = vadd.f32 %v2766_v1, %v2164_v35  ;;  %v2156_v11 = vadd.f32 %v4449_v10, %v2155_v60 }
 0x324   : > { %v2619_v37 = vpop.f32.mrf.mxu1 }
 0x325   : > { %2288 = vst [vmem:[%s4456_s18 + $0xb0] sm:$0xff] %v2256_v7  ;;  %v2254_v50 = vadd.f32 %v2767_v41, %v2156_v11  ;;  %v2167_v32 = vadd.f32 %v2619_v37, %v4449_v10 }
 0x326   : > { %v2158_v45 = vpop.f32.mrf.mxu1 }
 0x327   : > { %2286 = vst [vmem:[%s4456_s18 + $0xa0] sm:$0xff] %v2254_v50  ;;  %v2257_v63 = vadd.f32 %v2768_v47, %v2167_v32  ;;  %v2159_v14 = vadd.f32 %v4449_v10, %v2158_v45 }
 0x329   : > { %2289 = vst [vmem:[%s4456_s18 + $0xb8] sm:$0xff] %v2257_v63  ;;  %v2255_v38 = vadd.f32 %v2769_v13, %v2159_v14 }
 0x32b   : > { %2287 = vst [vmem:[%s4456_s18 + $0xa8] sm:$0xff] %v2255_v38 }
 0x32c   : > { %v2622_v31 = vpop.f32.mrf.mxu1 }
 0x32d   : > { %v2180_v17 = vadd.f32 %v2622_v31, %v4449_v10 }
 0x32e   : > { %v2171_v59 = vpop.f32.mrf.mxu1 }
 0x32f   : > { %v2260_v9 = vadd.f32 %v2770_v39, %v2180_v17  ;;  %v2172_v3 = vadd.f32 %v4449_v10, %v2171_v59 }
 0x330   : > { %v2623_v16 = vpop.f32.mrf.mxu1 }
 0x331   : > { %2292 = vst [vmem:[%s4456_s18 + $0xd0] sm:$0xff] %v2260_v9  ;;  %v2258_v5 = vadd.f32 %v2771_v57, %v2172_v3  ;;  %v2183_v49 = vadd.f32 %v2623_v16, %v4449_v10 }
 0x332   : > { %v2174_v58 = vpop.f32.mrf.mxu1 }
 0x333   : > { %2290 = vst [vmem:[%s4456_s18 + $0xc0] sm:$0xff] %v2258_v5  ;;  %v2261_v19 = vadd.f32 %v2772_v6, %v2183_v49  ;;  %v2175_v56 = vadd.f32 %v4449_v10, %v2174_v58 }
 0x334   : > { %v2626_v20 = vpop.f32.mrf.mxu1 }
 0x335   : > { %2293 = vst [vmem:[%s4456_s18 + $0xd8] sm:$0xff] %v2261_v19  ;;  %v2259_v29 = vadd.f32 %v2773_v25, %v2175_v56  ;;  %v2196_v28 = vadd.f32 %v2626_v20, %v4449_v10 }
 0x336   : > { %v2187_v43 = vpop.f32.mrf.mxu1 }
 0x337   : > { %2291 = vst [vmem:[%s4456_s18 + $0xc8] sm:$0xff] %v2259_v29  ;;  %v2264_v44 = vadd.f32 %v2774_v33, %v2196_v28  ;;  %v2188_v8 = vadd.f32 %v4449_v10, %v2187_v43 }
 0x338   : > { %v2627_v0 = vpop.f32.mrf.mxu1 }
 0x339   : > { %2296 = vst [vmem:[%s4456_s18 + $0xf0] sm:$0xff] %v2264_v44  ;;  %v2262_v54 = vadd.f32 %v2775_v62, %v2188_v8  ;;  %v2199_v51 = vadd.f32 %v2627_v0, %v4449_v10 }
 0x33a   : > { %v2190_v55 = vpop.f32.mrf.mxu1 }
 0x33b   : > { %2294 = vst [vmem:[%s4456_s18 + $0xe0] sm:$0xff] %v2262_v54  ;;  %v2265_v12 = vadd.f32 %v2776_v53, %v2199_v51  ;;  %v2191_v4 = vadd.f32 %v4449_v10, %v2190_v55 }
 0x33d   : > { %2297 = vst [vmem:[%s4456_s18 + $0xf8] sm:$0xff] %v2265_v12  ;;  %v2263_v36 = vadd.f32 %v2777_v15, %v2191_v4 }
 0x33f   : > { %2295 = vst [vmem:[%s4456_s18 + $0xe8] sm:$0xff] %v2263_v36 }
 0x340   : > { %2897 = shalt.err (!%p2894_p2)
}
 0x341   : > { %s2898_s14 = scalar_lea.hbm %s4553_s1, 4096  ;;  %s2902_s30 = scalar_lea.hbm %s4612_s6, 8192 }
 0x342   : > { %p2899_p7 = scmp.ne.s32.totalorder %s4553_s1, %s2898_s14  ;;  %p2903_p13 = scmp.lt.s32.totalorder %s4553_s1, %s4612_s6 }
 0x343   : > { %p2904_p0 = scmp.lt.s32.totalorder %s2902_s30, %s2898_s14 }
 0x344   : > { %p2900_p9 = pnand %p2899_p7, %p4864_p4 }
 0x345   : > { %p2905_p3 = por %p2904_p0, %p2903_p13 }
 0x346   : > { %p2901_p12 = pneg %p2900_p9 }
 0x348   : > { %p2906_p1 = pnand %p2905_p3, %p2901_p12 }
 0x34a   : > { %2909 = shalt.err (!%p2906_p1)
}
 0x34b   : > { %s2984_s18 = smov 128   ;;  %s2985_s28 = smov 8  }
 0x34c   : > { %2642 = dma.vmem_to_hbm [thread:$0]  (%p4864_p4), %s4555_s10, 4096, %s4553_s1, %s2299_s24, %s2984_s18, %s2984_s18, %s2985_s28  }
 0x34d PF: > { %s2330_s4 = sand.u32 1, %s2952_s21   ;;  %p4865_p6 = scmp.ne.s32.totalorder %s4675_s8, 0 }
 0x34e   : > { %p4866_p8 = scmp.ge.s32.totalorder %s2972_s26, 2  ;;  %s2331_s17 = scalar_lea.sflag [#allocation5], %s2330_s4 }
 0x350   : > { %p2659_p5 = pnand %p4866_p8, %p4865_p6 }
 0x352   : > { %p2660_p10 = pneg %p2659_p5 }
 0x354   : > { %2947 = dma.done.wait (%p2660_p10), %s2331_s17, 4096  }
 0x355   : > { %2949 = vsyncadd (%p2660_p10), %s2331_s17, 4294963200  ;;  %s24_s26 = sadd.s32 1, %s2972_s26   ;;  %s4867_s21 = smov %s2956_s22 }
 0x356   : > { %p21_p11 = scmp.ge.s32.totalorder %s24_s26, 4   ;;  %s4868_s22 = smov %s2960_s23 }
 0x357   : > { %s4869_s23 = smov %s3145_s15  ;;  %s4870_s24 = smov %s2968_s25 }
 0x358   : > { %s4871_s25 = smov %s4873_s20  ;;  %23 = sbr.rel (!%p21_p11) target bundleno = 12 (0xc), region = 106 }
 0x35d   :  { %2336 = vsyncpa [#allocation4], 1 }
 0x35e   :  { %2338 = vsyncpa [#allocation4 + $0x1], 1 }
 0x35f   :  { %2339 = vsyncpa [#allocation7], 1 }
 0x360   :  { %2340 = vsyncpa [#allocation10], 1 }
 0x361   :  { %2341 = vsyncpa [#allocation5], 1 }
 0x362   :  { %2343 = vsyncpa [#allocation5 + $0x1], 1 }

</bundles_post_ra>
